<compile_context>
chip_gen: v7x
topology: tpu7x:2x2x1
jax: 0.10.0
libtpu: 0.0.40
codegen_flags: <defaults>
</compile_context>

<pallas_src>
import functools

import jax
import jax.numpy as jnp
from jax.experimental import pallas as pl
from jax.experimental.pallas import tpu as pltpu

EPS = 1e-5  # nn.GroupNorm default eps


def ema_kernel(x_ref, pool_ref, eh_ref, ew_ref, w1_ref, w3_ref, msk_ref,
               smat_ref, par_ref, o_ref, *, H, W, cg):
    """One grid step: nb group-batch samples, rows ordered (sample, channel)."""
    HW = H * W
    X = x_ref[0]                                        # (R, HW) f32

    b1 = par_ref[:, 0:1]                                # (R, 1)
    b3 = par_ref[:, 1:2]
    gamma = par_ref[:, 2:3]
    beta = par_ref[:, 3:4]

    # ---- pool_h / pool_w with ONE fused avg-pool matmul ---------------------
    hw_cat = jnp.dot(X, pool_ref[...],
                     preferred_element_type=jnp.float32)                # (R, H+W)

    # ---- conv1x1 (block-diag kron(I_nb, w1)) + sigmoid gate ------------------
    att = jnp.dot(w1_ref[...], hw_cat,
                  preferred_element_type=jnp.float32) + b1              # (R, H+W)
    sig = jax.nn.sigmoid(att)
    # gate[r, p] = sig_h[r, p//W] * sig_w[r, p%W] via zero-padded one-hot
    # expansion matrices (no lane slicing of `sig` needed).
    gate = (jnp.dot(sig, eh_ref[...], preferred_element_type=jnp.float32) *
            jnp.dot(sig, ew_ref[...], preferred_element_type=jnp.float32))
    x1p = X * gate                                                      # (R, HW)

    # ---- GroupNorm(num_groups == channels): per-row over HW, centered var ---
    mu = jnp.mean(x1p, axis=1, keepdims=True)
    xc = x1p - mu
    var = jnp.mean(xc * xc, axis=1, keepdims=True)
    x1 = xc * jax.lax.rsqrt(var + EPS) * gamma + beta                   # (R, HW)

    # ---- conv3x3 (zero pad 1): 9 accumulating (R,R)@(R,HW) dots --------------
    # Each tap = XLU lane-roll of the flat HW axis + boundary mask (the wrap
    # positions of the roll are exactly the masked ones).  Taps are built in
    # f32 (v5e-safe) and cast to bf16 only as MXU operands.
    acc = None
    for t in range(9):
        ky, kx = divmod(t, 3)
        d = (ky - 1) * W + (kx - 1)
        rolled = X if d == 0 else pltpu.roll(X, shift=(-d) % HW, axis=1)
        tap = (rolled * msk_ref[pl.ds(t, 1), :]).astype(jnp.bfloat16)   # (R, HW)
        part = jnp.dot(w3_ref[t], tap, preferred_element_type=jnp.float32)
        acc = part if acc is None else acc + part
    x2 = acc + b3                                                       # (R, HW)

    # ---- agp + per-sample softmax over the cg channels -----------------------
    # smat = kron(I_nb, ones(cg,cg)) sums a sample's cg rows and broadcasts the
    # result back to every row of that sample.  The shift is the per-sample
    # MEAN of the pooled logits: constant within a sample (softmax stays
    # exact) and never above the sample max, so the denominator can't
    # underflow to 0 (no 0/0 NaN).
    smat = smat_ref[...]                                                # (R, R)
    p1 = jnp.mean(x1, axis=1, keepdims=True)                            # (R, 1)
    p2 = jnp.mean(x2, axis=1, keepdims=True)
    sh1 = jnp.dot(smat, p1, preferred_element_type=jnp.float32) * (1.0 / cg)
    sh2 = jnp.dot(smat, p2, preferred_element_type=jnp.float32) * (1.0 / cg)
    e1 = jnp.exp(p1 - sh1)
    e2 = jnp.exp(p2 - sh2)
    s1 = jnp.dot(smat, e1, preferred_element_type=jnp.float32)
    s2 = jnp.dot(smat, e2, preferred_element_type=jnp.float32)
    a1 = e1 * pl.reciprocal(s1, approx=True)                            # (R, 1)
    a2 = e2 * pl.reciprocal(s2, approx=True)

    # ---- weights = softmax(agp(x1)) @ x2 + softmax(agp(x2)) @ x1 -------------
    # smat broadcasts each sample's weight map to all of its cg rows, so no
    # tile/repeat is needed before the final elementwise multiply.
    wmap = jnp.dot(smat, a1 * x2 + a2 * x1,
                   preferred_element_type=jnp.float32)                  # (R, HW)
    o_ref[0] = (X * jax.nn.sigmoid(wmap)).astype(o_ref.dtype)


def _tensorcores_per_chip() -> int:
    """One grid step per TensorCore (v7x/v5p/v4 megacore: 2, lite parts: 1)."""
    try:
        kind = jax.devices()[0].device_kind.lower()
    except Exception:
        return 1
    if "lite" in kind or "v5e" in kind or "v6e" in kind:
        return 1
    if any(tag in kind for tag in ("v7", "v5p", "v4")):
        return 2
    return 1


@functools.partial(jax.jit, static_argnames=("groups",))
def ema_pallas(x, w1, b1, w3, b3, gamma, beta, *, groups=8):
    b, c, h, w = x.shape
    cg = c // groups
    bg = b * groups
    hw = h * w

    cores = _tensorcores_per_chip()
    G = cores if (cores > 1 and bg % cores == 0) else 1   # grid steps
    nb = bg // G                                          # samples per step
    R = cg * nb                                           # rows per step

    f32 = jnp.float32
    # ---- sample-major packing: (b,c,h,w) -> (G, nb*cg, hw) is a pure reshape -
    gx = x.reshape(G, R, hw)

    # ---- constant matrices ---------------------------------------------------
    p_idx = jnp.arange(hw)
    eh = (p_idx[None, :] // w == jnp.arange(h)[:, None]).astype(f32)    # (h, hw)
    ew = (p_idx[None, :] % w == jnp.arange(w)[:, None]).astype(f32)     # (w, hw)
    pool_cat = jnp.concatenate([eh.T / w, ew.T / h], axis=1)            # (hw, h+w)
    eh_pad = jnp.concatenate([eh, jnp.zeros((w, hw), f32)], axis=0)     # (h+w, hw)
    ew_pad = jnp.concatenate([jnp.zeros((h, hw), f32), ew], axis=0)     # (h+w, hw)

    eye_nb = jnp.eye(nb, dtype=f32)
    w1_big = jnp.kron(eye_nb, w1.astype(f32))                           # (R, R)
    w3_taps = jnp.transpose(w3.astype(f32), (2, 3, 0, 1)).reshape(9, cg, cg)
    w3_big = jnp.stack([jnp.kron(eye_nb, w3_taps[t]) for t in range(9)],
                       axis=0).astype(jnp.bfloat16)                     # (9, R, R)
    smat = jnp.kron(eye_nb, jnp.ones((cg, cg), f32))                    # (R, R)

    # ---- 3x3 boundary masks on the flat h*w axis -----------------------------
    hh, ww = p_idx // w, p_idx % w
    mask_rows = []
    for ky in range(3):
        for kx in range(3):
            ok = ((hh + ky - 1 >= 0) & (hh + ky - 1 < h) &
                  (ww + kx - 1 >= 0) & (ww + kx - 1 < w))
            mask_rows.append(ok.astype(f32))
    masks = jnp.stack(mask_rows, axis=0)                                # (9, hw)

    # ---- tiny per-channel params packed into one (R, 4) block ----------------
    def _chan(v):
        return jnp.tile(v.astype(f32).reshape(cg, 1), (nb, 1))          # (R, 1)
    params = jnp.concatenate([_chan(b1), _chan(b3), _chan(gamma), _chan(beta)],
                             axis=1)                                    # (R, 4)

    kernel = functools.partial(ema_kernel, H=h, W=w, cg=cg)
    out = pl.pallas_call(
        kernel,
        out_shape=jax.ShapeDtypeStruct((G, R, hw), x.dtype),
        grid_spec=pltpu.PrefetchScalarGridSpec(
            num_scalar_prefetch=0,
            grid=(G,),
            in_specs=[
                pl.BlockSpec((1, R, hw), lambda g: (g, 0, 0)),
                pl.BlockSpec((hw, h + w), lambda g: (0, 0)),
                pl.BlockSpec((h + w, hw), lambda g: (0, 0)),
                pl.BlockSpec((h + w, hw), lambda g: (0, 0)),
                pl.BlockSpec((R, R), lambda g: (0, 0)),
                pl.BlockSpec((9, R, R), lambda g: (0, 0, 0)),
                pl.BlockSpec((9, hw), lambda g: (0, 0)),
                pl.BlockSpec((R, R), lambda g: (0, 0)),
                pl.BlockSpec((R, 4), lambda g: (0, 0)),
            ],
            out_specs=pl.BlockSpec((1, R, hw), lambda g: (g, 0, 0)),
        ),
        compiler_params=pltpu.CompilerParams(
            dimension_semantics=("parallel",)),
    )(gx, pool_cat, eh_pad, ew_pad, w1_big, w3_big, masks, smat, params)

    # ---- unpack back to (b, c, h, w): pure reshape ----------------------------
    return out.reshape(b, c, h, w)


def ema_reference(x, w1, b1, w3, b3, gamma, beta, groups=8):
    """Pure-JAX reference mirroring the PyTorch forward exactly."""
    b, c, h, w = x.shape
    cg = c // groups
    bg = b * groups
    gx = x.reshape(bg, cg, h, w)

    x_h = jnp.mean(gx, axis=3, keepdims=True)                 # (bg,cg,h,1)
    x_w = jnp.transpose(jnp.mean(gx, axis=2, keepdims=True), (0, 1, 3, 2))
    cat = jnp.concatenate([x_h, x_w], axis=2)                 # (bg,cg,h+w,1)
    hw = jax.lax.conv_general_dilated(
        cat, w1.reshape(cg, cg, 1, 1), (1, 1), "VALID",
        dimension_numbers=("NCHW", "OIHW", "NCHW")) + b1.reshape(1, cg, 1, 1)
    xh2, xw2 = hw[:, :, :h, :], hw[:, :, h:, :]
    gated = (gx * jax.nn.sigmoid(xh2) *
             jax.nn.sigmoid(jnp.transpose(xw2, (0, 1, 3, 2))))
    mu = jnp.mean(gated, axis=(2, 3), keepdims=True)
    var = jnp.mean((gated - mu) ** 2, axis=(2, 3), keepdims=True)
    x1 = ((gated - mu) / jnp.sqrt(var + EPS) * gamma.reshape(1, cg, 1, 1)
          + beta.reshape(1, cg, 1, 1))
    x2 = jax.lax.conv_general_dilated(
        gx, w3, (1, 1), ((1, 1), (1, 1)),
        dimension_numbers=("NCHW", "OIHW", "NCHW")) + b3.reshape(1, cg, 1, 1)
    x11 = jax.nn.softmax(jnp.mean(x1, axis=(2, 3))[:, None, :], axis=-1)
    x12 = x2.reshape(bg, cg, h * w)
    x21 = jax.nn.softmax(jnp.mean(x2, axis=(2, 3))[:, None, :], axis=-1)
    x22 = x1.reshape(bg, cg, h * w)
    weights = (jnp.matmul(x11, x12) + jnp.matmul(x21, x22)).reshape(bg, 1, h, w)
    return (gx * jax.nn.sigmoid(weights)).reshape(b, c, h, w)


if __name__ == "__main__":
    B, C, H, W = 2, 32, 16, 16
    GROUPS = 8
    CG = C // GROUPS

    key = jax.random.PRNGKey(0)
    kx, k1, k2, k3, k4 = jax.random.split(key, 5)

    x = jax.random.normal(kx, (B, C, H, W), jnp.float32)

    # Deterministic parameter init (shapes from EMA.__init__); synthetic values.
    w1 = jax.random.normal(k1, (CG, CG), jnp.float32) * 0.2        # conv1x1 weight
    b1 = jax.random.normal(k2, (CG, 1), jnp.float32) * 0.1         # conv1x1 bias
    w3 = jax.random.normal(k3, (CG, CG, 3, 3), jnp.float32) * 0.1  # conv3x3 weight
    b3 = jax.random.normal(k4, (CG, 1), jnp.float32) * 0.1         # conv3x3 bias
    gamma = jnp.ones((CG, 1), jnp.float32)                         # GroupNorm weight
    beta = jnp.zeros((CG, 1), jnp.float32)                         # GroupNorm bias

    out = ema_pallas(x, w1, b1, w3, b3, gamma, beta, groups=GROUPS)
    out = jax.block_until_ready(out)

    ref = ema_reference(x, w1, b1, w3, b3, gamma, beta, groups=GROUPS)
    assert out.shape == (B, C, H, W)
    err = float(jnp.max(jnp.abs(out - ref)))
    # 5e-3 tolerance: the 3x3-conv MXU dot now uses true bf16 operands (per the
    # perf review) and the softmax denominators use the approximate EUP
    # reciprocal, which moves the expected max-abs error from ~1e-5 (all-f32 /
    # bf16x3) into the low-1e-3 range.
    assert err < 5e-3, f"max abs err {err}"

    print("KERNEL_OK")
</pallas_src>

<mosaic_0001>
module attributes {stable_mosaic.version = 11 : i64} {
  func.func @ema_kernel(%arg0: i32, %arg1: memref<1x64x256xf32, #tpu.memory_space<vmem>>, %arg2: memref<256x32xf32, #tpu.memory_space<vmem>>, %arg3: memref<32x256xf32, #tpu.memory_space<vmem>>, %arg4: memref<32x256xf32, #tpu.memory_space<vmem>>, %arg5: memref<64x64xf32, #tpu.memory_space<vmem>>, %arg6: memref<9x64x64xbf16, #tpu.memory_space<vmem>>, %arg7: memref<9x256xf32, #tpu.memory_space<vmem>>, %arg8: memref<64x64xf32, #tpu.memory_space<vmem>>, %arg9: memref<64x4xf32, #tpu.memory_space<vmem>>, %arg10: memref<1x64x256xf32, #tpu.memory_space<vmem>>) attributes {dimension_semantics = [#tpu.dimension_semantics<parallel>], iteration_bounds = array<i64: 1>, scalar_prefetch = 0 : i64, scratch_operands = 0 : i64, tpu.core_type = #tpu.core_type<tc>, window_params = [{transform_indices = @transform_0, window_bounds = array<i64: 1, 64, 256>}, {pipeline_mode = #tpu.pipeline_mode<synchronous>, transform_indices = @transform_1, window_bounds = array<i64: 256, 32>}, {pipeline_mode = #tpu.pipeline_mode<synchronous>, transform_indices = @transform_2, window_bounds = array<i64: 32, 256>}, {pipeline_mode = #tpu.pipeline_mode<synchronous>, transform_indices = @transform_3, window_bounds = array<i64: 32, 256>}, {pipeline_mode = #tpu.pipeline_mode<synchronous>, transform_indices = @transform_4, window_bounds = array<i64: 64, 64>}, {pipeline_mode = #tpu.pipeline_mode<synchronous>, transform_indices = @transform_5, window_bounds = array<i64: 9, 64, 64>}, {pipeline_mode = #tpu.pipeline_mode<synchronous>, transform_indices = @transform_6, window_bounds = array<i64: 9, 256>}, {pipeline_mode = #tpu.pipeline_mode<synchronous>, transform_indices = @transform_7, window_bounds = array<i64: 64, 64>}, {pipeline_mode = #tpu.pipeline_mode<synchronous>, transform_indices = @transform_8, window_bounds = array<i64: 64, 4>}, {transform_indices = @transform_9, window_bounds = array<i64: 1, 64, 256>}]} {
    %c0 = arith.constant 0 : index
    %c0_0 = arith.constant 0 : index
    %c0_1 = arith.constant 0 : index
    %0 = vector.load %arg1[%c0, %c0_0, %c0_1] : memref<1x64x256xf32, #tpu.memory_space<vmem>>, vector<1x64x256xf32>
    %1 = vector.shape_cast %0 : vector<1x64x256xf32> to vector<64x256xf32>
    %c0_2 = arith.constant 0 : index
    %c0_3 = arith.constant 0 : index
    %2 = vector.load %arg9[%c0_2, %c0_3] : memref<64x4xf32, #tpu.memory_space<vmem>>, vector<64x1xf32>
    %c0_4 = arith.constant 0 : index
    %c1 = arith.constant 1 : index
    %3 = vector.load %arg9[%c0_4, %c1] : memref<64x4xf32, #tpu.memory_space<vmem>>, vector<64x1xf32>
    %c0_5 = arith.constant 0 : index
    %c2 = arith.constant 2 : index
    %4 = vector.load %arg9[%c0_5, %c2] : memref<64x4xf32, #tpu.memory_space<vmem>>, vector<64x1xf32>
    %c0_6 = arith.constant 0 : index
    %c3 = arith.constant 3 : index
    %5 = vector.load %arg9[%c0_6, %c3] : memref<64x4xf32, #tpu.memory_space<vmem>>, vector<64x1xf32>
    %c0_7 = arith.constant 0 : index
    %c0_8 = arith.constant 0 : index
    %6 = vector.load %arg2[%c0_7, %c0_8] : memref<256x32xf32, #tpu.memory_space<vmem>>, vector<256x32xf32>
    %cst = arith.constant dense<0.000000e+00> : vector<64x32xf32>
    %7 = tpu.matmul %1, %6, %cst {dimension_numbers = #tpu.dot_dimension_numbers<[1], [0], [0], [1], [0, 0, 1, 1], [], []>} : vector<64x256xf32>, vector<256x32xf32>, vector<64x32xf32> -> vector<64x32xf32>
    %c0_9 = arith.constant 0 : index
    %c0_10 = arith.constant 0 : index
    %8 = vector.load %arg5[%c0_9, %c0_10] : memref<64x64xf32, #tpu.memory_space<vmem>>, vector<64x64xf32>
    %cst_11 = arith.constant dense<0.000000e+00> : vector<64x32xf32>
    %9 = tpu.matmul %8, %7, %cst_11 {dimension_numbers = #tpu.dot_dimension_numbers<[1], [0], [0], [1], [0, 0, 1, 1], [], []>} : vector<64x64xf32>, vector<64x32xf32>, vector<64x32xf32> -> vector<64x32xf32>
    %10 = vector.broadcast %2 : vector<64x1xf32> to vector<64x32xf32>
    %11 = arith.addf %9, %10 : vector<64x32xf32>
    %12 = arith.negf %11 : vector<64x32xf32>
    %13 = math.exp %12 : vector<64x32xf32>
    %cst_12 = arith.constant 1.000000e+00 : f32
    %14 = vector.broadcast %cst_12 : f32 to vector<64x32xf32>
    %15 = arith.addf %14, %13 : vector<64x32xf32>
    %16 = arith.divf %14, %15 : vector<64x32xf32>
    %c0_13 = arith.constant 0 : index
    %c0_14 = arith.constant 0 : index
    %17 = vector.load %arg3[%c0_13, %c0_14] : memref<32x256xf32, #tpu.memory_space<vmem>>, vector<32x256xf32>
    %cst_15 = arith.constant dense<0.000000e+00> : vector<64x256xf32>
    %18 = tpu.matmul %16, %17, %cst_15 {dimension_numbers = #tpu.dot_dimension_numbers<[1], [0], [0], [1], [0, 0, 1, 1], [], []>} : vector<64x32xf32>, vector<32x256xf32>, vector<64x256xf32> -> vector<64x256xf32>
    %c0_16 = arith.constant 0 : index
    %c0_17 = arith.constant 0 : index
    %19 = vector.load %arg4[%c0_16, %c0_17] : memref<32x256xf32, #tpu.memory_space<vmem>>, vector<32x256xf32>
    %cst_18 = arith.constant dense<0.000000e+00> : vector<64x256xf32>
    %20 = tpu.matmul %16, %19, %cst_18 {dimension_numbers = #tpu.dot_dimension_numbers<[1], [0], [0], [1], [0, 0, 1, 1], [], []>} : vector<64x32xf32>, vector<32x256xf32>, vector<64x256xf32> -> vector<64x256xf32>
    %21 = arith.mulf %18, %20 : vector<64x256xf32>
    %22 = arith.mulf %1, %21 : vector<64x256xf32>
    %cst_19 = arith.constant dense<0.000000e+00> : vector<64xf32>
    %23 = vector.multi_reduction <add>, %22, %cst_19 [1] : vector<64x256xf32> to vector<64xf32>
    %24 = vector.shape_cast %23 : vector<64xf32> to vector<64x1xf32>
    %cst_20 = arith.constant 2.560000e+02 : f32
    %25 = vector.broadcast %cst_20 : f32 to vector<64x1xf32>
    %26 = arith.divf %24, %25 : vector<64x1xf32>
    %27 = vector.broadcast %26 : vector<64x1xf32> to vector<64x256xf32>
    %28 = arith.subf %22, %27 : vector<64x256xf32>
    %29 = arith.mulf %28, %28 : vector<64x256xf32>
    %cst_21 = arith.constant dense<0.000000e+00> : vector<64xf32>
    %30 = vector.multi_reduction <add>, %29, %cst_21 [1] : vector<64x256xf32> to vector<64xf32>
    %31 = vector.shape_cast %30 : vector<64xf32> to vector<64x1xf32>
    %cst_22 = arith.constant 2.560000e+02 : f32
    %32 = vector.broadcast %cst_22 : f32 to vector<64x1xf32>
    %33 = arith.divf %31, %32 : vector<64x1xf32>
    %cst_23 = arith.constant 9.99999974E-6 : f32
    %34 = vector.broadcast %cst_23 : f32 to vector<64x1xf32>
    %35 = arith.addf %33, %34 : vector<64x1xf32>
    %36 = math.rsqrt %35 : vector<64x1xf32>
    %37 = vector.broadcast %36 : vector<64x1xf32> to vector<64x256xf32>
    %38 = arith.mulf %28, %37 : vector<64x256xf32>
    %39 = vector.broadcast %4 : vector<64x1xf32> to vector<64x256xf32>
    %40 = arith.mulf %38, %39 : vector<64x256xf32>
    %41 = vector.broadcast %5 : vector<64x1xf32> to vector<64x256xf32>
    %42 = arith.addf %40, %41 : vector<64x256xf32>
    %c17_i32 = arith.constant 17 : i32
    %43 = tpu.dynamic_rotate %1 by %c17_i32 dim 1 : vector<64x256xf32>, i32 -> vector<64x256xf32>
    %c0_24 = arith.constant 0 : index
    %c0_25 = arith.constant 0 : index
    %44 = vector.load %arg7[%c0_24, %c0_25] : memref<9x256xf32, #tpu.memory_space<vmem>>, vector<1x256xf32>
    %45 = vector.broadcast %44 : vector<1x256xf32> to vector<64x256xf32>
    %46 = arith.mulf %43, %45 : vector<64x256xf32>
    %47 = arith.truncf %46 : vector<64x256xf32> to vector<64x256xbf16>
    %c0_26 = arith.constant 0 : index
    %c0_27 = arith.constant 0 : index
    %c0_28 = arith.constant 0 : index
    %48 = vector.load %arg6[%c0_26, %c0_27, %c0_28] : memref<9x64x64xbf16, #tpu.memory_space<vmem>>, vector<1x64x64xbf16>
    %49 = vector.shape_cast %48 : vector<1x64x64xbf16> to vector<64x64xbf16>
    %cst_29 = arith.constant dense<0.000000e+00> : vector<64x256xf32>
    %50 = tpu.matmul %49, %47, %cst_29 {dimension_numbers = #tpu.dot_dimension_numbers<[1], [0], [0], [1], [0, 0, 1, 1], [], []>} : vector<64x64xbf16>, vector<64x256xbf16>, vector<64x256xf32> -> vector<64x256xf32>
    %c16_i32 = arith.constant 16 : i32
    %51 = tpu.dynamic_rotate %1 by %c16_i32 dim 1 : vector<64x256xf32>, i32 -> vector<64x256xf32>
    %c1_30 = arith.constant 1 : index
    %c0_31 = arith.constant 0 : index
    %52 = vector.load %arg7[%c1_30, %c0_31] : memref<9x256xf32, #tpu.memory_space<vmem>>, vector<1x256xf32>
    %53 = vector.broadcast %52 : vector<1x256xf32> to vector<64x256xf32>
    %54 = arith.mulf %51, %53 : vector<64x256xf32>
    %55 = arith.truncf %54 : vector<64x256xf32> to vector<64x256xbf16>
    %c1_32 = arith.constant 1 : index
    %c0_33 = arith.constant 0 : index
    %c0_34 = arith.constant 0 : index
    %56 = vector.load %arg6[%c1_32, %c0_33, %c0_34] : memref<9x64x64xbf16, #tpu.memory_space<vmem>>, vector<1x64x64xbf16>
    %57 = vector.shape_cast %56 : vector<1x64x64xbf16> to vector<64x64xbf16>
    %cst_35 = arith.constant dense<0.000000e+00> : vector<64x256xf32>
    %58 = tpu.matmul %57, %55, %cst_35 {dimension_numbers = #tpu.dot_dimension_numbers<[1], [0], [0], [1], [0, 0, 1, 1], [], []>} : vector<64x64xbf16>, vector<64x256xbf16>, vector<64x256xf32> -> vector<64x256xf32>
    %59 = arith.addf %50, %58 : vector<64x256xf32>
    %c15_i32 = arith.constant 15 : i32
    %60 = tpu.dynamic_rotate %1 by %c15_i32 dim 1 : vector<64x256xf32>, i32 -> vector<64x256xf32>
    %c2_36 = arith.constant 2 : index
    %c0_37 = arith.constant 0 : index
    %61 = vector.load %arg7[%c2_36, %c0_37] : memref<9x256xf32, #tpu.memory_space<vmem>>, vector<1x256xf32>
    %62 = vector.broadcast %61 : vector<1x256xf32> to vector<64x256xf32>
    %63 = arith.mulf %60, %62 : vector<64x256xf32>
    %64 = arith.truncf %63 : vector<64x256xf32> to vector<64x256xbf16>
    %c2_38 = arith.constant 2 : index
    %c0_39 = arith.constant 0 : index
    %c0_40 = arith.constant 0 : index
    %65 = vector.load %arg6[%c2_38, %c0_39, %c0_40] : memref<9x64x64xbf16, #tpu.memory_space<vmem>>, vector<1x64x64xbf16>
    %66 = vector.shape_cast %65 : vector<1x64x64xbf16> to vector<64x64xbf16>
    %cst_41 = arith.constant dense<0.000000e+00> : vector<64x256xf32>
    %67 = tpu.matmul %66, %64, %cst_41 {dimension_numbers = #tpu.dot_dimension_numbers<[1], [0], [0], [1], [0, 0, 1, 1], [], []>} : vector<64x64xbf16>, vector<64x256xbf16>, vector<64x256xf32> -> vector<64x256xf32>
    %68 = arith.addf %59, %67 : vector<64x256xf32>
    %c1_i32 = arith.constant 1 : i32
    %69 = tpu.dynamic_rotate %1 by %c1_i32 dim 1 : vector<64x256xf32>, i32 -> vector<64x256xf32>
    %c3_42 = arith.constant 3 : index
    %c0_43 = arith.constant 0 : index
    %70 = vector.load %arg7[%c3_42, %c0_43] : memref<9x256xf32, #tpu.memory_space<vmem>>, vector<1x256xf32>
    %71 = vector.broadcast %70 : vector<1x256xf32> to vector<64x256xf32>
    %72 = arith.mulf %69, %71 : vector<64x256xf32>
    %73 = arith.truncf %72 : vector<64x256xf32> to vector<64x256xbf16>
    %c3_44 = arith.constant 3 : index
    %c0_45 = arith.constant 0 : index
    %c0_46 = arith.constant 0 : index
    %74 = vector.load %arg6[%c3_44, %c0_45, %c0_46] : memref<9x64x64xbf16, #tpu.memory_space<vmem>>, vector<1x64x64xbf16>
    %75 = vector.shape_cast %74 : vector<1x64x64xbf16> to vector<64x64xbf16>
    %cst_47 = arith.constant dense<0.000000e+00> : vector<64x256xf32>
    %76 = tpu.matmul %75, %73, %cst_47 {dimension_numbers = #tpu.dot_dimension_numbers<[1], [0], [0], [1], [0, 0, 1, 1], [], []>} : vector<64x64xbf16>, vector<64x256xbf16>, vector<64x256xf32> -> vector<64x256xf32>
    %77 = arith.addf %68, %76 : vector<64x256xf32>
    %c4 = arith.constant 4 : index
    %c0_48 = arith.constant 0 : index
    %78 = vector.load %arg7[%c4, %c0_48] : memref<9x256xf32, #tpu.memory_space<vmem>>, vector<1x256xf32>
    %79 = vector.broadcast %78 : vector<1x256xf32> to vector<64x256xf32>
    %80 = arith.mulf %1, %79 : vector<64x256xf32>
    %81 = arith.truncf %80 : vector<64x256xf32> to vector<64x256xbf16>
    %c4_49 = arith.constant 4 : index
    %c0_50 = arith.constant 0 : index
    %c0_51 = arith.constant 0 : index
    %82 = vector.load %arg6[%c4_49, %c0_50, %c0_51] : memref<9x64x64xbf16, #tpu.memory_space<vmem>>, vector<1x64x64xbf16>
    %83 = vector.shape_cast %82 : vector<1x64x64xbf16> to vector<64x64xbf16>
    %cst_52 = arith.constant dense<0.000000e+00> : vector<64x256xf32>
    %84 = tpu.matmul %83, %81, %cst_52 {dimension_numbers = #tpu.dot_dimension_numbers<[1], [0], [0], [1], [0, 0, 1, 1], [], []>} : vector<64x64xbf16>, vector<64x256xbf16>, vector<64x256xf32> -> vector<64x256xf32>
    %85 = arith.addf %77, %84 : vector<64x256xf32>
    %c255_i32 = arith.constant 255 : i32
    %86 = tpu.dynamic_rotate %1 by %c255_i32 dim 1 : vector<64x256xf32>, i32 -> vector<64x256xf32>
    %c5 = arith.constant 5 : index
    %c0_53 = arith.constant 0 : index
    %87 = vector.load %arg7[%c5, %c0_53] : memref<9x256xf32, #tpu.memory_space<vmem>>, vector<1x256xf32>
    %88 = vector.broadcast %87 : vector<1x256xf32> to vector<64x256xf32>
    %89 = arith.mulf %86, %88 : vector<64x256xf32>
    %90 = arith.truncf %89 : vector<64x256xf32> to vector<64x256xbf16>
    %c5_54 = arith.constant 5 : index
    %c0_55 = arith.constant 0 : index
    %c0_56 = arith.constant 0 : index
    %91 = vector.load %arg6[%c5_54, %c0_55, %c0_56] : memref<9x64x64xbf16, #tpu.memory_space<vmem>>, vector<1x64x64xbf16>
    %92 = vector.shape_cast %91 : vector<1x64x64xbf16> to vector<64x64xbf16>
    %cst_57 = arith.constant dense<0.000000e+00> : vector<64x256xf32>
    %93 = tpu.matmul %92, %90, %cst_57 {dimension_numbers = #tpu.dot_dimension_numbers<[1], [0], [0], [1], [0, 0, 1, 1], [], []>} : vector<64x64xbf16>, vector<64x256xbf16>, vector<64x256xf32> -> vector<64x256xf32>
    %94 = arith.addf %85, %93 : vector<64x256xf32>
    %c241_i32 = arith.constant 241 : i32
    %95 = tpu.dynamic_rotate %1 by %c241_i32 dim 1 : vector<64x256xf32>, i32 -> vector<64x256xf32>
    %c6 = arith.constant 6 : index
    %c0_58 = arith.constant 0 : index
    %96 = vector.load %arg7[%c6, %c0_58] : memref<9x256xf32, #tpu.memory_space<vmem>>, vector<1x256xf32>
    %97 = vector.broadcast %96 : vector<1x256xf32> to vector<64x256xf32>
    %98 = arith.mulf %95, %97 : vector<64x256xf32>
    %99 = arith.truncf %98 : vector<64x256xf32> to vector<64x256xbf16>
    %c6_59 = arith.constant 6 : index
    %c0_60 = arith.constant 0 : index
    %c0_61 = arith.constant 0 : index
    %100 = vector.load %arg6[%c6_59, %c0_60, %c0_61] : memref<9x64x64xbf16, #tpu.memory_space<vmem>>, vector<1x64x64xbf16>
    %101 = vector.shape_cast %100 : vector<1x64x64xbf16> to vector<64x64xbf16>
    %cst_62 = arith.constant dense<0.000000e+00> : vector<64x256xf32>
    %102 = tpu.matmul %101, %99, %cst_62 {dimension_numbers = #tpu.dot_dimension_numbers<[1], [0], [0], [1], [0, 0, 1, 1], [], []>} : vector<64x64xbf16>, vector<64x256xbf16>, vector<64x256xf32> -> vector<64x256xf32>
    %103 = arith.addf %94, %102 : vector<64x256xf32>
    %c240_i32 = arith.constant 240 : i32
    %104 = tpu.dynamic_rotate %1 by %c240_i32 dim 1 : vector<64x256xf32>, i32 -> vector<64x256xf32>
    %c7 = arith.constant 7 : index
    %c0_63 = arith.constant 0 : index
    %105 = vector.load %arg7[%c7, %c0_63] : memref<9x256xf32, #tpu.memory_space<vmem>>, vector<1x256xf32>
    %106 = vector.broadcast %105 : vector<1x256xf32> to vector<64x256xf32>
    %107 = arith.mulf %104, %106 : vector<64x256xf32>
    %108 = arith.truncf %107 : vector<64x256xf32> to vector<64x256xbf16>
    %c7_64 = arith.constant 7 : index
    %c0_65 = arith.constant 0 : index
    %c0_66 = arith.constant 0 : index
    %109 = vector.load %arg6[%c7_64, %c0_65, %c0_66] : memref<9x64x64xbf16, #tpu.memory_space<vmem>>, vector<1x64x64xbf16>
    %110 = vector.shape_cast %109 : vector<1x64x64xbf16> to vector<64x64xbf16>
    %cst_67 = arith.constant dense<0.000000e+00> : vector<64x256xf32>
    %111 = tpu.matmul %110, %108, %cst_67 {dimension_numbers = #tpu.dot_dimension_numbers<[1], [0], [0], [1], [0, 0, 1, 1], [], []>} : vector<64x64xbf16>, vector<64x256xbf16>, vector<64x256xf32> -> vector<64x256xf32>
    %112 = arith.addf %103, %111 : vector<64x256xf32>
    %c239_i32 = arith.constant 239 : i32
    %113 = tpu.dynamic_rotate %1 by %c239_i32 dim 1 : vector<64x256xf32>, i32 -> vector<64x256xf32>
    %c8 = arith.constant 8 : index
    %c0_68 = arith.constant 0 : index
    %114 = vector.load %arg7[%c8, %c0_68] : memref<9x256xf32, #tpu.memory_space<vmem>>, vector<1x256xf32>
    %115 = vector.broadcast %114 : vector<1x256xf32> to vector<64x256xf32>
    %116 = arith.mulf %113, %115 : vector<64x256xf32>
    %117 = arith.truncf %116 : vector<64x256xf32> to vector<64x256xbf16>
    %c8_69 = arith.constant 8 : index
    %c0_70 = arith.constant 0 : index
    %c0_71 = arith.constant 0 : index
    %118 = vector.load %arg6[%c8_69, %c0_70, %c0_71] : memref<9x64x64xbf16, #tpu.memory_space<vmem>>, vector<1x64x64xbf16>
    %119 = vector.shape_cast %118 : vector<1x64x64xbf16> to vector<64x64xbf16>
    %cst_72 = arith.constant dense<0.000000e+00> : vector<64x256xf32>
    %120 = tpu.matmul %119, %117, %cst_72 {dimension_numbers = #tpu.dot_dimension_numbers<[1], [0], [0], [1], [0, 0, 1, 1], [], []>} : vector<64x64xbf16>, vector<64x256xbf16>, vector<64x256xf32> -> vector<64x256xf32>
    %121 = arith.addf %112, %120 : vector<64x256xf32>
    %122 = vector.broadcast %3 : vector<64x1xf32> to vector<64x256xf32>
    %123 = arith.addf %121, %122 : vector<64x256xf32>
    %c0_73 = arith.constant 0 : index
    %c0_74 = arith.constant 0 : index
    %124 = vector.load %arg8[%c0_73, %c0_74] : memref<64x64xf32, #tpu.memory_space<vmem>>, vector<64x64xf32>
    %cst_75 = arith.constant dense<0.000000e+00> : vector<64xf32>
    %125 = vector.multi_reduction <add>, %42, %cst_75 [1] : vector<64x256xf32> to vector<64xf32>
    %126 = vector.shape_cast %125 : vector<64xf32> to vector<64x1xf32>
    %cst_76 = arith.constant 2.560000e+02 : f32
    %127 = vector.broadcast %cst_76 : f32 to vector<64x1xf32>
    %128 = arith.divf %126, %127 : vector<64x1xf32>
    %cst_77 = arith.constant dense<0.000000e+00> : vector<64xf32>
    %129 = vector.multi_reduction <add>, %123, %cst_77 [1] : vector<64x256xf32> to vector<64xf32>
    %130 = vector.shape_cast %129 : vector<64xf32> to vector<64x1xf32>
    %cst_78 = arith.constant 2.560000e+02 : f32
    %131 = vector.broadcast %cst_78 : f32 to vector<64x1xf32>
    %132 = arith.divf %130, %131 : vector<64x1xf32>
    %cst_79 = arith.constant dense<0.000000e+00> : vector<64x1xf32>
    %133 = tpu.matmul %124, %128, %cst_79 {dimension_numbers = #tpu.dot_dimension_numbers<[1], [0], [0], [1], [0, 0, 1, 1], [], []>} : vector<64x64xf32>, vector<64x1xf32>, vector<64x1xf32> -> vector<64x1xf32>
    %cst_80 = arith.constant 2.500000e-01 : f32
    %134 = vector.broadcast %cst_80 : f32 to vector<64x1xf32>
    %135 = arith.mulf %133, %134 : vector<64x1xf32>
    %cst_81 = arith.constant dense<0.000000e+00> : vector<64x1xf32>
    %136 = tpu.matmul %124, %132, %cst_81 {dimension_numbers = #tpu.dot_dimension_numbers<[1], [0], [0], [1], [0, 0, 1, 1], [], []>} : vector<64x64xf32>, vector<64x1xf32>, vector<64x1xf32> -> vector<64x1xf32>
    %cst_82 = arith.constant 2.500000e-01 : f32
    %137 = vector.broadcast %cst_82 : f32 to vector<64x1xf32>
    %138 = arith.mulf %136, %137 : vector<64x1xf32>
    %139 = arith.subf %128, %135 : vector<64x1xf32>
    %140 = math.exp %139 : vector<64x1xf32>
    %141 = arith.subf %132, %138 : vector<64x1xf32>
    %142 = math.exp %141 : vector<64x1xf32>
    %cst_83 = arith.constant dense<0.000000e+00> : vector<64x1xf32>
    %143 = tpu.matmul %124, %140, %cst_83 {dimension_numbers = #tpu.dot_dimension_numbers<[1], [0], [0], [1], [0, 0, 1, 1], [], []>} : vector<64x64xf32>, vector<64x1xf32>, vector<64x1xf32> -> vector<64x1xf32>
    %cst_84 = arith.constant dense<0.000000e+00> : vector<64x1xf32>
    %144 = tpu.matmul %124, %142, %cst_84 {dimension_numbers = #tpu.dot_dimension_numbers<[1], [0], [0], [1], [0, 0, 1, 1], [], []>} : vector<64x64xf32>, vector<64x1xf32>, vector<64x1xf32> -> vector<64x1xf32>
    %145 = tpu.reciprocal %143 {approx = true} : vector<64x1xf32> -> vector<64x1xf32>
    %146 = arith.mulf %140, %145 : vector<64x1xf32>
    %147 = tpu.reciprocal %144 {approx = true} : vector<64x1xf32> -> vector<64x1xf32>
    %148 = arith.mulf %142, %147 : vector<64x1xf32>
    %149 = vector.broadcast %146 : vector<64x1xf32> to vector<64x256xf32>
    %150 = arith.mulf %149, %123 : vector<64x256xf32>
    %151 = vector.broadcast %148 : vector<64x1xf32> to vector<64x256xf32>
    %152 = arith.mulf %151, %42 : vector<64x256xf32>
    %153 = arith.addf %150, %152 : vector<64x256xf32>
    %cst_85 = arith.constant dense<0.000000e+00> : vector<64x256xf32>
    %154 = tpu.matmul %124, %153, %cst_85 {dimension_numbers = #tpu.dot_dimension_numbers<[1], [0], [0], [1], [0, 0, 1, 1], [], []>} : vector<64x64xf32>, vector<64x256xf32>, vector<64x256xf32> -> vector<64x256xf32>
    %155 = arith.negf %154 : vector<64x256xf32>
    %156 = math.exp %155 : vector<64x256xf32>
    %cst_86 = arith.constant 1.000000e+00 : f32
    %157 = vector.broadcast %cst_86 : f32 to vector<64x256xf32>
    %158 = arith.addf %157, %156 : vector<64x256xf32>
    %159 = arith.divf %157, %158 : vector<64x256xf32>
    %160 = arith.mulf %1, %159 : vector<64x256xf32>
    %c0_87 = arith.constant 0 : index
    %c0_88 = arith.constant 0 : index
    %c0_89 = arith.constant 0 : index
    %161 = vector.load %arg10[%c0_87, %c0_88, %c0_89] : memref<1x64x256xf32, #tpu.memory_space<vmem>>, vector<1x64x256xf32>
    %162 = vector.shape_cast %161 : vector<1x64x256xf32> to vector<64x256xf32>
    %163 = vector.shape_cast %160 : vector<64x256xf32> to vector<1x64x256xf32>
    tpu.vector_store %arg10[%c0_87, %c0_88, %c0_89], %163 {strides = array<i32>} : memref<1x64x256xf32, #tpu.memory_space<vmem>>, vector<1x64x256xf32>,
    return
  }
  func.func @transform_0(%arg0: i32) -> (i32, i32, i32) {
    %c0_i32 = arith.constant 0 : i32
    %c0_i32_0 = arith.constant 0 : i32
    %c0_i32_1 = arith.constant 0 : i32
    return %arg0, %c0_i32, %c0_i32_0 : i32, i32, i32
  }
  func.func @transform_1(%arg0: i32) -> (i32, i32) {
    %c0_i32 = arith.constant 0 : i32
    %c0_i32_0 = arith.constant 0 : i32
    %c0_i32_1 = arith.constant 0 : i32
    return %c0_i32, %c0_i32_0 : i32, i32
  }
  func.func @transform_2(%arg0: i32) -> (i32, i32) {
    %c0_i32 = arith.constant 0 : i32
    %c0_i32_0 = arith.constant 0 : i32
    %c0_i32_1 = arith.constant 0 : i32
    return %c0_i32, %c0_i32_0 : i32, i32
  }
  func.func @transform_3(%arg0: i32) -> (i32, i32) {
    %c0_i32 = arith.constant 0 : i32
    %c0_i32_0 = arith.constant 0 : i32
    %c0_i32_1 = arith.constant 0 : i32
    return %c0_i32, %c0_i32_0 : i32, i32
  }
  func.func @transform_4(%arg0: i32) -> (i32, i32) {
    %c0_i32 = arith.constant 0 : i32
    %c0_i32_0 = arith.constant 0 : i32
    %c0_i32_1 = arith.constant 0 : i32
    return %c0_i32, %c0_i32_0 : i32, i32
  }
  func.func @transform_5(%arg0: i32) -> (i32, i32, i32) {
    %c0_i32 = arith.constant 0 : i32
    %c0_i32_0 = arith.constant 0 : i32
    %c0_i32_1 = arith.constant 0 : i32
    %c0_i32_2 = arith.constant 0 : i32
    return %c0_i32, %c0_i32_0, %c0_i32_1 : i32, i32, i32
  }
  func.func @transform_6(%arg0: i32) -> (i32, i32) {
    %c0_i32 = arith.constant 0 : i32
    %c0_i32_0 = arith.constant 0 : i32
    %c0_i32_1 = arith.constant 0 : i32
    return %c0_i32, %c0_i32_0 : i32, i32
  }
  func.func @transform_7(%arg0: i32) -> (i32, i32) {
    %c0_i32 = arith.constant 0 : i32
    %c0_i32_0 = arith.constant 0 : i32
    %c0_i32_1 = arith.constant 0 : i32
    return %c0_i32, %c0_i32_0 : i32, i32
  }
  func.func @transform_8(%arg0: i32) -> (i32, i32) {
    %c0_i32 = arith.constant 0 : i32
    %c0_i32_0 = arith.constant 0 : i32
    %c0_i32_1 = arith.constant 0 : i32
    return %c0_i32, %c0_i32_0 : i32, i32
  }
  func.func @transform_9(%arg0: i32) -> (i32, i32, i32) {
    %c0_i32 = arith.constant 0 : i32
    %c0_i32_0 = arith.constant 0 : i32
    %c0_i32_1 = arith.constant 0 : i32
    return %arg0, %c0_i32, %c0_i32_0 : i32, i32, i32
  }
}

</mosaic_0001>

<bundles_post_ra>
// kernel: mul.84
= control target key start
LH: loop header
LB: loop body
LE: loop exit
PB: predicated region body
PF: predicated region fallthrough
CT: control target
= control target key end

     0   :  { %s188_s0 = inlined_call_operand.vmem [shape: f32[64,64], index: 0, kind: input, shape index: {}]   ;;  %s189_s1 = inlined_call_operand.vmem [shape: f32[64,64], index: 1, kind: input, shape index: {}]   ;;  %s190_s2 = inlined_call_operand.vmem [shape: f32[64,64], index: 2, kind: output, shape index: {}]  }
   0x1   :  { %v3_v0 = vld [vmem:[%s188_s0] sm:$0xff]  ;;  %v80_v2 = vld [vmem:[%s188_s0 + $0x8] sm:$0xff]  ;;  %v83_v5 = vld [vmem:[%s188_s0 + $0x10] sm:$0xff] }
   0x2   :  { %v4_v1 = vld [vmem:[%s189_s1] sm:$0xff]  ;;  %v81_v4 = vld [vmem:[%s189_s1 + $0x8] sm:$0xff]  ;;  %v84_v6 = vld [vmem:[%s189_s1 + $0x10] sm:$0xff] }
   0x3   :  { %v7_v3 = vmul.f32 %v4_v1, %v3_v0  ;;  %v16_v7 = vmul.f32 %v81_v4, %v80_v2  ;;  %v26_v8 = vmul.f32 %v84_v6, %v83_v5  ;;  %v86_v9 = vld [vmem:[%s188_s0 + $0x18] sm:$0xff]  ;;  %v89_v11 = vld [vmem:[%s188_s0 + $0x20] sm:$0xff]  ;;  %v92_v14 = vld [vmem:[%s188_s0 + $0x28] sm:$0xff] }
   0x4   :  { %v87_v10 = vld [vmem:[%s189_s1 + $0x18] sm:$0xff]  ;;  %v90_v13 = vld [vmem:[%s189_s1 + $0x20] sm:$0xff]  ;;  %v93_v15 = vld [vmem:[%s189_s1 + $0x28] sm:$0xff] }
   0x5   :  { %9 = vst [vmem:[%s190_s2] sm:$0xff] %v7_v3  ;;  %v36_v12 = vmul.f32 %v87_v10, %v86_v9  ;;  %82 = vst [vmem:[%s190_s2 + $0x8] sm:$0xff] %v16_v7  ;;  %v46_v16 = vmul.f32 %v90_v13, %v89_v11  ;;  %v56_v17 = vmul.f32 %v93_v15, %v92_v14  ;;  %v95_v18 = vld [vmem:[%s188_s0 + $0x30] sm:$0xff]  ;;  %v98_v20 = vld [vmem:[%s188_s0 + $0x38] sm:$0xff] }
   0x6   :  { %85 = vst [vmem:[%s190_s2 + $0x10] sm:$0xff] %v26_v8  ;;  %v96_v19 = vld [vmem:[%s189_s1 + $0x30] sm:$0xff]  ;;  %v99_v22 = vld [vmem:[%s189_s1 + $0x38] sm:$0xff] }
   0x7   :  { %88 = vst [vmem:[%s190_s2 + $0x18] sm:$0xff] %v36_v12  ;;  %v66_v21 = vmul.f32 %v96_v19, %v95_v18  ;;  %91 = vst [vmem:[%s190_s2 + $0x20] sm:$0xff] %v46_v16  ;;  %v76_v23 = vmul.f32 %v99_v22, %v98_v20 }
   0x8   :  { %94 = vst [vmem:[%s190_s2 + $0x28] sm:$0xff] %v56_v17 }
   0x9   :  { %97 = vst [vmem:[%s190_s2 + $0x30] sm:$0xff] %v66_v21  ;;  %100 = vst [vmem:[%s190_s2 + $0x38] sm:$0xff] %v76_v23 }

// kernel: ema_pallas.1
= control target key start
LH: loop header
LB: loop body
LE: loop exit
PB: predicated region body
PF: predicated region fallthrough
CT: control target
= control target key end

     0   :  { %vm242_vm0 = vcmask 523264   ;;  %s4923_s29 = smov 17   ;;  %s4925_s17 = smov 1   ;;  %vm428_vm9 = vcmask 261120   ;;  %s7383_s1 = inlined_call_operand.vmem [shape: f32[256,32], index: 1, kind: input, shape index: {}]   ;;  %s7384_s0 = inlined_call_operand.vmem [shape: f32[1,64,256], index: 0, kind: input, shape index: {}]   ;;  %s7385_s4 = inlined_call_operand.vmem [shape: f32[64,64], index: 4, kind: input, shape index: {}]   ;;  %s7386_s8 = inlined_call_operand.vmem [shape: f32[64,4], index: 8, kind: input, shape index: {}]   ;;  %s7387_s5 = inlined_call_operand.vmem [shape: bf16[9,64,64], index: 5, kind: input, shape index: {}]   ;;  %s7388_s6 = inlined_call_operand.vmem [shape: f32[9,256], index: 6, kind: input, shape index: {}]   ;;  %s7389_s2 = inlined_call_operand.vmem [shape: f32[32,256], index: 2, kind: input, shape index: {}]   ;;  %s7390_s3 = inlined_call_operand.vmem [shape: f32[32,256], index: 3, kind: input, shape index: {}]   ;;  %s7391_s7 = inlined_call_operand.vmem [shape: f32[64,64], index: 7, kind: input, shape index: {}]   ;;  %s7392_s9 = inlined_call_operand.vmem [shape: f32[1,64,256], index: 9, kind: output, shape index: {}]  }
   0x1   :  { %v73_v0 = vld [vmem:[%s7383_s1 + $0x80] sm:$0xff]  ;;  %v74_v1 = vld [vmem:[%s7383_s1 + $0x88] sm:$0xff]  ;;  %v75_v5 = vld [vmem:[%s7383_s1 + $0x90] sm:$0xff]  ;;  %s4926_s18 = smov 127   ;;  %s4927_s13 = smov 113  }
   0x2   :  { %v57_v2 = vld [vmem:[%s7383_s1] sm:$0xff]  ;;  %v4348_v3 = vpack.c.bf16 %v74_v1, %v73_v0  ;;  %v58_v4 = vld [vmem:[%s7383_s1 + $0x8] sm:$0xff]  ;;  %v76_v6 = vld [vmem:[%s7383_s1 + $0x98] sm:$0xff]  ;;  %v4922_v1 = vmov 0   ;;  %s4928_s14 = smov 112   ;;  %s4931_s27 = smov 111  }
   0x3   :  { %v4350_v7 = vpack.c.bf16 %v58_v4, %v57_v2  ;;  %v4352_v8 = vpack.c.bf16 %v76_v6, %v75_v5  ;;  %v59_v9 = vld [vmem:[%s7383_s1 + $0x10] sm:$0xff]  ;;  %v60_v10 = vld [vmem:[%s7383_s1 + $0x18] sm:$0xff]  ;;  %v77_v11 = vld [vmem:[%s7383_s1 + $0xa0] sm:$0xff]  ;;  %4634 = vset.pattern.permute.xlu1 %v4922_v1  ;;  %4633 = vset.pattern.permute.xlu0 %v4922_v1 }
   0x4   :  { %4349 = vmatprep.subr.bf16.mxu0 %v4348_v3  ;;  %v78_v12 = vld [vmem:[%s7383_s1 + $0xa8] sm:$0xff]  ;;  %v4354_v13 = vpack.c.bf16 %v60_v10, %v59_v9  ;;  %v61_v15 = vld [vmem:[%s7383_s1 + $0x20] sm:$0xff]  ;;  %v79_v17 = vld [vmem:[%s7383_s1 + $0xb0] sm:$0xff]  ;;  %1303 = vmatprep.mubr.bf16.mxu1 %v4922_v1 }
   0x5   :  { %4351 = vmatpush3.bf16.msra.mxu0 %v4350_v7  ;;  %v4356_v14 = vpack.c.bf16 %v78_v12, %v77_v11  ;;  %v62_v16 = vld [vmem:[%s7383_s1 + $0x28] sm:$0xff]  ;;  %v80_v18 = vld [vmem:[%s7383_s1 + $0xb8] sm:$0xff]  ;;  %v63_v21 = vld [vmem:[%s7383_s1 + $0x30] sm:$0xff] }
   0x6   :  { %4353 = vmatprep.subr.bf16.mxu0 %v4352_v8  ;;  %v4358_v19 = vpack.c.bf16 %v62_v16, %v61_v15  ;;  %v4360_v20 = vpack.c.bf16 %v80_v18, %v79_v17  ;;  %v64_v22 = vld [vmem:[%s7383_s1 + $0x38] sm:$0xff]  ;;  %v81_v23 = vld [vmem:[%s7383_s1 + $0xc0] sm:$0xff]  ;;  %v82_v24 = vld [vmem:[%s7383_s1 + $0xc8] sm:$0xff] }
   0x7   :  { %v5042_v25 = vld [vmem:[%s7384_s0 + $0x8] sm:$0xff]  ;;  %v4362_v26 = vpack.c.bf16 %v64_v22, %v63_v21  ;;  %v4364_v27 = vpack.c.bf16 %v82_v24, %v81_v23  ;;  %v65_v28 = vld [vmem:[%s7383_s1 + $0x40] sm:$0xff]  ;;  %v83_v30 = vld [vmem:[%s7383_s1 + $0xd0] sm:$0xff] }
   0x8   :  { %153 = vmatprep.mubr.f32.mxu0 %v5042_v25  ;;  %v66_v29 = vld [vmem:[%s7383_s1 + $0x48] sm:$0xff]  ;;  %v84_v31 = vld [vmem:[%s7383_s1 + $0xd8] sm:$0xff]  ;;  %v67_v34 = vld [vmem:[%s7383_s1 + $0x50] sm:$0xff] }
   0x9   :  { %4355 = vmatpush3.bf16.msra.mxu0 %v4354_v13  ;;  %v4366_v32 = vpack.c.bf16 %v66_v29, %v65_v28  ;;  %v4368_v33 = vpack.c.bf16 %v84_v31, %v83_v30  ;;  %v68_v35 = vld [vmem:[%s7383_s1 + $0x58] sm:$0xff]  ;;  %v85_v36 = vld [vmem:[%s7383_s1 + $0xe0] sm:$0xff]  ;;  %v86_v37 = vld [vmem:[%s7383_s1 + $0xe8] sm:$0xff] }
   0xa   :  { %4357 = vmatprep.subr.bf16.mxu0 %v4356_v14  ;;  %v4370_v38 = vpack.c.bf16 %v68_v35, %v67_v34  ;;  %v4372_v39 = vpack.c.bf16 %v86_v37, %v85_v36  ;;  %v69_v40 = vld [vmem:[%s7383_s1 + $0x60] sm:$0xff]  ;;  %v70_v41 = vld [vmem:[%s7383_s1 + $0x68] sm:$0xff]  ;;  %v87_v42 = vld [vmem:[%s7383_s1 + $0xf0] sm:$0xff] }
   0xb   :  { %v88_v43 = vld [vmem:[%s7383_s1 + $0xf8] sm:$0xff]  ;;  %v4374_v44 = vpack.c.bf16 %v70_v41, %v69_v40  ;;  %v71_v46 = vld [vmem:[%s7383_s1 + $0x70] sm:$0xff]  ;;  %v5090_v49 = vld [vmem:[%s7384_s0] sm:$0xff] }
   0xc   :  { %v4376_v45 = vpack.c.bf16 %v88_v43, %v87_v42  ;;  %v72_v47 = vld [vmem:[%s7383_s1 + $0x78] sm:$0xff]  ;;  %v5102_v51 = vld [vmem:[%s7384_s0 + $0x10] sm:$0xff]  ;;  %v5107_v52 = vld [vmem:[%s7384_s0 + $0x28] sm:$0xff]  ;;  %s4924_s1 = smov 15  }
   0xd   :  { %4359 = vmatpush3.bf16.msra.mxu0 %v4358_v19  ;;  %v4378_v48 = vpack.c.bf16 %v72_v47, %v71_v46  ;;  %v5095_v50 = vld [vmem:[%s7384_s0 + $0x18] sm:$0xff]  ;;  %v5114_v53 = vld [vmem:[%s7384_s0 + $0x20] sm:$0xff]  ;;  %v5126_v55 = vld [vmem:[%s7384_s0 + $0x30] sm:$0xff] }
   0xe   :  { %4361 = vmatprep.subr.bf16.mxu0 %v4360_v20  ;;  %v5119_v54 = vld [vmem:[%s7384_s0 + $0x38] sm:$0xff]  ;;  %v5131_v56 = vld [vmem:[%s7384_s0 + $0x48] sm:$0xff]  ;;  %v5138_v57 = vld [vmem:[%s7384_s0 + $0x40] sm:$0xff] }
   0xf   :  { %v5143_v58 = vld [vmem:[%s7384_s0 + $0x58] sm:$0xff]  ;;  %v5150_v59 = vld [vmem:[%s7384_s0 + $0x50] sm:$0xff]  ;;  %v5155_v60 = vld [vmem:[%s7384_s0 + $0x68] sm:$0xff] }
  0x10   :  { %v5162_v61 = vld [vmem:[%s7384_s0 + $0x60] sm:$0xff]  ;;  %v5167_v62 = vld [vmem:[%s7384_s0 + $0x78] sm:$0xff]  ;;  %v5174_v63 = vld [vmem:[%s7384_s0 + $0x70] sm:$0xff] }
  0x11   :  { %4363 = vmatpush3.bf16.msra.mxu0 %v4362_v26  ;;  %v194_v0 = vld [vmem:[%s7385_s4] sm:$0xff]  ;;  %v51_v2 = vld [vmem:[%s7386_s8 + $0x10] sm:$0xff]  ;;  %v52_v4 = vld [vmem:[%s7386_s8 + $0x18] sm:$0xff] }
  0x12   :  { %4365 = vmatprep.subr.bf16.mxu0 %v4364_v27  ;;  %v49_v3 = vld [vmem:[%s7386_s8] sm:$0xff]  ;;  %214 = vperm.xlu1 %4634, %v51_v2   ;;  %v50_v5 = vld [vmem:[%s7386_s8 + $0x8] sm:$0xff]  ;;  %v55_v8 = vld [vmem:[%s7386_s8 + $0x30] sm:$0xff] }
  0x13   :  { %204 = vperm.xlu0 %4633, %v49_v3   ;;  %v53_v6 = vld [vmem:[%s7386_s8 + $0x20] sm:$0xff]  ;;  %v54_v7 = vld [vmem:[%s7386_s8 + $0x28] sm:$0xff]  ;;  %v56_v9 = vld [vmem:[%s7386_s8 + $0x38] sm:$0xff] }
  0x14   :  { %v196_v40 = vld [vmem:[%s7385_s4 + $0x10] sm:$0xff]  ;;  %v197_v41 = vld [vmem:[%s7385_s4 + $0x18] sm:$0xff]  ;;  %v198_v42 = vld [vmem:[%s7385_s4 + $0x20] sm:$0xff] }
  0x15   :  { %4367 = vmatpush3.bf16.msra.mxu0 %v4366_v32  ;;  %v199_v43 = vld [vmem:[%s7385_s4 + $0x28] sm:$0xff]  ;;  %v201_v46 = vld [vmem:[%s7385_s4 + $0x38] sm:$0xff] }
  0x16   :  { %4369 = vmatprep.subr.bf16.mxu0 %v4368_v33  ;;  %219 = vperm.xlu1 %4634, %v52_v4  }
  0x17   :  { %209 = vperm.xlu0 %4633, %v50_v5  }
  0x19   :  { %4371 = vmatpush3.bf16.msra.mxu0 %v4370_v38 }
  0x1a   :  { %4373 = vmatprep.subr.bf16.mxu0 %v4372_v39  ;;  %946 = vrot.lane.b32.xlu1 %v5102_v51, %s4923_s29  ;;  %v195_v39 = vld [vmem:[%s7385_s4 + $0x8] sm:$0xff] }
  0x1b   :  { %944 = vrot.lane.b32.xlu0 %v5090_v49, %s4923_s29 }
  0x1d   :  { %4375 = vmatpush3.bf16.msra.mxu0 %v4374_v44  ;;  %v200_v44 = vld [vmem:[%s7385_s4 + $0x30] sm:$0xff] }
  0x1e   :  { %4377 = vmatprep.subr.bf16.mxu0 %v4376_v45  ;;  %962 = vrot.lane.b32.xlu1 %v5095_v50, %s4923_s29  ;;  %v976_v45 = vlaneseq }
  0x1f   :  { %960 = vrot.lane.b32.xlu0 %v5042_v25, %s4923_s29 }
  0x20   :  { %v5332_v4 = vand.u32 127, %v976_v45 }
  0x21   :  { %4379 = vmatpush3.bf16.msra.mxu0 %v4378_v48 }
  0x22   :  { %948 = vrot.lane.b32.xlu1 %v5114_v53, %s4923_s29  ;;  %vm978_vm1 = vcmp.lt.s32.totalorder %v5332_v4, 17  ;;  %vm1376_vm2 = vcmp.lt.s32.totalorder %v5332_v4, 15  ;;  %vm1592_vm3 = vcmp.lt.s32.totalorder %v5332_v4, 1  ;;  %vm1975_vm4 = vcmp.lt.s32.totalorder %v5332_v4, 127 }
  0x23   :  { %224 = vperm.xlu0 %4633, %v53_v6   ;;  %vm2191_vm5 = vcmp.lt.s32.totalorder %v5332_v4, 113  ;;  %vm2407_vm6 = vcmp.lt.s32.totalorder %v5332_v4, 112  ;;  %vm2623_vm7 = vcmp.lt.s32.totalorder %v5332_v4, 111  ;;  %vm1071_vm8 = vcmp.lt.s32.totalorder %v5332_v4, 16  ;;  %v4678_v4 = vld [vmem:[%s7387_s5 + $0x100] sm:$0xff]  }
  0x24   :  { %154 = vmatmul.mubr.f32.vlgmr.msra.gmra.mrb[0].mxu0 %v5090_v49 }
  0x25   :  { %158 = vmatprep.mubr.f32.mxu0 %v5095_v50 }
  0x26   :  { %964 = vrot.lane.b32.xlu1 %v5107_v52, %s4923_s29 }
  0x27   :  { %950 = vrot.lane.b32.xlu0 %v5126_v55, %s4923_s29 }
  0x28   :  { %159 = vmatmul.mubr.f32.gmra.mrb[2].mxu0 %v5102_v51 }
  0x29   :  { %163 = vmatprep.mubr.f32.mxu0 %v5107_v52 }
  0x2a   :  { %229 = vperm.xlu1 %4634, %v54_v7   ;;  %v995_v7 = vld [vmem:[%s7388_s6] ss:$8 sm:$0x3] }
  0x2b   :  { %966 = vrot.lane.b32.xlu0 %v5119_v54, %s4923_s29 }
  0x2c   :  { %164 = vmatmul.mubr.f32.gmra.mrb[4].mxu0 %v5114_v53 }
  0x2d   :  { %168 = vmatprep.mubr.f32.mxu0 %v5119_v54 }
  0x2e   :  { %954 = vrot.lane.b32.xlu1 %v5150_v59, %s4923_s29 }
  0x2f   :  { %952 = vrot.lane.b32.xlu0 %v5138_v57, %s4923_s29 }
  0x30   :  { %169 = vmatmul.mubr.f32.gmra.mrb[6].mxu0 %v5126_v55 }
  0x31   :  { %173 = vmatprep.mubr.f32.mxu0 %v5131_v56 }
  0x32   :  { %970 = vrot.lane.b32.xlu1 %v5143_v58, %s4923_s29 }
  0x33   :  { %968 = vrot.lane.b32.xlu0 %v5131_v56, %s4923_s29 }
  0x34   :  { %174 = vmatmul.mubr.f32.gmra.mrb[8].mxu0 %v5138_v57 }
  0x35   :  { %178 = vmatprep.mubr.f32.mxu0 %v5143_v58 }
  0x36   :  { %956 = vrot.lane.b32.xlu1 %v5162_v61, %s4923_s29 }
  0x37   :  { %234 = vperm.xlu0 %4633, %v55_v8  }
  0x38   :  { %179 = vmatmul.mubr.f32.gmra.mrb[10].mxu0 %v5150_v59 }
  0x39   :  { %183 = vmatprep.mubr.f32.mxu0 %v5155_v60 }
  0x3a   :  { %972 = vrot.lane.b32.xlu1 %v5155_v60, %s4923_s29 }
  0x3b   :  { %958 = vrot.lane.b32.xlu0 %v5174_v63, %s4923_s29 }
  0x3c   :  { %184 = vmatmul.mubr.f32.gmra.mrb[12].mxu0 %v5162_v61 }
  0x3d   :  { %188 = vmatprep.mubr.f32.mxu0 %v5167_v62 }
  0x3e   :  { %239 = vperm.xlu1 %4634, %v56_v9  }
  0x3f   :  { %974 = vrot.lane.b32.xlu0 %v5167_v62, %s4923_s29 }
  0x40   :  { %189 = vmatmul.mubr.f32.gmra.mrb[14].mxu0 %v5174_v63 }
  0x41   :  { %4224 = vmatprep.mubr.msk.f32.mxu0 %vm242_vm0, %v194_v0  ;;  %v998_v0 = vshrl.u32 %v976_v45, 7 }
  0x42   :  { %1346 = vrot.lane.b32.xlu1 %v5102_v51, %s4924_s1 }
  0x43   :  { %1344 = vrot.lane.b32.xlu0 %v5090_v49, %s4924_s1  ;;  %v5334_v5 = vsub.s32 0, %v998_v0  ;;  %v5336_v6 = vsub.s32 1, %v998_v0 }
  0x46   :  { %1362 = vrot.lane.b32.xlu1 %v5095_v50, %s4924_s1 }
  0x47   :  { %1360 = vrot.lane.b32.xlu0 %v5042_v25, %s4924_s1 }
  0x4a   :  { %1350 = vrot.lane.b32.xlu1 %v5126_v55, %s4924_s1 }
  0x4b   :  { %1348 = vrot.lane.b32.xlu0 %v5114_v53, %s4924_s1 }
  0x4e   :  { %1366 = vrot.lane.b32.xlu1 %v5119_v54, %s4924_s1 }
  0x4f   :  { %1364 = vrot.lane.b32.xlu0 %v5107_v52, %s4924_s1 }
  0x52   :  { %1354 = vrot.lane.b32.xlu1 %v5150_v59, %s4924_s1 }
  0x53   :  { %1352 = vrot.lane.b32.xlu0 %v5138_v57, %s4924_s1 }
  0x56   :  { %1370 = vrot.lane.b32.xlu1 %v5143_v58, %s4924_s1 }
  0x57   :  { %1368 = vrot.lane.b32.xlu0 %v5131_v56, %s4924_s1 }
  0x5a   :  { %1358 = vrot.lane.b32.xlu1 %v5174_v63, %s4924_s1 }
  0x5b   :  { %1356 = vrot.lane.b32.xlu0 %v5162_v61, %s4924_s1 }
  0x5e   :  { %1374 = vrot.lane.b32.xlu1 %v5167_v62, %s4924_s1 }
  0x5f   :  { %1372 = vrot.lane.b32.xlu0 %v5155_v60, %s4924_s1 }
  0x62   :  { %1562 = vrot.lane.b32.xlu1 %v5102_v51, %s4925_s17 }
  0x63   :  { %1560 = vrot.lane.b32.xlu0 %v5090_v49, %s4925_s17 }
  0x66   :  { %1578 = vrot.lane.b32.xlu1 %v5095_v50, %s4925_s17 }
  0x67   :  { %1576 = vrot.lane.b32.xlu0 %v5042_v25, %s4925_s17 }
  0x6a   :  { %1566 = vrot.lane.b32.xlu1 %v5126_v55, %s4925_s17 }
  0x6b   :  { %1564 = vrot.lane.b32.xlu0 %v5114_v53, %s4925_s17 }
  0x6e   :  { %1582 = vrot.lane.b32.xlu1 %v5119_v54, %s4925_s17 }
  0x6f   :  { %1580 = vrot.lane.b32.xlu0 %v5107_v52, %s4925_s17 }
  0x72   :  { %1570 = vrot.lane.b32.xlu1 %v5150_v59, %s4925_s17 }
  0x73   :  { %1568 = vrot.lane.b32.xlu0 %v5138_v57, %s4925_s17 }
  0x76   :  { %1586 = vrot.lane.b32.xlu1 %v5143_v58, %s4925_s17 }
  0x77   :  { %1584 = vrot.lane.b32.xlu0 %v5131_v56, %s4925_s17 }
  0x7a   :  { %1574 = vrot.lane.b32.xlu1 %v5174_v63, %s4925_s17 }
  0x7b   :  { %1572 = vrot.lane.b32.xlu0 %v5162_v61, %s4925_s17 }
  0x7e   :  { %1590 = vrot.lane.b32.xlu1 %v5167_v62, %s4925_s17 }
  0x7f   :  { %1588 = vrot.lane.b32.xlu0 %v5155_v60, %s4925_s17 }
  0x82   :  { %1945 = vrot.lane.b32.xlu1 %v5102_v51, %s4926_s18 }
  0x83   :  { %1943 = vrot.lane.b32.xlu0 %v5090_v49, %s4926_s18 }
  0x86   :  { %1961 = vrot.lane.b32.xlu1 %v5095_v50, %s4926_s18 }
  0x87   :  { %1959 = vrot.lane.b32.xlu0 %v5042_v25, %s4926_s18 }
  0x8a   :  { %1949 = vrot.lane.b32.xlu1 %v5126_v55, %s4926_s18 }
  0x8b   :  { %1947 = vrot.lane.b32.xlu0 %v5114_v53, %s4926_s18 }
  0x8e   :  { %1965 = vrot.lane.b32.xlu1 %v5119_v54, %s4926_s18 }
  0x8f   :  { %1963 = vrot.lane.b32.xlu0 %v5107_v52, %s4926_s18 }
  0x91   :  { %v5315_v47 = vpop.permute.xlu1 %214 }
  0x92   :  { %v5317_v48 = vpop.permute.xlu0 %204  ;;  %1953 = vrot.lane.b32.xlu1 %v5150_v59, %s4926_s18 }
  0x93   :  { %1951 = vrot.lane.b32.xlu0 %v5138_v57, %s4926_s18 }
  0x95   :  { %v5324_v2 = vpop.permute.xlu1 %219 }
  0x96   :  { %v5326_v3 = vpop.permute.xlu0 %209  ;;  %1969 = vrot.lane.b32.xlu1 %v5143_v58, %s4926_s18 }
  0x97   :  { %1967 = vrot.lane.b32.xlu0 %v5131_v56, %s4926_s18 }
  0x99   :  { %v947_v8 = vpop.permute.xlu1 %946 }
  0x9a   :  { %v945_v9 = vpop.permute.xlu0 %944  ;;  %1957 = vrot.lane.b32.xlu1 %v5174_v63, %s4926_s18 }
  0x9b   :  { %1955 = vrot.lane.b32.xlu0 %v5162_v61, %s4926_s18 }
  0x9e   :  { %1973 = vrot.lane.b32.xlu1 %v5167_v62, %s4926_s18 }
  0x9f   :  { %1971 = vrot.lane.b32.xlu0 %v5155_v60, %s4926_s18 }
  0xa2   :  { %2161 = vrot.lane.b32.xlu1 %v5102_v51, %s4927_s13 }
  0xa3   :  { %2159 = vrot.lane.b32.xlu0 %v5090_v49, %s4927_s13 }
  0xa6   :  { %2177 = vrot.lane.b32.xlu1 %v5095_v50, %s4927_s13 }
  0xa7   :  { %2175 = vrot.lane.b32.xlu0 %v5042_v25, %s4927_s13 }
  0xaa   :  { %2165 = vrot.lane.b32.xlu1 %v5126_v55, %s4927_s13 }
  0xab   :  { %2163 = vrot.lane.b32.xlu0 %v5114_v53, %s4927_s13 }
  0xae   :  { %2181 = vrot.lane.b32.xlu1 %v5119_v54, %s4927_s13 }
  0xaf   :  { %2179 = vrot.lane.b32.xlu0 %v5107_v52, %s4927_s13 }
  0xb2   :  { %2169 = vrot.lane.b32.xlu1 %v5150_v59, %s4927_s13 }
  0xb3   :  { %2167 = vrot.lane.b32.xlu0 %v5138_v57, %s4927_s13 }
  0xb6   :  { %2185 = vrot.lane.b32.xlu1 %v5143_v58, %s4927_s13 }
  0xb7   :  { %2183 = vrot.lane.b32.xlu0 %v5131_v56, %s4927_s13 }
  0xba   :  { %2173 = vrot.lane.b32.xlu1 %v5174_v63, %s4927_s13 }
  0xbb   :  { %2171 = vrot.lane.b32.xlu0 %v5162_v61, %s4927_s13 }
  0xbe   :  { %2189 = vrot.lane.b32.xlu1 %v5167_v62, %s4927_s13 }
  0xbf   :  { %2187 = vrot.lane.b32.xlu0 %v5155_v60, %s4927_s13 }
  0xc2   :  { %2377 = vrot.lane.b32.xlu1 %v5102_v51, %s4928_s14 }
  0xc3   :  { %2375 = vrot.lane.b32.xlu0 %v5090_v49, %s4928_s14 }
  0xc6   :  { %2393 = vrot.lane.b32.xlu1 %v5095_v50, %s4928_s14 }
  0xc7   :  { %2391 = vrot.lane.b32.xlu0 %v5042_v25, %s4928_s14 }
  0xca   :  { %2381 = vrot.lane.b32.xlu1 %v5126_v55, %s4928_s14 }
  0xcb   :  { %2379 = vrot.lane.b32.xlu0 %v5114_v53, %s4928_s14 }
  0xce   :  { %2397 = vrot.lane.b32.xlu1 %v5119_v54, %s4928_s14 }
  0xcf   :  { %2395 = vrot.lane.b32.xlu0 %v5107_v52, %s4928_s14 }
  0xd2   :  { %2385 = vrot.lane.b32.xlu1 %v5150_v59, %s4928_s14 }
  0xd3   :  { %2383 = vrot.lane.b32.xlu0 %v5138_v57, %s4928_s14 }
  0xd6   :  { %2401 = vrot.lane.b32.xlu1 %v5143_v58, %s4928_s14 }
  0xd7   :  { %2399 = vrot.lane.b32.xlu0 %v5131_v56, %s4928_s14 }
  0xda   :  { %2389 = vrot.lane.b32.xlu1 %v5174_v63, %s4928_s14 }
  0xdb   :  { %2387 = vrot.lane.b32.xlu0 %v5162_v61, %s4928_s14 }
  0xde   :  { %2405 = vrot.lane.b32.xlu1 %v5167_v62, %s4928_s14 }
  0xdf   :  { %2403 = vrot.lane.b32.xlu0 %v5155_v60, %s4928_s14  ;;  %s4929_s14 = smov 16  }
  0xf7   :  { %v4104_v10 = vpop.f32.mrb[0].mxu0 }
  0xf8   :  { %v4105_v11 = vpop.f32.mrb[1].mxu0 }
  0xf9   :  { %v4106_v12 = vadd.f32 %v4105_v11, %v4104_v10  ;;  %v5347_v10 = vrot.slane %v995_v7, %v5334_v5  ;;  %v5350_v11 = vrot.slane %v995_v7, %v5336_v6 }
  0xfb   :  { %v4107_v13 = vpop.f32.mrb[2].mxu0 }
  0xfc   :  { %v4108_v14 = vpop.f32.mrb[3].mxu0 }
  0xfd   :  { %v4109_v15 = vadd.f32 %v4108_v14, %v4107_v13  ;;  %v961_v13 = vpop.permute.xlu0 %960  ;;  %1039 = vrot.lane.b32.xlu0 %v5090_v49, %s4929_s14 }
  0xff   :  { %v4380_v16 = vpack.c.bf16 %v4109_v15, %v4106_v12  ;;  %v4110_v17 = vpop.f32.mrb[4].mxu0  ;;  %v963_v12 = vpop.permute.xlu1 %962  ;;  %v987_v15 = vsel %vm978_vm1, %v961_v13, %v945_v9  ;;  %1041 = vrot.lane.b32.xlu1 %v5102_v51, %s4929_s14 }
 0x100   :  { %v4111_v18 = vpop.f32.mrb[5].mxu0  ;;  %v988_v14 = vsel %vm978_vm1, %v963_v12, %v947_v8 }
 0x101   :  { %v4112_v19 = vadd.f32 %v4111_v18, %v4110_v17  ;;  %4381 = vmatprep.subr.bf16.mxu0 %v4380_v16  ;;  %v980_v17 = vsel %vm978_vm1, %v947_v8, %v963_v12 }
 0x102   :  { %4383 = vmatpush3.bf16.msra.mxu0 %v4380_v16  ;;  %v979_v16 = vsel %vm978_vm1, %v945_v9, %v961_v13 }
 0x103   :  { %v4113_v20 = vpop.f32.mrb[6].mxu0  ;;  %v1008_v18 = vmul.f32 %v5350_v11, %v979_v16 }
 0x104   :  { %v4114_v21 = vpop.f32.mrb[7].mxu0 }
 0x105   :  { %v4115_v22 = vadd.f32 %v4114_v21, %v4113_v20  ;;  %v1009_v20 = vmul.f32 %v5347_v10, %v988_v14  ;;  %v1010_v21 = vmul.f32 %v5350_v11, %v980_v17 }
 0x107   :  { %v4384_v23 = vpack.c.bf16 %v4115_v22, %v4112_v19  ;;  %v4116_v24 = vpop.f32.mrb[8].mxu0  ;;  %v1007_v19 = vmul.f32 %v5347_v10, %v987_v15  ;;  %v949_v22 = vpop.permute.xlu1 %948  ;;  %1057 = vrot.lane.b32.xlu1 %v5095_v50, %s4929_s14  ;;  %v4655_v50 = vld [vmem:[%s7387_s5 + $0x50] sm:$0xff]  }
 0x108   :  { %v4117_v26 = vpop.f32.mrb[9].mxu0 }
 0x109   :  { %v4118_v27 = vadd.f32 %v4117_v26, %v4116_v24  ;;  %4385 = vmatprep.subr.bf16.mxu0 %v4384_v23  ;;  %v1023_v24 = vpack.c.bf16 %v1009_v20, %v1007_v19  ;;  %v1024_v26 = vpack.c.bf16 %v1010_v21, %v1008_v18 }
 0x10a   :  { %4387 = vmatpush3.bf16.msra.mxu0 %v4384_v23  ;;  %v5368_v23 = vpop.permute.xlu0 %224 }
 0x10b   :  { %v4119_v28 = vpop.f32.mrb[10].mxu0  ;;  %1271 = vmatprep.subr.bf16.mxu1 %v1024_v26 }
 0x10c   :  { %v4120_v29 = vpop.f32.mrb[11].mxu0  ;;  %1272 = vmatpush1.bf16.msra.mxu1 %v1023_v24 }
 0x10d   :  { %v4121_v30 = vadd.f32 %v4120_v29, %v4119_v28 }
 0x10e   :  { %v951_v28 = vpop.permute.xlu0 %950 }
 0x10f   :  { %v4388_v31 = vpack.c.bf16 %v4121_v30, %v4118_v27  ;;  %v4122_v32 = vpop.f32.mrb[12].mxu0  ;;  %v965_v27 = vpop.permute.xlu1 %964  ;;  %2593 = vrot.lane.b32.xlu1 %v5102_v51, %s4931_s27 }
 0x110   :  { %v4123_v33 = vpop.f32.mrb[13].mxu0  ;;  %v981_v29 = vsel %vm978_vm1, %v949_v22, %v965_v27  ;;  %v989_v30 = vsel %vm978_vm1, %v965_v27, %v949_v22 }
 0x111   :  { %v4124_v34 = vadd.f32 %v4123_v33, %v4122_v32  ;;  %4389 = vmatprep.subr.bf16.mxu0 %v4388_v31  ;;  %v1012_v32 = vmul.f32 %v5350_v11, %v981_v29 }
 0x112   :  { %4391 = vmatpush3.bf16.msra.mxu0 %v4388_v31  ;;  %v1011_v31 = vmul.f32 %v5347_v10, %v989_v30 }
 0x113   :  { %v4125_v35 = vpop.f32.mrb[14].mxu0  ;;  %v5384_v33 = vpop.permute.xlu1 %229 }
 0x114   :  { %v4126_v36 = vpop.f32.mrb[15].mxu0 }
 0x115   :  { %v4127_v37 = vadd.f32 %v4126_v36, %v4125_v35 }
 0x117   :  { %v4392_v38 = vpack.c.bf16 %v4127_v37, %v4124_v34  ;;  %v967_v34 = vpop.permute.xlu0 %966 }
 0x118   :  { %v982_v35 = vsel %vm978_vm1, %v951_v28, %v967_v34  ;;  %v990_v36 = vsel %vm978_vm1, %v967_v34, %v951_v28 }
 0x119   :  { %4393 = vmatprep.subr.bf16.mxu0 %v4392_v38  ;;  %v1013_v37 = vmul.f32 %v5347_v10, %v990_v36 }
 0x11a   :  { %4395 = vmatpush3.bf16.msra.mxu0 %v4392_v38  ;;  %v1014_v38 = vmul.f32 %v5350_v11, %v982_v35 }
 0x11d   :  { %4225 = vmatmul.mubr.msk.f32.vlgmr.msra.gmra.mrb[16].mxu0 %vm242_vm0, %v195_v39  ;;  %v955_v39 = vpop.permute.xlu1 %954 }
 0x11e   :  { %4227 = vmatprep.mubr.msk.f32.mxu0 %vm242_vm0, %v196_v40  ;;  %v953_v40 = vpop.permute.xlu0 %952 }
 0x121   :  { %4228 = vmatmul.mubr.msk.f32.gmra.mrb[18].mxu0 %vm242_vm0, %v197_v41  ;;  %v1026_v41 = vpack.c.bf16 %v1014_v38, %v1012_v32  ;;  %v3897_v38 = vld [vmem:[%s7388_s6 + $0x2] ss:$8 sm:$0x3] }
 0x122   :  { %4230 = vmatprep.mubr.msk.f32.mxu0 %vm242_vm0, %v198_v42  ;;  %v1025_v42 = vpack.c.bf16 %v1013_v37, %v1011_v31  ;;  %v4649_v37 = vld [vmem:[%s7387_s5] sm:$0xff]   ;;  %v5472_v25 = vrot.slane %v3897_v38, %v5336_v6 }
 0x123   :  { %1273 = vmatprep.subr.bf16.mxu1 %v1026_v41  ;;  %v4650_v41 = vld [vmem:[%s7387_s5 + $0x8] sm:$0xff]  }
 0x124   :  { %1274 = vmatpush1.bf16.msra.mxu1 %v1025_v42  ;;  %v5467_v42 = vrot.slane %v3897_v38, %v5334_v5 }
 0x125   :  { %4231 = vmatmul.mubr.msk.f32.gmra.mrb[20].mxu0 %vm242_vm0, %v199_v43  ;;  %v971_v43 = vpop.permute.xlu1 %970 }
 0x126   :  { %4233 = vmatprep.mubr.msk.f32.mxu0 %vm242_vm0, %v200_v44  ;;  %v969_v44 = vpop.permute.xlu0 %968  ;;  %v984_v45 = vsel %vm978_vm1, %v955_v39, %v971_v43 }
 0x127   :  { %v983_v0 = vsel %vm978_vm1, %v953_v40, %v969_v44  ;;  %v991_v7 = vsel %vm978_vm1, %v969_v44, %v953_v40  ;;  %v1018_v9 = vmul.f32 %v5350_v11, %v984_v45 }
 0x128   :  { %v1015_v12 = vmul.f32 %v5347_v10, %v991_v7  ;;  %v1016_v13 = vmul.f32 %v5350_v11, %v983_v0 }
 0x129   :  { %4234 = vmatmul.mubr.msk.f32.gmra.mrb[22].mxu0 %vm242_vm0, %v201_v46  ;;  %v992_v46 = vsel %vm978_vm1, %v971_v43, %v955_v39  ;;  %v957_v14 = vpop.permute.xlu1 %956 }
 0x12a   :  { %v1017_v8 = vmul.f32 %v5347_v10, %v992_v46  ;;  %v5416_v15 = vpop.permute.xlu0 %234  ;;  %v1028_v16 = vpack.c.bf16 %v1018_v9, %v1016_v13 }
 0x12c   :  { %v1027_v17 = vpack.c.bf16 %v1017_v8, %v1015_v12  ;;  %1275 = vmatprep.subr.bf16.mxu1 %v1028_v16 }
 0x12d   :  { %v973_v18 = vpop.permute.xlu1 %972 }
 0x12e   :  { %1276 = vmatpush1.bf16.msra.mxu1 %v1027_v17  ;;  %v959_v19 = vpop.permute.xlu0 %958  ;;  %v985_v20 = vsel %vm978_vm1, %v957_v14, %v973_v18  ;;  %v993_v21 = vsel %vm978_vm1, %v973_v18, %v957_v14 }
 0x12f   :  { %v1019_v22 = vmul.f32 %v5347_v10, %v993_v21  ;;  %v1020_v24 = vmul.f32 %v5350_v11, %v985_v20 }
 0x131   :  { %v5432_v26 = vpop.permute.xlu1 %239 }
 0x132   :  { %v975_v27 = vpop.permute.xlu0 %974 }
 0x133   :  { %v986_v28 = vsel %vm978_vm1, %v959_v19, %v975_v27  ;;  %v994_v29 = vsel %vm978_vm1, %v975_v27, %v959_v19  ;;  %v4651_v27 = vld [vmem:[%s7387_s5 + $0x10] sm:$0xff]  }
 0x134   :  { %v1021_v30 = vmul.f32 %v5347_v10, %v994_v29  ;;  %v1022_v31 = vmul.f32 %v5350_v11, %v986_v28 }
 0x135   :  { %v1347_v32 = vpop.permute.xlu1 %1346 }
 0x136   :  { %v1345_v34 = vpop.permute.xlu0 %1344  ;;  %v1030_v35 = vpack.c.bf16 %v1022_v31, %v1020_v24  ;;  %v1029_v36 = vpack.c.bf16 %v1021_v30, %v1019_v22 }
 0x138   :  { %1277 = vmatprep.subr.bf16.mxu1 %v1030_v35 }
 0x139   :  { %1278 = vmatpush1.bf16.msra.mxu1 %v1029_v36  ;;  %v1363_v10 = vpop.permute.xlu1 %1362 }
 0x13a   :  { %v1361_v11 = vpop.permute.xlu0 %1360  ;;  %v1386_v43 = vsel %vm1376_vm2, %v1363_v10, %v1347_v32  ;;  %v1378_v46 = vsel %vm1376_vm2, %v1347_v32, %v1363_v10 }
 0x13b   :  { %v1385_v44 = vsel %vm1376_vm2, %v1361_v11, %v1345_v34  ;;  %v1377_v0 = vsel %vm1376_vm2, %v1345_v34, %v1361_v11  ;;  %v1408_v53 = vmul.f32 %v5467_v42, %v1386_v43  ;;  %v1409_v8 = vmul.f32 %v5472_v25, %v1378_v46 }
 0x13c   :  { %3893 = vmatmul.mubr.msk.bf16.vlgmr.msra.gmra.mrb[0].mxu1 %vm242_vm0, %v4649_v37  ;;  %v1406_v7 = vmul.f32 %v5467_v42, %v1385_v44  ;;  %v1407_v9 = vmul.f32 %v5472_v25, %v1377_v0  ;;  %v4652_v44 = vld [vmem:[%s7387_s5 + $0x18] sm:$0xff]  }
 0x13d   :  { %1313 = vmatprep.mubr.bf16.mxu1 %v4922_v1  ;;  %v1351_v39 = vpop.permute.xlu1 %1350 }
 0x13e   :  { %v1349_v40 = vpop.permute.xlu0 %1348  ;;  %v1422_v52 = vpack.c.bf16 %v1408_v53, %v1406_v7  ;;  %v1423_v28 = vpack.c.bf16 %v1409_v8, %v1407_v9 }
 0x140   :  { %1471 = vmatprep.subr.bf16.mxu1 %v1423_v28 }
 0x141   :  { %v1367_v55 = vpop.permute.xlu1 %1366  ;;  %1472 = vmatpush1.bf16.msra.mxu1 %v1422_v52  ;;  %v420_v52 = vld [vmem:[%s7389_s2] sm:$0xff] }
 0x142   :  { %v1365_v45 = vpop.permute.xlu0 %1364  ;;  %v1388_v12 = vsel %vm1376_vm2, %v1367_v55, %v1351_v39  ;;  %v1380_v16 = vsel %vm1376_vm2, %v1351_v39, %v1367_v55 }
 0x143   :  { %v1387_v54 = vsel %vm1376_vm2, %v1365_v45, %v1349_v40  ;;  %v1379_v17 = vsel %vm1376_vm2, %v1349_v40, %v1365_v45  ;;  %v1412_v18 = vmul.f32 %v5467_v42, %v1388_v12  ;;  %v1413_v20 = vmul.f32 %v5472_v25, %v1380_v16  ;;  %v421_v12 = vld [vmem:[%s7389_s2 + $0x8] sm:$0xff] }
 0x144   :  { %3894 = vmatmul.mubr.msk.bf16.gmra.mrb[4].mxu1 %vm242_vm0, %v4650_v41  ;;  %v1410_v19 = vmul.f32 %v5467_v42, %v1387_v54  ;;  %v1411_v21 = vmul.f32 %v5472_v25, %v1379_v17  ;;  %v423_v54 = vld [vmem:[%s7389_s2 + $0x18] sm:$0xff]  ;;  %v4654_v16 = vld [vmem:[%s7387_s5 + $0x48] sm:$0xff]  }
 0x145   :  { %1323 = vmatprep.mubr.bf16.mxu1 %v4922_v1  ;;  %v1355_v13 = vpop.permute.xlu1 %1354  ;;  %v4396_v17 = vpack.c.bf16 %v423_v54, %v421_v12 }
 0x146   :  { %v1353_v14 = vpop.permute.xlu0 %1352  ;;  %v1424_v59 = vpack.c.bf16 %v1412_v18, %v1410_v19  ;;  %v1425_v30 = vpack.c.bf16 %v1413_v20, %v1411_v21  ;;  %v422_v18 = vld [vmem:[%s7389_s2 + $0x10] sm:$0xff]  ;;  %v3914_v20 = vld [vmem:[%s7388_s6 + $0x3] ss:$8 sm:$0x3] }
 0x147   :  { %v4398_v19 = vpack.c.bf16 %v422_v18, %v420_v52  ;;  %4397 = vmatprep.subr.bf16.mxu0 %v4396_v17  ;;  %v5584_v21 = vrot.slane %v3914_v20, %v5336_v6  ;;  %v4656_v52 = vld [vmem:[%s7387_s5 + $0x58] sm:$0xff]  }
 0x148   :  { %1473 = vmatprep.subr.bf16.mxu1 %v1425_v30 }
 0x149   :  { %v1371_v22 = vpop.permute.xlu1 %1370  ;;  %1474 = vmatpush1.bf16.msra.mxu1 %v1424_v59  ;;  %4399 = vmatpush1.bf16.msra.mxu0 %v4398_v19  ;;  %v5594_v59 = vrot.slane %v3914_v20, %v5334_v5 }
 0x14a   :  { %v1369_v24 = vpop.permute.xlu0 %1368  ;;  %v1382_v31 = vsel %vm1376_vm2, %v1355_v13, %v1371_v22  ;;  %v1390_v58 = vsel %vm1376_vm2, %v1371_v22, %v1355_v13  ;;  %v425_v22 = vld [vmem:[%s7389_s2 + $0x28] sm:$0xff] }
 0x14b   :  { %v1381_v32 = vsel %vm1376_vm2, %v1353_v14, %v1369_v24  ;;  %v1389_v34 = vsel %vm1376_vm2, %v1369_v24, %v1353_v14  ;;  %v1416_v35 = vmul.f32 %v5467_v42, %v1390_v58  ;;  %v1417_v56 = vmul.f32 %v5472_v25, %v1382_v31  ;;  %v427_v24 = vld [vmem:[%s7389_s2 + $0x38] sm:$0xff]  ;;  %v424_v31 = vld [vmem:[%s7389_s2 + $0x20] sm:$0xff] }
 0x14c   :  { %3895 = vmatmul.mubr.msk.bf16.gmra.mrb[8].mxu1 %vm242_vm0, %v4651_v27  ;;  %v1414_v36 = vmul.f32 %v5467_v42, %v1389_v34  ;;  %v1415_v37 = vmul.f32 %v5472_v25, %v1381_v32  ;;  %v4400_v30 = vpack.c.bf16 %v427_v24, %v425_v22  ;;  %v426_v32 = vld [vmem:[%s7389_s2 + $0x30] sm:$0xff]  ;;  %v567_v24 = vld [vmem:[%s7390_s3 + $0x8] sm:$0xff] }
 0x14d   :  { %1333 = vmatprep.mubr.bf16.mxu1 %v4922_v1  ;;  %v1359_v57 = vpop.permute.xlu1 %1358 }
 0x14e   :  { %v1357_v29 = vpop.permute.xlu0 %1356  ;;  %v1426_v63 = vpack.c.bf16 %v1416_v35, %v1414_v36  ;;  %v1427_v46 = vpack.c.bf16 %v1417_v56, %v1415_v37  ;;  %4401 = vmatprep.subr.bf16.mxu0 %v4400_v30 }
 0x150   :  { %1475 = vmatprep.subr.bf16.mxu1 %v1427_v46  ;;  %v7393_v46 = vmov 0.0  }
 0x151   :  { %v1375_v10 = vpop.permute.xlu1 %1374  ;;  %1476 = vmatpush1.bf16.msra.mxu1 %v1426_v63  ;;  %517 = vmatprep.mubr.f32.mxu0 %v7393_v46 }
 0x152   :  { %v1373_v11 = vpop.permute.xlu0 %1372  ;;  %v1384_v38 = vsel %vm1376_vm2, %v1359_v57, %v1375_v10  ;;  %v1392_v40 = vsel %vm1376_vm2, %v1375_v10, %v1359_v57  ;;  %v4402_v10 = vpack.c.bf16 %v426_v32, %v424_v31 }
 0x153   :  { %v1383_v39 = vsel %vm1376_vm2, %v1357_v29, %v1373_v11  ;;  %v1421_v41 = vmul.f32 %v5472_v25, %v1384_v38  ;;  %v1391_v43 = vsel %vm1376_vm2, %v1373_v11, %v1357_v29  ;;  %v1420_v55 = vmul.f32 %v5467_v42, %v1392_v40  ;;  %v5619_v11 = vld [vmem:[%s7384_s0 + $0x8] sm:$0xff] }
 0x154   :  { %v1419_v61 = vmul.f32 %v5472_v25, %v1383_v39  ;;  %v1418_v45 = vmul.f32 %v5467_v42, %v1391_v43  ;;  %3896 = vmatmul.mubr.msk.bf16.gmra.mrb[12].mxu1 %vm242_vm0, %v4652_v44  ;;  %v4653_v42 = vld [vmem:[%s7387_s5 + $0x40] sm:$0xff]   ;;  %1055 = vrot.lane.b32.xlu0 %v5619_v11, %s4929_s14 }
 0x155   :  { %1503 = vmatprep.mubr.bf16.mxu1 %v4922_v1  ;;  %v1563_v25 = vpop.permute.xlu1 %1562  ;;  %4403 = vmatpush1.bf16.msra.mxu0 %v4402_v10  ;;  %v4866_v10 = vld [vmem:[%s7384_s0 + $0x28] sm:$0xff] }
 0x156   :  { %v1428_v62 = vpack.c.bf16 %v1420_v55, %v1418_v45  ;;  %v1561_v0 = vpop.permute.xlu0 %1560  ;;  %v1429_v53 = vpack.c.bf16 %v1421_v41, %v1419_v61 }
 0x158   :  { %1477 = vmatprep.subr.bf16.mxu1 %v1429_v53  ;;  %2591 = vrot.lane.b32.xlu0 %v5090_v49, %s4931_s27 }
 0x159   :  { %1478 = vmatpush1.bf16.msra.mxu1 %v1428_v62  ;;  %v1579_v7 = vpop.permute.xlu1 %1578 }
 0x15a   :  { %v1577_v8 = vpop.permute.xlu0 %1576  ;;  %v1594_v57 = vsel %vm1592_vm3, %v1563_v25, %v1579_v7  ;;  %v1602_v58 = vsel %vm1592_vm3, %v1579_v7, %v1563_v25 }
 0x15b   :  { %v1593_v29 = vsel %vm1592_vm3, %v1561_v0, %v1577_v8  ;;  %v1625_v34 = vmul.f32 %v5584_v21, %v1594_v57  ;;  %v1601_v35 = vsel %vm1592_vm3, %v1577_v8, %v1561_v0  ;;  %v1624_v36 = vmul.f32 %v5594_v59, %v1602_v58 }
 0x15c   :  { %3910 = vmatmul.mubr.msk.bf16.vlgmr.msra.gmra.mrb[0].mxu1 %vm242_vm0, %v4653_v42  ;;  %v1623_v56 = vmul.f32 %v5584_v21, %v1593_v29  ;;  %v1622_v37 = vmul.f32 %v5594_v59, %v1601_v35  ;;  %2607 = vrot.lane.b32.xlu0 %v5619_v11, %s4931_s27  ;;  %v4864_v35 = vld [vmem:[%s7384_s0 + $0x20] sm:$0xff] }
 0x15d   :  { %v1567_v9 = vpop.permute.xlu1 %1566  ;;  %1513 = vmatprep.mubr.bf16.mxu1 %v4922_v1 }
 0x15e   :  { %v1565_v60 = vpop.permute.xlu0 %1564  ;;  %v1639_v39 = vpack.c.bf16 %v1625_v34, %v1623_v56  ;;  %v1638_v40 = vpack.c.bf16 %v1624_v36, %v1622_v37  ;;  %v5690_v34 = vld [vmem:[%s7384_s0 + $0x30] sm:$0xff]  ;;  %v4865_v37 = vld [vmem:[%s7384_s0 + $0x38] sm:$0xff] }
 0x160   :  { %1687 = vmatprep.subr.bf16.mxu1 %v1639_v39  ;;  %1043 = vrot.lane.b32.xlu0 %v4864_v35, %s4929_s14 }
 0x161   :  { %v1583_v13 = vpop.permute.xlu1 %1582  ;;  %1688 = vmatpush1.bf16.msra.mxu1 %v1638_v40 }
 0x162   :  { %v1581_v14 = vpop.permute.xlu0 %1580  ;;  %v1596_v41 = vsel %vm1592_vm3, %v1567_v9, %v1583_v13  ;;  %v1604_v61 = vsel %vm1592_vm3, %v1583_v13, %v1567_v9 }
 0x163   :  { %v1595_v43 = vsel %vm1592_vm3, %v1565_v60, %v1581_v14  ;;  %v1629_v44 = vmul.f32 %v5584_v21, %v1596_v41  ;;  %v1603_v55 = vsel %vm1592_vm3, %v1581_v14, %v1565_v60  ;;  %v1628_v62 = vmul.f32 %v5594_v59, %v1604_v61  ;;  %v5659_v14 = vld [vmem:[%s7384_s0 + $0x18] sm:$0xff]  ;;  %v4658_v61 = vld [vmem:[%s7387_s5 + $0x68] sm:$0xff]  }
 0x164   :  { %3911 = vmatmul.mubr.msk.bf16.gmra.mrb[4].mxu1 %vm242_vm0, %v4654_v16  ;;  %v1627_v45 = vmul.f32 %v5584_v21, %v1595_v43  ;;  %v1626_v25 = vmul.f32 %v5594_v59, %v1603_v55  ;;  %2609 = vrot.lane.b32.xlu1 %v5659_v14, %s4931_s27  ;;  %v4868_v55 = vld [vmem:[%s7384_s0 + $0x40] sm:$0xff] }
 0x165   :  { %v1571_v27 = vpop.permute.xlu1 %1570  ;;  %1523 = vmatprep.mubr.bf16.mxu1 %v4922_v1  ;;  %1059 = vrot.lane.b32.xlu0 %v4866_v10, %s4929_s14 }
 0x166   :  { %v1569_v28 = vpop.permute.xlu0 %1568  ;;  %v1641_v7 = vpack.c.bf16 %v1629_v44, %v1627_v45  ;;  %v1640_v8 = vpack.c.bf16 %v1628_v62, %v1626_v25  ;;  %v4867_v44 = vld [vmem:[%s7384_s0 + $0x50] sm:$0xff]  ;;  %v3931_v45 = vld [vmem:[%s7388_s6 + $0x4] ss:$8 sm:$0x3] }
 0x168   :  { %1689 = vmatprep.subr.bf16.mxu1 %v1641_v7  ;;  %1045 = vrot.lane.b32.xlu1 %v5690_v34, %s4929_s14  ;;  %v4870_v7 = vld [vmem:[%s7384_s0 + $0x48] sm:$0xff] }
 0x169   :  { %v1587_v63 = vpop.permute.xlu1 %1586  ;;  %1690 = vmatpush1.bf16.msra.mxu1 %v1640_v8  ;;  %2595 = vrot.lane.b32.xlu0 %v4864_v35, %s4931_s27  ;;  %v1782_v8 = vrot.slane %v3931_v45, %v5334_v5 }
 0x16a   :  { %v1585_v38 = vpop.permute.xlu0 %1584  ;;  %v1598_v42 = vsel %vm1592_vm3, %v1571_v27, %v1587_v63  ;;  %v1606_v9 = vsel %vm1592_vm3, %v1587_v63, %v1571_v27  ;;  %v569_v27 = vld [vmem:[%s7390_s3 + $0x18] sm:$0xff] }
 0x16b   :  { %v1597_v60 = vsel %vm1592_vm3, %v1569_v28, %v1585_v38  ;;  %v1632_v51 = vmul.f32 %v5594_v59, %v1606_v9  ;;  %v1633_v49 = vmul.f32 %v5584_v21, %v1598_v42  ;;  %v1605_v12 = vsel %vm1592_vm3, %v1585_v38, %v1569_v28 }
 0x16c   :  { %3912 = vmatmul.mubr.msk.bf16.gmra.mrb[8].mxu1 %vm242_vm0, %v4655_v50  ;;  %v1631_v54 = vmul.f32 %v5584_v21, %v1597_v60  ;;  %v1630_v13 = vmul.f32 %v5594_v59, %v1605_v12  ;;  %v4404_v31 = vpack.c.bf16 %v569_v27, %v567_v24  ;;  %1061 = vrot.lane.b32.xlu1 %v4865_v37, %s4929_s14  ;;  %v4657_v50 = vld [vmem:[%s7387_s5 + $0x60] sm:$0xff]  }
 0x16d   :  { %v1575_v0 = vpop.permute.xlu1 %1574  ;;  %1533 = vmatprep.mubr.bf16.mxu1 %v4922_v1  ;;  %2611 = vrot.lane.b32.xlu0 %v4866_v10, %s4931_s27 }
 0x16e   :  { %v1573_v53 = vpop.permute.xlu0 %1572  ;;  %v1643_v18 = vpack.c.bf16 %v1633_v49, %v1631_v54  ;;  %v1642_v19 = vpack.c.bf16 %v1632_v51, %v1630_v13  ;;  %4405 = vmatprep.subr.bf16.mxu0 %v4404_v31  ;;  %v4659_v49 = vld [vmem:[%s7387_s5 + $0x70] sm:$0xff]   ;;  %v4871_v54 = vld [vmem:[%s7384_s0] sm:$0xff]  ;;  %v4660_v31 = vld [vmem:[%s7387_s5 + $0x78] sm:$0xff]  }
 0x16f   :  { %v1789_v13 = vmul.f32 %v4871_v54, %v1782_v8 }
 0x170   :  { %1691 = vmatprep.subr.bf16.mxu1 %v1643_v18  ;;  %2597 = vrot.lane.b32.xlu1 %v5690_v34, %s4931_s27  ;;  %v1793_v18 = vmul.f32 %v4864_v35, %v1782_v8 }
 0x171   :  { %v1591_v16 = vpop.permute.xlu1 %1590  ;;  %1692 = vmatpush1.bf16.msra.mxu1 %v1642_v19  ;;  %1047 = vrot.lane.b32.xlu0 %v4868_v55, %s4929_s14  ;;  %v1795_v19 = vmul.f32 %v5690_v34, %v1782_v8 }
 0x172   :  { %v1589_v17 = vpop.permute.xlu0 %1588  ;;  %v1600_v20 = vsel %vm1592_vm3, %v1575_v0, %v1591_v16  ;;  %v1608_v28 = vsel %vm1592_vm3, %v1591_v16, %v1575_v0  ;;  %v1786_v0 = vrot.slane %v3931_v45, %v5336_v6 }
 0x173   :  { %v1599_v22 = vsel %vm1592_vm3, %v1573_v53, %v1589_v17  ;;  %v1637_v57 = vmul.f32 %v5584_v21, %v1600_v20  ;;  %v1607_v29 = vsel %vm1592_vm3, %v1589_v17, %v1573_v53  ;;  %v1636_v32 = vmul.f32 %v5594_v59, %v1608_v28  ;;  %v4869_v53 = vld [vmem:[%s7384_s0 + $0x58] sm:$0xff] }
 0x174   :  { %v1635_v30 = vmul.f32 %v5584_v21, %v1599_v22  ;;  %v1634_v58 = vmul.f32 %v5594_v59, %v1607_v29  ;;  %3913 = vmatmul.mubr.msk.bf16.gmra.mrb[12].mxu1 %vm242_vm0, %v4656_v52  ;;  %2613 = vrot.lane.b32.xlu1 %v4865_v37, %s4931_s27  ;;  %v1790_v42 = vmul.f32 %v5619_v11, %v1786_v0  ;;  %v4872_v11 = vld [vmem:[%s7384_s0 + $0x10] sm:$0xff] }
 0x175   :  { %v5699_v21 = vpop.permute.xlu1 %1945  ;;  %1719 = vmatprep.mubr.bf16.mxu1 %v4922_v1  ;;  %1063 = vrot.lane.b32.xlu0 %v4870_v7, %s4929_s14  ;;  %v1792_v9 = vmul.f32 %v5659_v14, %v1786_v0  ;;  %v1791_v16 = vmul.f32 %v4872_v11, %v1782_v8  ;;  %v1794_v14 = vmul.f32 %v4866_v10, %v1786_v0 }
 0x176   :  { %v5701_v56 = vpop.permute.xlu0 %1943  ;;  %v1645_v59 = vpack.c.bf16 %v1637_v57, %v1635_v30  ;;  %v1644_v36 = vpack.c.bf16 %v1636_v32, %v1634_v58  ;;  %v1796_v17 = vmul.f32 %v4865_v37, %v1786_v0  ;;  %v1807_v27 = vpack.c.bf16 %v1795_v19, %v1793_v18  ;;  %v4874_v37 = vld [vmem:[%s7384_s0 + $0x78] sm:$0xff] }
 0x177   :  { %v1806_v12 = vpack.c.bf16 %v1792_v9, %v1790_v42  ;;  %v1805_v52 = vpack.c.bf16 %v1791_v16, %v1789_v13  ;;  %v1798_v28 = vmul.f32 %v4870_v7, %v1786_v0  ;;  %v1800_v57 = vmul.f32 %v4869_v53, %v1786_v0 }
 0x178   :  { %1693 = vmatprep.subr.bf16.mxu1 %v1645_v59  ;;  %1049 = vrot.lane.b32.xlu1 %v4867_v44, %s4929_s14  ;;  %v1808_v24 = vpack.c.bf16 %v1796_v17, %v1794_v14  ;;  %v1797_v32 = vmul.f32 %v4868_v55, %v1782_v8  ;;  %v1799_v58 = vmul.f32 %v4867_v44, %v1782_v8  ;;  %v4873_v59 = vld [vmem:[%s7384_s0 + $0x68] sm:$0xff] }
 0x179   :  { %v5712_v63 = vpop.permute.xlu1 %1961  ;;  %1694 = vmatpush1.bf16.msra.mxu1 %v1644_v36  ;;  %2599 = vrot.lane.b32.xlu0 %v4868_v55, %s4931_s27  ;;  %v1810_v34 = vpack.c.bf16 %v1800_v57, %v1798_v28  ;;  %v1802_v36 = vmul.f32 %v4873_v59, %v1786_v0  ;;  %v1804_v10 = vmul.f32 %v4874_v37, %v1786_v0 }
 0x17a   :  { %v5714_v38 = vpop.permute.xlu0 %1959  ;;  %1854 = vmatprep.subr.bf16.mxu1 %v1806_v12  ;;  %v1809_v35 = vpack.c.bf16 %v1799_v58, %v1797_v32  ;;  %v1977_v16 = vsel %vm1975_vm4, %v5699_v21, %v5712_v63  ;;  %v1985_v17 = vsel %vm1975_vm4, %v5712_v63, %v5699_v21  ;;  %v4662_v21 = vld [vmem:[%s7387_s5 + $0x88] sm:$0xff]  }
 0x17b   :  { %v1976_v14 = vsel %vm1975_vm4, %v5701_v56, %v5714_v38 }
 0x17c   :  { %3927 = vmatmul.mubr.msk.bf16.vlgmr.msra.gmra.mrb[0].mxu1 %vm242_vm0, %v4657_v50  ;;  %1065 = vrot.lane.b32.xlu1 %v4869_v53, %s4929_s14  ;;  %v4875_v50 = vld [vmem:[%s7384_s0 + $0x70] sm:$0xff] }
 0x17d   :  { %v5723_v39 = vpop.permute.xlu1 %1949  ;;  %1729 = vmatprep.mubr.bf16.mxu1 %v4922_v1  ;;  %1855 = vmatpush1.bf16.msra.mxu1 %v1805_v52  ;;  %v1803_v55 = vmul.f32 %v4875_v50, %v1782_v8  ;;  %v1984_v52 = vsel %vm1975_vm4, %v5714_v38, %v5701_v56 }
 0x17e   :  { %v5725_v40 = vpop.permute.xlu0 %1947  ;;  %1856 = vmatprep.subr.bf16.mxu1 %v1808_v24  ;;  %2615 = vrot.lane.b32.xlu0 %v4870_v7, %s4931_s27 }
 0x180   :  { %2601 = vrot.lane.b32.xlu1 %v4867_v44, %s4931_s27 }
 0x181   :  { %v5730_v41 = vpop.permute.xlu1 %1965  ;;  %1857 = vmatpush1.bf16.msra.mxu1 %v1807_v27 }
 0x182   :  { %v5732_v43 = vpop.permute.xlu0 %1963  ;;  %1858 = vmatprep.subr.bf16.mxu1 %v1810_v34  ;;  %v1987_v18 = vsel %vm1975_vm4, %v5730_v41, %v5723_v39  ;;  %v1979_v38 = vsel %vm1975_vm4, %v5723_v39, %v5730_v41 }
 0x183   :  { %v1986_v19 = vsel %vm1975_vm4, %v5732_v43, %v5725_v40  ;;  %v1978_v28 = vsel %vm1975_vm4, %v5725_v40, %v5732_v43 }
 0x184   :  { %3928 = vmatmul.mubr.msk.bf16.gmra.mrb[4].mxu1 %vm242_vm0, %v4658_v61  ;;  %2617 = vrot.lane.b32.xlu1 %v4869_v53, %s4931_s27  ;;  %v4876_v61 = vld [vmem:[%s7384_s0 + $0x60] sm:$0xff]  ;;  %v1812_v53 = vpack.c.bf16 %v1804_v10, %v1802_v36 }
 0x185   :  { %v5749_v62 = vpop.permute.xlu1 %1953  ;;  %1739 = vmatprep.mubr.bf16.mxu1 %v4922_v1  ;;  %1051 = vrot.lane.b32.xlu0 %v4876_v61, %s4929_s14  ;;  %v1801_v44 = vmul.f32 %v4876_v61, %v1782_v8  ;;  %v4661_v8 = vld [vmem:[%s7387_s5 + $0x80] sm:$0xff]  }
 0x186   :  { %v5751_v25 = vpop.permute.xlu0 %1951  ;;  %1859 = vmatpush1.bf16.msra.mxu1 %v1809_v35 }
 0x187   :  { %1860 = vmatprep.subr.bf16.mxu1 %v1812_v53  ;;  %v1811_v7 = vpack.c.bf16 %v1803_v55, %v1801_v44 }
 0x188   :  { %1053 = vrot.lane.b32.xlu1 %v4875_v50, %s4929_s14 }
 0x189   :  { %v5766_v60 = vpop.permute.xlu1 %1969  ;;  %1067 = vrot.lane.b32.xlu0 %v4873_v59, %s4929_s14 }
 0x18a   :  { %v5768_v51 = vpop.permute.xlu0 %1967  ;;  %1861 = vmatpush1.bf16.msra.mxu1 %v1811_v7  ;;  %v1989_v34 = vsel %vm1975_vm4, %v5766_v60, %v5749_v62  ;;  %v1981_v36 = vsel %vm1975_vm4, %v5749_v62, %v5766_v60  ;;  %v3965_v62 = vld [vmem:[%s7388_s6 + $0x6] ss:$8 sm:$0x3] }
 0x18b   :  { %v1988_v35 = vsel %vm1975_vm4, %v5768_v51, %v5751_v25 }
 0x18c   :  { %3929 = vmatmul.mubr.msk.bf16.gmra.mrb[8].mxu1 %vm242_vm0, %v4659_v49  ;;  %1069 = vrot.lane.b32.xlu1 %v4874_v37, %s4929_s14  ;;  %v3948_v49 = vld [vmem:[%s7388_s6 + $0x5] ss:$8 sm:$0x3] }
 0x18d   :  { %v5783_v20 = vpop.permute.xlu1 %1957  ;;  %1749 = vmatprep.mubr.bf16.mxu1 %v4922_v1  ;;  %2603 = vrot.lane.b32.xlu0 %v4876_v61, %s4931_s27  ;;  %v5839_v13 = vrot.slane %v3948_v49, %v5334_v5  ;;  %v2002_v11 = vrot.slane %v3948_v49, %v5336_v6 }
 0x18e   :  { %v5785_v22 = vpop.permute.xlu0 %1955 }
 0x18f   :  { %v2007_v56 = vmul.f32 %v5839_v13, %v1977_v16  ;;  %v2005_v63 = vmul.f32 %v5839_v13, %v1976_v14  ;;  %v2008_v57 = vmul.f32 %v2002_v11, %v1985_v17  ;;  %v2012_v32 = vmul.f32 %v2002_v11, %v1987_v18 }
 0x190   :  { %2605 = vrot.lane.b32.xlu1 %v4875_v50, %s4931_s27  ;;  %v2010_v58 = vmul.f32 %v2002_v11, %v1986_v19  ;;  %v2011_v40 = vmul.f32 %v5839_v13, %v1979_v38  ;;  %v2009_v43 = vmul.f32 %v5839_v13, %v1978_v28  ;;  %v2016_v10 = vmul.f32 %v2002_v11, %v1989_v34 }
 0x191   :  { %v5789_v29 = vpop.permute.xlu1 %1973  ;;  %2619 = vrot.lane.b32.xlu0 %v4873_v59, %s4931_s27  ;;  %v2021_v59 = vpack.c.bf16 %v2007_v56, %v2005_v63  ;;  %v2014_v50 = vmul.f32 %v2002_v11, %v1988_v35  ;;  %v5939_v18 = vrot.slane %v3965_v62, %v5336_v6  ;;  %v4932_v63 = vmov 2  }
 0x192   :  { %v5791_v30 = vpop.permute.xlu0 %1971  ;;  %v2024_v44 = vpack.c.bf16 %v2012_v32, %v2010_v58  ;;  %v1991_v55 = vsel %vm1975_vm4, %v5789_v29, %v5783_v20  ;;  %v2023_v7 = vpack.c.bf16 %v2011_v40, %v2009_v43  ;;  %v1983_v16 = vsel %vm1975_vm4, %v5783_v20, %v5789_v29  ;;  %4635 = vset.pattern.permute.xlu1 %v4932_v63 }
 0x193   :  { %v1990_v53 = vsel %vm1975_vm4, %v5791_v30, %v5785_v22  ;;  %v1982_v14 = vsel %vm1975_vm4, %v5785_v22, %v5791_v30  ;;  %v2020_v17 = vmul.f32 %v2002_v11, %v1991_v55  ;;  %v2026_v19 = vpack.c.bf16 %v2016_v10, %v2014_v50 }
 0x194   :  { %3930 = vmatmul.mubr.msk.bf16.gmra.mrb[12].mxu1 %vm242_vm0, %v4660_v31  ;;  %2621 = vrot.lane.b32.xlu1 %v4874_v37, %s4931_s27  ;;  %v2006_v31 = vmul.f32 %v2002_v11, %v1984_v52  ;;  %v1980_v37 = vsel %vm1975_vm4, %v5751_v25, %v5768_v51  ;;  %v4663_v51 = vld [vmem:[%s7387_s5 + $0x90] sm:$0xff]   ;;  %v2018_v52 = vmul.f32 %v2002_v11, %v1990_v53  ;;  %v4933_v34 = vmov 3  }
 0x195   :  { %v5812_v45 = vpop.permute.xlu1 %2161  ;;  %1886 = vmatprep.mubr.bf16.mxu1 %v4922_v1  ;;  %v2013_v49 = vmul.f32 %v5839_v13, %v1980_v37  ;;  %v2019_v11 = vmul.f32 %v5839_v13, %v1983_v16  ;;  %v2017_v56 = vmul.f32 %v5839_v13, %v1982_v14  ;;  %4640 = vset.pattern.permute.xlu0 %v4933_v34 }
 0x196   :  { %v5814_v0 = vpop.permute.xlu0 %2159  ;;  %v2022_v61 = vpack.c.bf16 %v2008_v57, %v2006_v31  ;;  %v2028_v57 = vpack.c.bf16 %v2020_v17, %v2018_v52  ;;  %v4877_v31 = vld [vmem:[%s7386_s8] sm:$0xff]  ;;  %v5968_v35 = vrot.slane %v3965_v62, %v5334_v5 }
 0x197   :  { %v2027_v40 = vpack.c.bf16 %v2019_v11, %v2017_v56  ;;  %v6034_v17 = vld [vmem:[%s7388_s6 + $0x7] ss:$8 sm:$0x3] }
 0x198   :  { %2070 = vmatprep.subr.bf16.mxu1 %v2022_v61  ;;  %849 = vperm.xlu1 %4635, %v4877_v31  }
 0x199   :  { %v5818_v42 = vpop.permute.xlu1 %2177 }
 0x19a   :  { %v5820_v9 = vpop.permute.xlu0 %2175  ;;  %v2193_v43 = vsel %vm2191_vm5, %v5812_v45, %v5818_v42 }
 0x19b   :  { %v2200_v20 = vsel %vm2191_vm5, %v5820_v9, %v5814_v0 }
 0x19c   :  { %3944 = vmatmul.mubr.msk.bf16.vlgmr.msra.gmra.mrb[0].mxu1 %vm242_vm0, %v4661_v8  ;;  %v2015_v8 = vmul.f32 %v5839_v13, %v1981_v36  ;;  %v2222_v28 = vmul.f32 %v5939_v18, %v2200_v20  ;;  %v4664_v13 = vld [vmem:[%s7387_s5 + $0x98] sm:$0xff]   ;;  %4636 = vset.pattern.permute.xlu1 %v4933_v34 }
 0x19d   :  { %v5833_v12 = vpop.permute.xlu1 %2165  ;;  %1896 = vmatprep.mubr.bf16.mxu1 %v4922_v1  ;;  %2071 = vmatpush1.bf16.msra.mxu1 %v2021_v59  ;;  %v2192_v59 = vsel %vm2191_vm5, %v5814_v0, %v5820_v9 }
 0x19e   :  { %v5835_v54 = vpop.permute.xlu0 %2163  ;;  %2072 = vmatprep.subr.bf16.mxu1 %v2024_v44  ;;  %v2025_v30 = vpack.c.bf16 %v2015_v8, %v2013_v49  ;;  %897 = vperm.xlu1 %4636, %v4877_v31   ;;  %v2221_v9 = vmul.f32 %v5968_v35, %v2192_v59 }
 0x1a1   :  { %v5868_v24 = vpop.permute.xlu1 %2181  ;;  %2073 = vmatpush1.bf16.msra.mxu1 %v2023_v7  ;;  %v4878_v7 = vld [vmem:[%s7386_s8 + $0x8] sm:$0xff] }
 0x1a2   :  { %v5870_v27 = vpop.permute.xlu0 %2179  ;;  %2074 = vmatprep.subr.bf16.mxu1 %v2026_v19  ;;  %v2203_v36 = vsel %vm2191_vm5, %v5868_v24, %v5833_v12  ;;  %v2195_v50 = vsel %vm2191_vm5, %v5833_v12, %v5868_v24  ;;  %901 = vperm.xlu1 %4636, %v4878_v7  }
 0x1a3   :  { %v2202_v37 = vsel %vm2191_vm5, %v5870_v27, %v5835_v54  ;;  %v2194_v61 = vsel %vm2191_vm5, %v5835_v54, %v5870_v27  ;;  %v2228_v44 = vmul.f32 %v5939_v18, %v2203_v36  ;;  %v2227_v54 = vmul.f32 %v5968_v35, %v2195_v50 }
 0x1a4   :  { %3945 = vmatmul.mubr.msk.bf16.gmra.mrb[4].mxu1 %vm242_vm0, %v4662_v21  ;;  %v2201_v21 = vsel %vm2191_vm5, %v5818_v42, %v5812_v45  ;;  %v2223_v42 = vmul.f32 %v5968_v35, %v2193_v43  ;;  %v2226_v55 = vmul.f32 %v5939_v18, %v2202_v37  ;;  %v2225_v24 = vmul.f32 %v5968_v35, %v2194_v61 }
 0x1a5   :  { %v5894_v39 = vpop.permute.xlu1 %2169  ;;  %1906 = vmatprep.mubr.bf16.mxu1 %v4922_v1  ;;  %v2224_v38 = vmul.f32 %v5939_v18, %v2201_v21  ;;  %2075 = vmatpush1.bf16.msra.mxu1 %v2025_v30  ;;  %v6050_v30 = vrot.slane %v6034_v17, %v5336_v6 }
 0x1a6   :  { %v5896_v41 = vpop.permute.xlu0 %2167  ;;  %2076 = vmatprep.subr.bf16.mxu1 %v2028_v57  ;;  %v2237_v8 = vpack.c.bf16 %v2223_v42, %v2221_v9  ;;  %v2240_v19 = vpack.c.bf16 %v2228_v44, %v2226_v55  ;;  %4637 = vset.pattern.permute.xlu1 %v4932_v63  ;;  %v4880_v42 = vld [vmem:[%s7386_s8 + $0x18] sm:$0xff] }
 0x1a7   :  { %v2238_v10 = vpack.c.bf16 %v2224_v38, %v2222_v28 }
 0x1a9   :  { %v5920_v60 = vpop.permute.xlu1 %2185  ;;  %2077 = vmatpush1.bf16.msra.mxu1 %v2027_v40 }
 0x1aa   :  { %v5922_v25 = vpop.permute.xlu0 %2183  ;;  %v2205_v53 = vsel %vm2191_vm5, %v5920_v60, %v5894_v39  ;;  %2286 = vmatprep.subr.bf16.mxu1 %v2238_v10  ;;  %v2197_v49 = vsel %vm2191_vm5, %v5894_v39, %v5920_v60  ;;  %v2239_v60 = vpack.c.bf16 %v2227_v54, %v2225_v24 }
 0x1ab   :  { %v2204_v12 = vsel %vm2191_vm5, %v5922_v25, %v5896_v41  ;;  %v2232_v16 = vmul.f32 %v5939_v18, %v2205_v53  ;;  %v2196_v52 = vsel %vm2191_vm5, %v5896_v41, %v5922_v25  ;;  %v2231_v20 = vmul.f32 %v5968_v35, %v2197_v49  ;;  %v4667_v53 = vld [vmem:[%s7387_s5 + $0xb0] sm:$0xff]  }
 0x1ac   :  { %3946 = vmatmul.mubr.msk.bf16.gmra.mrb[8].mxu1 %vm242_vm0, %v4663_v51  ;;  %v4665_v51 = vld [vmem:[%s7387_s5 + $0xa0] sm:$0xff]   ;;  %v2230_v14 = vmul.f32 %v5939_v18, %v2204_v12  ;;  %v2229_v11 = vmul.f32 %v5968_v35, %v2196_v52  ;;  %v6111_v52 = vrot.slane %v6034_v17, %v5334_v5 }
 0x1ad   :  { %v5950_v22 = vpop.permute.xlu1 %2173  ;;  %1916 = vmatprep.mubr.bf16.mxu1 %v4922_v1 }
 0x1ae   :  { %v5952_v29 = vpop.permute.xlu0 %2171  ;;  %v2242_v38 = vpack.c.bf16 %v2232_v16, %v2230_v14 }
 0x1b1   :  { %v2190_v32 = vpop.permute.xlu1 %2189 }
 0x1b2   :  { %v2188_v58 = vpop.permute.xlu0 %2187  ;;  %v2207_v21 = vsel %vm2191_vm5, %v2190_v32, %v5950_v22  ;;  %v2199_v56 = vsel %vm2191_vm5, %v5950_v22, %v2190_v32 }
 0x1b3   :  { %v2206_v39 = vsel %vm2191_vm5, %v2188_v58, %v5952_v29  ;;  %v2236_v28 = vmul.f32 %v5939_v18, %v2207_v21  ;;  %v2198_v57 = vsel %vm2191_vm5, %v5952_v29, %v2188_v58  ;;  %v2241_v58 = vpack.c.bf16 %v2231_v20, %v2229_v11 }
 0x1b4   :  { %3947 = vmatmul.mubr.msk.bf16.gmra.mrb[12].mxu1 %vm242_vm0, %v4664_v13  ;;  %v2234_v31 = vmul.f32 %v5939_v18, %v2206_v39  ;;  %v4879_v13 = vld [vmem:[%s7386_s8 + $0x10] sm:$0xff]  ;;  %v4666_v18 = vld [vmem:[%s7387_s5 + $0xa8] sm:$0xff]   ;;  %v2235_v43 = vmul.f32 %v5968_v35, %v2199_v56  ;;  %v2233_v59 = vmul.f32 %v5968_v35, %v2198_v57 }
 0x1b5   :  { %v5988_v45 = vpop.permute.xlu1 %2377  ;;  %2102 = vmatprep.mubr.bf16.mxu1 %v4922_v1  ;;  %857 = vperm.xlu1 %4637, %v4879_v13  }
 0x1b6   :  { %v5990_v0 = vpop.permute.xlu0 %2375  ;;  %v2244_v10 = vpack.c.bf16 %v2236_v28, %v2234_v31  ;;  %v2243_v61 = vpack.c.bf16 %v2235_v43, %v2233_v59 }
 0x1b9   :  { %v6015_v27 = vpop.permute.xlu1 %2393  ;;  %861 = vperm.xlu1 %4637, %v4880_v42  }
 0x1ba   :  { %v6017_v62 = vpop.permute.xlu0 %2391  ;;  %v2417_v22 = vsel %vm2407_vm6, %v6015_v27, %v5988_v45 }
 0x1bb   :  { %v2416_v32 = vsel %vm2407_vm6, %v6017_v62, %v5990_v0  ;;  %v2440_v36 = vmul.f32 %v6050_v30, %v2417_v22 }
 0x1bc   :  { %3961 = vmatmul.mubr.msk.bf16.vlgmr.msra.gmra.mrb[0].mxu1 %vm242_vm0, %v4665_v51  ;;  %v2438_v37 = vmul.f32 %v6050_v30, %v2416_v32 }
 0x1bd   :  { %v6053_v41 = vpop.permute.xlu1 %2381  ;;  %2112 = vmatprep.mubr.bf16.mxu1 %v4922_v1  ;;  %2287 = vmatpush1.bf16.msra.mxu1 %v2237_v8 }
 0x1be   :  { %v6055_v25 = vpop.permute.xlu0 %2379  ;;  %2288 = vmatprep.subr.bf16.mxu1 %v2240_v19  ;;  %v2454_v35 = vpack.c.bf16 %v2440_v36, %v2438_v37  ;;  %4638 = vset.pattern.permute.xlu1 %v4933_v34  ;;  %v2409_v19 = vsel %vm2407_vm6, %v5988_v45, %v6015_v27  ;;  %v6130_v45 = vld [vmem:[%s7386_s8 + $0x20] sm:$0xff] }
 0x1bf   :  { %905 = vperm.xlu1 %4638, %v4879_v13   ;;  %v2439_v56 = vmul.f32 %v6111_v52, %v2409_v19 }
 0x1c1   :  { %v2398_v40 = vpop.permute.xlu1 %2397  ;;  %2289 = vmatpush1.bf16.msra.mxu1 %v2239_v60  ;;  %v2408_v60 = vsel %vm2407_vm6, %v5990_v0, %v6017_v62 }
 0x1c2   :  { %v2396_v29 = vpop.permute.xlu0 %2395  ;;  %2290 = vmatprep.subr.bf16.mxu1 %v2242_v38  ;;  %v2437_v62 = vmul.f32 %v6111_v52, %v2408_v60  ;;  %v2411_v38 = vsel %vm2407_vm6, %v6053_v41, %v2398_v40  ;;  %v6203_v60 = vld [vmem:[%s7388_s6 + $0x10] ss:$8 sm:$0x3] }
 0x1c3   :  { %909 = vperm.xlu1 %4638, %v4880_v42   ;;  %v2410_v28 = vsel %vm2407_vm6, %v6055_v25, %v2396_v29  ;;  %v4669_v42 = vld [vmem:[%s7387_s5 + $0xc0] sm:$0xff]  }
 0x1c4   :  { %3962 = vmatmul.mubr.msk.bf16.gmra.mrb[4].mxu1 %vm242_vm0, %v4666_v18  ;;  %v2443_v18 = vmul.f32 %v6111_v52, %v2411_v38 }
 0x1c5   :  { %v6090_v9 = vpop.permute.xlu1 %2385  ;;  %2122 = vmatprep.mubr.bf16.mxu1 %v4922_v1  ;;  %2291 = vmatpush1.bf16.msra.mxu1 %v2241_v58  ;;  %v2441_v58 = vmul.f32 %v6111_v52, %v2410_v28 }
 0x1c6   :  { %v6092_v50 = vpop.permute.xlu0 %2383  ;;  %2292 = vmatprep.subr.bf16.mxu1 %v2244_v10 }
 0x1c7   :  { %4639 = vset.pattern.permute.xlu1 %v4932_v63 }
 0x1c8   :  { %865 = vperm.xlu1 %4639, %v6130_v45  }
 0x1c9   :  { %v2402_v44 = vpop.permute.xlu1 %2401  ;;  %2293 = vmatpush1.bf16.msra.mxu1 %v2243_v61 }
 0x1ca   :  { %v6096_v55 = vpop.permute.xlu0 %2399  ;;  %2502 = vmatprep.subr.bf16.mxu1 %v2454_v35  ;;  %v2421_v57 = vsel %vm2407_vm6, %v2402_v44, %v6090_v9  ;;  %v2413_v59 = vsel %vm2407_vm6, %v6090_v9, %v2402_v44 }
 0x1cb   :  { %v2448_v36 = vmul.f32 %v6050_v30, %v2421_v57 }
 0x1cc   :  { %3963 = vmatmul.mubr.msk.bf16.gmra.mrb[8].mxu1 %vm242_vm0, %v4667_v53  ;;  %v2412_v53 = vsel %vm2407_vm6, %v6092_v50, %v6096_v55 }
 0x1cd   :  { %v6103_v51 = vpop.permute.xlu1 %2389  ;;  %2132 = vmatprep.mubr.bf16.mxu1 %v4922_v1 }
 0x1ce   :  { %v6106_v8 = vpop.permute.xlu0 %2387 }
 0x1d1   :  { %v2406_v21 = vpop.permute.xlu1 %2405 }
 0x1d2   :  { %v2404_v20 = vpop.permute.xlu0 %2403 }
 0x1d5   :  { %v6151_v31 = vpop.permute.xlu1 %1041 }
 0x1d6   :  { %v6158_v32 = vpop.permute.xlu0 %1039 }
 0x1d9   :  { %v6170_v10 = vpop.permute.xlu1 %1057 }
 0x1da   :  { %v6180_v9 = vpop.permute.xlu0 %1055 }
 0x1f0   :  { %v4226_v12 = vpop.f32.mrb[16].mxu0 }
 0x1f1   :  { %v339_v54 = vadd.f32 %v4226_v12, %v5326_v3  ;;  %v333_v24 = vpop.f32.mrb[17].mxu0  ;;  %v2423_v12 = vsel %vm2407_vm6, %v2406_v21, %v6103_v51 }
 0x1f2   :  { %v334_v7 = vadd.f32 %v333_v24, %v5317_v48  ;;  %v4668_v48 = vld [vmem:[%s7387_s5 + $0xb8] sm:$0xff]  }
 0x1f3   :  { %v3849_v49 = vmul.f32 -1.442695, %v339_v54  ;;  %3964 = vmatmul.mubr.msk.bf16.gmra.mrb[12].mxu1 %vm242_vm0, %v4668_v48  ;;  %v2452_v48 = vmul.f32 %v6050_v30, %v2423_v12  ;;  %v572_v12 = vld [vmem:[%s7390_s3 + $0x30] sm:$0xff] }
 0x1f4   :  { %v3848_v16 = vmul.f32 -1.442695, %v334_v7  ;;  %v4229_v14 = vpop.f32.mrb[18].mxu0  ;;  %2318 = vmatprep.mubr.bf16.mxu1 %v4922_v1  ;;  %v2455_v7 = vpack.c.bf16 %v2443_v18, %v2441_v58  ;;  %v1073_v18 = vsel %vm1071_vm8, %v6151_v31, %v6170_v10 }
 0x1f5   :  { %4685 = vpow2.f32 %v3849_v49  ;;  %v343_v3 = vpop.f32.mrb[19].mxu0  ;;  %v349_v39 = vadd.f32 %v4229_v14, %v5324_v2  ;;  %v2418_v2 = vsel %vm2407_vm6, %v2396_v29, %v6055_v25  ;;  %v2447_v49 = vmul.f32 %v6111_v52, %v2413_v59 }
 0x1f6   :  { %4687 = vpow2.f32 %v3848_v16  ;;  %v344_v17 = vadd.f32 %v343_v3, %v5315_v47  ;;  %v2419_v47 = vsel %vm2407_vm6, %v2398_v40, %v6053_v41  ;;  %v2420_v41 = vsel %vm2407_vm6, %v6096_v55, %v6092_v50 }
 0x1f7   :  { %v3851_v13 = vmul.f32 -1.442695, %v349_v39  ;;  %v2444_v25 = vmul.f32 %v6050_v30, %v2419_v47  ;;  %v2442_v40 = vmul.f32 %v6050_v30, %v2418_v2  ;;  %v2446_v37 = vmul.f32 %v6050_v30, %v2420_v41  ;;  %v6196_v39 = vpop.permute.xlu1 %2593  ;;  %v6216_v47 = vld [vmem:[%s7388_s6 + $0x1] ss:$8 sm:$0x3] }
 0x1f8   :  { %v3850_v27 = vmul.f32 -1.442695, %v344_v17  ;;  %v4232_v11 = vpop.f32.mrb[20].mxu0  ;;  %v2445_v14 = vmul.f32 %v6111_v52, %v2412_v53  ;;  %v2415_v50 = vsel %vm2407_vm6, %v6103_v51, %v2406_v21  ;;  %v6198_v17 = vpop.permute.xlu0 %2591  ;;  %v6220_v2 = vrot.slane %v6203_v60, %v5336_v6 }
 0x1f9   :  { %v353_v0 = vpop.f32.mrb[21].mxu0  ;;  %v359_v61 = vadd.f32 %v4232_v11, %v5384_v33  ;;  %v2456_v54 = vpack.c.bf16 %v2444_v25, %v2442_v40  ;;  %v2422_v33 = vsel %vm2407_vm6, %v2404_v20, %v6106_v8  ;;  %v2458_v55 = vpack.c.bf16 %v2448_v36, %v2446_v37  ;;  %v571_v40 = vld [vmem:[%s7390_s3 + $0x28] sm:$0xff] }
 0x1fa   :  { %4689 = vpow2.f32 %v3850_v27  ;;  %v354_v22 = vadd.f32 %v353_v0, %v5368_v23  ;;  %v2453_v23 = vpack.c.bf16 %v2439_v56, %v2437_v62  ;;  %v2450_v21 = vmul.f32 %v6050_v30, %v2422_v33  ;;  %v4670_v30 = vld [vmem:[%s7387_s5 + $0xc8] sm:$0xff]  }
 0x1fb   :  { %4691 = vpow2.f32 %v3851_v13  ;;  %3978 = vmatmul.mubr.msk.bf16.vlgmr.msra.gmra.mrb[0].mxu1 %vm242_vm0, %v4669_v42  ;;  %v3853_v3 = vmul.f32 -1.442695, %v359_v61  ;;  %v2457_v11 = vpack.c.bf16 %v2447_v49, %v2445_v14  ;;  %v2451_v56 = vmul.f32 %v6111_v52, %v2415_v50  ;;  %v6227_v62 = vpop.permute.xlu1 %2609  ;;  %v4671_v49 = vld [vmem:[%s7387_s5 + $0xd0] sm:$0xff]  }
 0x1fc   :  { %v4235_v29 = vpop.f32.mrb[22].mxu0  ;;  %v3852_v35 = vmul.f32 -1.442695, %v354_v22  ;;  %2328 = vmatprep.mubr.bf16.mxu1 %v4922_v1  ;;  %2503 = vmatpush1.bf16.msra.mxu1 %v2453_v23  ;;  %v6229_v38 = vpop.permute.xlu0 %2607  ;;  %v2633_v57 = vsel %vm2623_vm7, %v6227_v62, %v6196_v39  ;;  %v2460_v13 = vpack.c.bf16 %v2452_v48, %v2450_v21  ;;  %v6243_v41 = vrot.slane %v6216_v47, %v5336_v6 }
 0x1fd   :  { %v363_v43 = vpop.f32.mrb[23].mxu0  ;;  %2504 = vmatprep.subr.bf16.mxu1 %v2456_v54  ;;  %v2632_v25 = vsel %vm2623_vm7, %v6229_v38, %v6198_v17  ;;  %v1072_v6 = vsel %vm1071_vm8, %v6158_v32, %v6180_v9  ;;  %v2656_v58 = vmul.f32 %v6220_v2, %v2633_v57  ;;  %v2625_v57 = vsel %vm2623_vm7, %v6196_v39, %v6227_v62 }
 0x1fe   :  { %4693 = vpow2.f32 %v3852_v35  ;;  %v364_v19 = vadd.f32 %v363_v43, %v5416_v15  ;;  %v2414_v15 = vsel %vm2407_vm6, %v6106_v8, %v2404_v20  ;;  %v369_v8 = vadd.f32 %v4235_v29, %v5432_v26  ;;  %v566_v26 = vld [vmem:[%s7390_s3] sm:$0xff]  ;;  %v573_v29 = vld [vmem:[%s7390_s3 + $0x38] sm:$0xff] }
 0x1ff   :  { %v4686_v44 = vpop.eup %4685  ;;  %v2449_v0 = vmul.f32 %v6111_v52, %v2414_v15  ;;  %v568_v52 = vld [vmem:[%s7390_s3 + $0x10] sm:$0xff]  ;;  %v2654_v43 = vmul.f32 %v6220_v2, %v2632_v25  ;;  %v6266_v36 = vpop.permute.xlu1 %1045  ;;  %v4408_v53 = vpack.c.bf16 %v573_v29, %v571_v40  ;;  %v1104_v54 = vmul.f32 %v6243_v41, %v1073_v18 }
 0x200   :  { %v4688_v24 = vpop.eup %4687  ;;  %v397_v51 = vadd.f32 1.0, %v4686_v44  ;;  %v3854_v20 = vmul.f32 -1.442695, %v364_v19  ;;  %2505 = vmatpush1.bf16.msra.mxu1 %v2455_v7  ;;  %v3855_v23 = vmul.f32 -1.442695, %v369_v8  ;;  %v6268_v37 = vpop.permute.xlu0 %1043  ;;  %v4406_v61 = vpack.c.bf16 %v568_v52, %v566_v26  ;;  %v570_v44 = vld [vmem:[%s7390_s3 + $0x20] sm:$0xff] }
 0x201   :  { %v396_v16 = vadd.f32 1.0, %v4688_v24  ;;  %2506 = vmatprep.subr.bf16.mxu1 %v2458_v55  ;;  %v2459_v59 = vpack.c.bf16 %v2451_v56, %v2449_v0  ;;  %v1102_v24 = vmul.f32 %v6243_v41, %v1072_v6  ;;  %v2670_v33 = vpack.c.bf16 %v2656_v58, %v2654_v43  ;;  %v4672_v56 = vld [vmem:[%s7387_s5 + $0xd8] sm:$0xff]   ;;  %v4673_v58 = vld [vmem:[%s7387_s5 + $0xe0] sm:$0xff]  }
 0x202   :  { %v4410_v55 = vpack.c.bf16 %v572_v12, %v570_v44  ;;  %v6308_v0 = vrot.slane %v6203_v60, %v5334_v5  ;;  %v6358_v44 = vrot.slane %v6216_v47, %v5334_v5  ;;  %v1081_v12 = vsel %vm1071_vm8, %v6170_v10, %v6151_v31 }
 0x203   :  { %4695 = vrcp.f32 %v396_v16  ;;  %3979 = vmatmul.mubr.msk.bf16.gmra.mrb[4].mxu1 %vm242_vm0, %v4670_v30  ;;  %v6286_v16 = vpop.permute.xlu1 %1061  ;;  %v1118_v19 = vpack.c.bf16 %v1104_v54, %v1102_v24 }
 0x204   :  { %v4690_v27 = vpop.eup %4689  ;;  %4697 = vpow2.f32 %v3853_v3  ;;  %2338 = vmatprep.mubr.bf16.mxu1 %v4922_v1  ;;  %2507 = vmatpush1.bf16.msra.mxu1 %v2457_v11  ;;  %v6288_v14 = vpop.permute.xlu0 %1059  ;;  %v2655_v62 = vmul.f32 %v6308_v0, %v2625_v57  ;;  %v1075_v5 = vsel %vm1071_vm8, %v6266_v36, %v6286_v16  ;;  %v1083_v57 = vsel %vm1071_vm8, %v6286_v16, %v6266_v36 }
 0x205   :  { %4699 = vrcp.f32 %v397_v51  ;;  %v398_v28 = vadd.f32 1.0, %v4690_v27  ;;  %v4692_v22 = vpop.eup %4691  ;;  %2508 = vmatprep.subr.bf16.mxu1 %v2460_v13  ;;  %v2624_v13 = vsel %vm2623_vm7, %v6198_v17, %v6229_v38  ;;  %v1074_v31 = vsel %vm1071_vm8, %v6268_v37, %v6288_v14 }
 0x206   :  { %4701 = vpow2.f32 %v3854_v20  ;;  %v399_v42 = vadd.f32 1.0, %v4692_v22  ;;  %v2653_v38 = vmul.f32 %v6308_v0, %v2624_v13  ;;  %v1082_v13 = vsel %vm1071_vm8, %v6288_v14, %v6268_v37 }
 0x207   :  { %4703 = vrcp.f32 %v398_v28  ;;  %v2598_v51 = vpop.permute.xlu1 %2597  ;;  %v1107_v14 = vmul.f32 %v6358_v44, %v1083_v57 }
 0x208   :  { %v4694_v35 = vpop.eup %4693  ;;  %4705 = vpow2.f32 %v3855_v23  ;;  %2509 = vmatpush1.bf16.msra.mxu1 %v2459_v59  ;;  %v2596_v15 = vpop.permute.xlu0 %2595  ;;  %v2669_v59 = vpack.c.bf16 %v2655_v62, %v2653_v38  ;;  %v1105_v38 = vmul.f32 %v6358_v44, %v1082_v13 }
 0x209   :  { %4707 = vrcp.f32 %v399_v42  ;;  %v400_v50 = vadd.f32 1.0, %v4694_v35  ;;  %2718 = vmatprep.subr.bf16.mxu1 %v2670_v33  ;;  %v4674_v33 = vld [vmem:[%s7387_s5 + $0xe8] sm:$0xff]  }
 0x20b   :  { %3980 = vmatmul.mubr.msk.bf16.gmra.mrb[8].mxu1 %vm242_vm0, %v4671_v49  ;;  %4709 = vrcp.f32 %v400_v50  ;;  %v2614_v30 = vpop.permute.xlu1 %2613  ;;  %v1080_v49 = vsel %vm1071_vm8, %v6180_v9, %v6158_v32  ;;  %v1103_v32 = vmul.f32 %v6358_v44, %v1081_v12  ;;  %v1108_v50 = vmul.f32 %v6243_v41, %v1075_v5 }
 0x20c   :  { %2348 = vmatprep.mubr.bf16.mxu1 %v4922_v1  ;;  %v2612_v8 = vpop.permute.xlu0 %2611  ;;  %v2635_v26 = vsel %vm2623_vm7, %v2614_v30, %v2598_v51  ;;  %v2627_v18 = vsel %vm2623_vm7, %v2598_v51, %v2614_v30  ;;  %v1101_v9 = vmul.f32 %v6358_v44, %v1080_v49 }
 0x20d   :  { %v6279_v7 = vpop.eup %4695  ;;  %v2634_v60 = vsel %vm2623_vm7, %v2612_v8, %v2596_v15  ;;  %v2660_v25 = vmul.f32 %v6220_v2, %v2635_v26  ;;  %v2626_v6 = vsel %vm2623_vm7, %v2596_v15, %v2612_v8  ;;  %v2659_v42 = vmul.f32 %v6308_v0, %v2627_v18 }
 0x20e   :  { %3856 = vmatmul.mubr.msk.f32.vlgmr.msra.gmra.mrb[24].mxu0 %vm428_vm9, %v6279_v7  ;;  %v4698_v3 = vpop.eup %4697  ;;  %v2658_v40 = vmul.f32 %v6220_v2, %v2634_v60  ;;  %v1117_v37 = vpack.c.bf16 %v1103_v32, %v1101_v9 }
 0x20f   :  { %523 = vmatprep.mubr.f32.mxu0 %v7393_v46  ;;  %4407 = vmatpush1.bf16.msra.mxu0 %v4406_v61  ;;  %v6291_v48 = vpop.eup %4699  ;;  %v401_v21 = vadd.f32 1.0, %v4698_v3  ;;  %v6327_v52 = vpop.permute.xlu1 %1049  ;;  %v2657_v61 = vmul.f32 %v6308_v0, %v2626_v6 }
 0x210   :  { %4409 = vmatprep.subr.bf16.mxu0 %v4408_v53  ;;  %v4702_v27 = vpop.eup %4701  ;;  %v6329_v39 = vpop.permute.xlu0 %1047  ;;  %v2672_v35 = vpack.c.bf16 %v2660_v25, %v2658_v40 }
 0x211   :  { %v6298_v11 = vpop.eup %4703  ;;  %4711 = vrcp.f32 %v401_v21  ;;  %v402_v20 = vadd.f32 1.0, %v4702_v27  ;;  %v2671_v10 = vpack.c.bf16 %v2659_v42, %v2657_v61 }
 0x212   :  { %3857 = vmatmul.mubr.msk.f32.gmra.mrb[26].mxu0 %vm428_vm9, %v6291_v48  ;;  %v4706_v28 = vpop.eup %4705 }
 0x213   :  { %529 = vmatprep.mubr.f32.mxu0 %v7393_v46  ;;  %4411 = vmatpush1.bf16.msra.mxu0 %v4410_v55  ;;  %v6318_v22 = vpop.eup %4707  ;;  %v403_v17 = vadd.f32 1.0, %v4706_v28  ;;  %4713 = vrcp.f32 %v402_v20  ;;  %v1066_v43 = vpop.permute.xlu1 %1065  ;;  %v1106_v55 = vmul.f32 %v6243_v41, %v1074_v31 }
 0x214   :  { %1166 = vmatprep.subr.bf16.mxu0 %v1118_v19  ;;  %3981 = vmatmul.mubr.msk.bf16.gmra.mrb[12].mxu1 %vm242_vm0, %v4672_v56  ;;  %v1064_v23 = vpop.permute.xlu0 %1063  ;;  %v1077_v26 = vsel %vm1071_vm8, %v6327_v52, %v1066_v43  ;;  %v1085_v40 = vsel %vm1071_vm8, %v1066_v43, %v6327_v52 }
 0x215   :  { %2534 = vmatprep.mubr.bf16.mxu1 %v4922_v1  ;;  %v6337_v29 = vpop.eup %4709  ;;  %4715 = vrcp.f32 %v403_v17  ;;  %v1076_v60 = vsel %vm1071_vm8, %v6329_v39, %v1064_v23  ;;  %v1120_v25 = vpack.c.bf16 %v1108_v50, %v1106_v55  ;;  %v1112_v18 = vmul.f32 %v6243_v41, %v1077_v26 }
 0x216   :  { %3858 = vmatmul.mubr.msk.f32.gmra.mrb[28].mxu0 %vm428_vm9, %v6298_v11  ;;  %v1084_v6 = vsel %vm1071_vm8, %v1064_v23, %v6329_v39  ;;  %v1111_v12 = vmul.f32 %v6358_v44, %v1085_v40 }
 0x217   :  { %535 = vmatprep.mubr.f32.mxu0 %v7393_v46  ;;  %v2602_v54 = vpop.permute.xlu1 %2601 }
 0x218   :  { %v2600_v24 = vpop.permute.xlu0 %2599 }
 0x21a   :  { %3859 = vmatmul.mubr.msk.f32.gmra.mrb[30].mxu0 %vm428_vm9, %v6318_v22 }
 0x21b   :  { %541 = vmatprep.mubr.f32.mxu0 %v7393_v46  ;;  %v6351_v53 = vpop.eup %4711  ;;  %v2618_v3 = vpop.permute.xlu1 %2617 }
 0x21c   :  { %3995 = vmatmul.mubr.msk.bf16.vlgmr.msra.gmra.mrb[0].mxu1 %vm242_vm0, %v4673_v58  ;;  %v2616_v19 = vpop.permute.xlu0 %2615  ;;  %v2629_v51 = vsel %vm2623_vm7, %v2602_v54, %v2618_v3  ;;  %v2637_v15 = vsel %vm2623_vm7, %v2618_v3, %v2602_v54  ;;  %v1110_v58 = vmul.f32 %v6243_v41, %v1076_v60 }
 0x21d   :  { %2544 = vmatprep.mubr.bf16.mxu1 %v4922_v1  ;;  %2719 = vmatpush1.bf16.msra.mxu1 %v2669_v59  ;;  %v6378_v47 = vpop.eup %4713  ;;  %v2628_v21 = vsel %vm2623_vm7, %v2600_v24, %v2616_v19  ;;  %v2636_v27 = vsel %vm2623_vm7, %v2616_v19, %v2600_v24  ;;  %v2663_v56 = vmul.f32 %v6308_v0, %v2629_v51  ;;  %v4675_v59 = vld [vmem:[%s7387_s5 + $0xf0] sm:$0xff]  }
 0x21e   :  { %3860 = vmatmul.mubr.msk.f32.gmra.mrb[32].mxu0 %vm428_vm9, %v6337_v29  ;;  %2720 = vmatprep.subr.bf16.mxu1 %v2672_v35  ;;  %v2664_v30 = vmul.f32 %v6220_v2, %v2637_v15  ;;  %v2661_v8 = vmul.f32 %v6308_v0, %v2628_v21  ;;  %v2662_v20 = vmul.f32 %v6220_v2, %v2636_v27 }
 0x21f   :  { %547 = vmatprep.mubr.f32.mxu0 %v7393_v46  ;;  %v6402_v28 = vpop.eup %4715  ;;  %v1054_v36 = vpop.permute.xlu1 %1053  ;;  %v1119_v35 = vpack.c.bf16 %v1107_v14, %v1105_v38  ;;  %v1122_v49 = vpack.c.bf16 %v1112_v18, %v1110_v58 }
 0x220   :  { %v2673_v17 = vpack.c.bf16 %v2663_v56, %v2661_v8  ;;  %v1052_v16 = vpop.permute.xlu0 %1051  ;;  %v2674_v62 = vpack.c.bf16 %v2664_v30, %v2662_v20  ;;  %v4683_v8 = vld [vmem:[%s7387_s5 + $0x38] sm:$0xff]  }
 0x221   :  { %2721 = vmatpush1.bf16.msra.mxu1 %v2671_v10 }
 0x222   :  { %3861 = vmatmul.mubr.msk.f32.gmra.mrb[34].mxu0 %vm428_vm9, %v6351_v53  ;;  %2722 = vmatprep.subr.bf16.mxu1 %v2674_v62 }
 0x223   :  { %553 = vmatprep.mubr.f32.mxu0 %v7393_v46  ;;  %v1070_v42 = vpop.permute.xlu1 %1069 }
 0x224   :  { %3996 = vmatmul.mubr.msk.bf16.gmra.mrb[4].mxu1 %vm242_vm0, %v4674_v33  ;;  %v1068_v61 = vpop.permute.xlu0 %1067  ;;  %v1079_v52 = vsel %vm1071_vm8, %v1054_v36, %v1070_v42  ;;  %v1087_v39 = vsel %vm1071_vm8, %v1070_v42, %v1054_v36 }
 0x225   :  { %2554 = vmatprep.mubr.bf16.mxu1 %v4922_v1  ;;  %2723 = vmatpush1.bf16.msra.mxu1 %v2673_v17  ;;  %v1078_v43 = vsel %vm1071_vm8, %v1052_v16, %v1068_v61  ;;  %v1086_v23 = vsel %vm1071_vm8, %v1068_v61, %v1052_v16  ;;  %v1116_v54 = vmul.f32 %v6243_v41, %v1079_v52  ;;  %v4882_v61 = vld [vmem:[%s7384_s0] sm:$0xff] }
 0x226   :  { %3862 = vmatmul.mubr.msk.f32.gmra.mrb[36].mxu0 %vm428_vm9, %v6378_v47  ;;  %v1114_v24 = vmul.f32 %v6243_v41, %v1078_v43  ;;  %v1115_v5 = vmul.f32 %v6358_v44, %v1087_v39  ;;  %v1113_v31 = vmul.f32 %v6358_v44, %v1086_v23  ;;  %v4676_v41 = vld [vmem:[%s7387_s5 + $0xf8] sm:$0xff]   ;;  %v4883_v39 = vld [vmem:[%s7384_s0 + $0x8] sm:$0xff] }
 0x227   :  { %559 = vmatprep.mubr.f32.mxu0 %v7393_v46  ;;  %v2606_v10 = vpop.permute.xlu1 %2605 }
 0x228   :  { %v2604_v33 = vpop.permute.xlu0 %2603  ;;  %v1124_v9 = vpack.c.bf16 %v1116_v54, %v1114_v24  ;;  %v4884_v24 = vld [vmem:[%s7384_s0 + $0x10] sm:$0xff] }
 0x22a   :  { %3863 = vmatmul.mubr.msk.f32.gmra.mrb[38].mxu0 %vm428_vm9, %v6402_v28 }
 0x22b   :  { %638 = vmatprep.mubr.f32.mxu0 %v7393_v46  ;;  %v2622_v50 = vpop.permute.xlu1 %2621 }
 0x22c   :  { %3997 = vmatmul.mubr.msk.bf16.gmra.mrb[8].mxu1 %vm242_vm0, %v4675_v59  ;;  %v2631_v55 = vsel %vm2623_vm7, %v2606_v10, %v2622_v50  ;;  %v2639_v3 = vsel %vm2623_vm7, %v2622_v50, %v2606_v10 }
 0x22d   :  { %2564 = vmatprep.mubr.bf16.mxu1 %v4922_v1  ;;  %v2667_v15 = vmul.f32 %v6308_v0, %v2631_v55 }
 0x22e   :  { %3864 = vmatmul.mubr.msk.f32.vlgmr.msra.gmra.mrb[40].mxu0 %vm428_vm9, %v6279_v7  ;;  %v1109_v7 = vmul.f32 %v6358_v44, %v1084_v6  ;;  %v2620_v44 = vpop.permute.xlu0 %2619 }
 0x22f   :  { %644 = vmatprep.mubr.f32.mxu0 %v7393_v46  ;;  %1167 = vmatpush1.bf16.msra.mxu0 %v1117_v37  ;;  %v2630_v19 = vsel %vm2623_vm7, %v2604_v33, %v2620_v44  ;;  %v2638_v51 = vsel %vm2623_vm7, %v2620_v44, %v2604_v33  ;;  %v4887_v44 = vld [vmem:[%s7384_s0 + $0x28] sm:$0xff] }
 0x230   :  { %1168 = vmatprep.subr.bf16.mxu0 %v1120_v25  ;;  %v1121_v32 = vpack.c.bf16 %v1111_v12, %v1109_v7  ;;  %v2665_v21 = vmul.f32 %v6308_v0, %v2630_v19  ;;  %v2666_v27 = vmul.f32 %v6220_v2, %v2638_v51  ;;  %v4677_v0 = vld [vmem:[%s7387_s5 + $0x20] sm:$0xff]  }
 0x232   :  { %3865 = vmatmul.mubr.msk.f32.gmra.mrb[42].mxu0 %vm428_vm9, %v6291_v48  ;;  %v1123_v48 = vpack.c.bf16 %v1115_v5, %v1113_v31  ;;  %v2675_v56 = vpack.c.bf16 %v2667_v15, %v2665_v21  ;;  %v4885_v5 = vld [vmem:[%s7384_s0 + $0x18] sm:$0xff]  ;;  %v4888_v21 = vld [vmem:[%s7384_s0 + $0x30] sm:$0xff] }
 0x233   :  { %650 = vmatprep.mubr.f32.mxu0 %v7393_v46  ;;  %1169 = vmatpush1.bf16.msra.mxu0 %v1119_v35 }
 0x234   :  { %1170 = vmatprep.subr.bf16.mxu0 %v1122_v49  ;;  %3998 = vmatmul.mubr.msk.bf16.gmra.mrb[12].mxu1 %vm242_vm0, %v4676_v41 }
 0x235   :  { %2750 = vmatprep.mubr.bf16.mxu1 %v4922_v1 }
 0x236   :  { %3866 = vmatmul.mubr.msk.f32.gmra.mrb[44].mxu0 %vm428_vm9, %v6298_v11  ;;  %v2668_v11 = vmul.f32 %v6220_v2, %v2639_v3  ;;  %v4680_v2 = vld [vmem:[%s7387_s5 + $0x108] sm:$0xff]  }
 0x237   :  { %656 = vmatprep.mubr.f32.mxu0 %v7393_v46  ;;  %1171 = vmatpush1.bf16.msra.mxu0 %v1121_v32 }
 0x238   :  { %1172 = vmatprep.subr.bf16.mxu0 %v1124_v9  ;;  %v2676_v30 = vpack.c.bf16 %v2668_v11, %v2666_v27 }
 0x23a   :  { %3867 = vmatmul.mubr.msk.f32.gmra.mrb[46].mxu0 %vm428_vm9, %v6318_v22  ;;  %2724 = vmatprep.subr.bf16.mxu1 %v2676_v30  ;;  %v4682_v22 = vld [vmem:[%s7387_s5 + $0x110] sm:$0xff]  }
 0x23b   :  { %662 = vmatprep.mubr.f32.mxu0 %v7393_v46  ;;  %1173 = vmatpush1.bf16.msra.mxu0 %v1123_v48  ;;  %v4886_v48 = vld [vmem:[%s7384_s0 + $0x20] sm:$0xff] }
 0x23c   :  { %2725 = vmatpush1.bf16.msra.mxu1 %v2675_v56  ;;  %v4889_v56 = vld [vmem:[%s7384_s0 + $0x38] sm:$0xff] }
 0x23e   :  { %3868 = vmatmul.mubr.msk.f32.gmra.mrb[48].mxu0 %vm428_vm9, %v6337_v29  ;;  %v4679_v29 = vld [vmem:[%s7387_s5 + $0x28] sm:$0xff]  }
 0x23f   :  { %668 = vmatprep.mubr.f32.mxu0 %v7393_v46  ;;  %4012 = vmatmul.mubr.msk.bf16.vlgmr.msra.gmra.mrb[0].mxu1 %vm242_vm0, %v4678_v4 }
 0x240   :  { %2760 = vmatprep.mubr.bf16.mxu1 %v4922_v1 }
 0x242   :  { %3869 = vmatmul.mubr.msk.f32.gmra.mrb[50].mxu0 %vm428_vm9, %v6351_v53  ;;  %v4684_v53 = vld [vmem:[%s7387_s5 + $0x118] sm:$0xff]  }
 0x243   :  { %674 = vmatprep.mubr.f32.mxu0 %v7393_v46 }
 0x246   :  { %3870 = vmatmul.mubr.msk.f32.gmra.mrb[52].mxu0 %vm428_vm9, %v6378_v47  ;;  %v4681_v47 = vld [vmem:[%s7387_s5 + $0x30] sm:$0xff]  }
 0x247   :  { %680 = vmatprep.mubr.f32.mxu0 %v7393_v46  ;;  %4013 = vmatmul.mubr.msk.bf16.gmra.mrb[4].mxu1 %vm242_vm0, %v4680_v2 }
 0x248   :  { %2770 = vmatprep.mubr.bf16.mxu1 %v4922_v1 }
 0x24a   :  { %3871 = vmatmul.mubr.msk.f32.gmra.mrb[54].mxu0 %vm428_vm9, %v6402_v28 }
 0x24b   :  { %1198 = vmatprep.mubr.bf16.mxu0 %v4922_v1 }
 0x24e   :  { %3885 = vmatmul.mubr.msk.bf16.vlgmr.msra.gmra.mrb[56].mxu0 %vm242_vm0, %v4677_v0 }
 0x24f   :  { %1208 = vmatprep.mubr.bf16.mxu0 %v4922_v1  ;;  %4014 = vmatmul.mubr.msk.bf16.gmra.mrb[8].mxu1 %vm242_vm0, %v4682_v22 }
 0x250   :  { %2780 = vmatprep.mubr.bf16.mxu1 %v4922_v1 }
 0x256   :  { %3886 = vmatmul.mubr.msk.bf16.gmra.mrb[60].mxu0 %vm242_vm0, %v4679_v29 }
 0x257   :  { %1218 = vmatprep.mubr.bf16.mxu0 %v4922_v1  ;;  %4015 = vmatmul.mubr.msk.bf16.gmra.mrb[12].mxu1 %vm242_vm0, %v4684_v53 }
 0x25e   :  { %3887 = vmatmul.mubr.msk.bf16.gmra.mrb[64].mxu0 %vm242_vm0, %v4681_v47 }
 0x25f   :  { %1228 = vmatprep.mubr.bf16.mxu0 %v4922_v1 }
 0x266   :  { %3888 = vmatmul.mubr.msk.bf16.gmra.mrb[68].mxu0 %vm242_vm0, %v4683_v8 }
 0x2e1   :  { %v519_v20 = vpop.f32.mrb[24].mxu0 }
 0x2e2   :  { %v521_v28 = vpop.f32.mrb[25].mxu0 }
 0x2e5   :  { %v525_v57 = vpop.f32.mrb[26].mxu0 }
 0x2e6   :  { %v527_v13 = vpop.f32.mrb[27].mxu0 }
 0x2e9   :  { %v531_v26 = vpop.f32.mrb[28].mxu0 }
 0x2ea   :  { %v533_v60 = vpop.f32.mrb[29].mxu0 }
 0x2ed   :  { %v537_v17 = vpop.f32.mrb[30].mxu0 }
 0x2ee   :  { %v539_v36 = vpop.f32.mrb[31].mxu0 }
 0x2f1   :  { %v543_v16 = vpop.f32.mrb[32].mxu0 }
 0x2f2   :  { %v545_v62 = vpop.f32.mrb[33].mxu0 }
 0x2f5   :  { %v549_v37 = vpop.f32.mrb[34].mxu0 }
 0x2f6   :  { %v551_v14 = vpop.f32.mrb[35].mxu0 }
 0x2f9   :  { %v555_v38 = vpop.f32.mrb[36].mxu0 }
 0x2fa   :  { %v557_v25 = vpop.f32.mrb[37].mxu0 }
 0x2fd   :  { %v6531_v40 = vpop.f32.mrb[38].mxu0 }
 0x2fe   :  { %v6533_v18 = vpop.f32.mrb[39].mxu0 }
 0x301   :  { %v640_v6 = vpop.f32.mrb[40].mxu0 }
 0x302   :  { %v687_v58 = vmul.f32 %v640_v6, %v519_v20  ;;  %v642_v59 = vpop.f32.mrb[41].mxu0 }
 0x303   :  { %v688_v42 = vmul.f32 %v642_v59, %v521_v28 }
 0x304   :  { %v6538_v52 = vmul.f32 %v4882_v61, %v687_v58 }
 0x305   :  { %v6543_v43 = vmul.f32 %v4883_v39, %v688_v42  ;;  %v646_v23 = vpop.f32.mrb[42].mxu0 }
 0x306   :  { %v689_v35 = vmul.f32 %v646_v23, %v525_v57  ;;  %v648_v12 = vpop.f32.mrb[43].mxu0  ;;  %v6607_v23 = vld [vmem:[%s7386_s8 + $0x28] sm:$0xff] }
 0x307   :  { %v690_v7 = vmul.f32 %v648_v12, %v527_v13  ;;  %v719_v54 = vadd.f32 %v6543_v43, %v6538_v52 }
 0x308   :  { %v6550_v49 = vmul.f32 %v4884_v24, %v689_v35 }
 0x309   :  { %v6555_v31 = vmul.f32 %v4885_v5, %v690_v7  ;;  %720 = vadd.xlane.f32.xlu0 %v719_v54  ;;  %v652_v10 = vpop.f32.mrb[44].mxu0  ;;  %v4893_v7 = vld [vmem:[%s7384_s0 + $0x70] sm:$0xff] }
 0x30a   :  { %v691_v33 = vmul.f32 %v652_v10, %v531_v26  ;;  %v654_v32 = vpop.f32.mrb[45].mxu0 }
 0x30b   :  { %v692_v41 = vmul.f32 %v654_v32, %v533_v60  ;;  %v722_v9 = vadd.f32 %v6555_v31, %v6550_v49  ;;  %v4890_v60 = vld [vmem:[%s7384_s0 + $0x50] sm:$0xff] }
 0x30c   :  { %v6562_v50 = vmul.f32 %v4886_v48, %v691_v33 }
 0x30d   :  { %v6567_v55 = vmul.f32 %v4887_v44, %v692_v41  ;;  %723 = vadd.xlane.f32.xlu1 %v722_v9  ;;  %v658_v3 = vpop.f32.mrb[46].mxu0 }
 0x30e   :  { %v693_v19 = vmul.f32 %v658_v3, %v537_v17  ;;  %v660_v51 = vpop.f32.mrb[47].mxu0 }
 0x30f   :  { %v694_v15 = vmul.f32 %v660_v51, %v539_v36  ;;  %v725_v11 = vadd.f32 %v6567_v55, %v6562_v50  ;;  %v4891_v36 = vld [vmem:[%s7384_s0 + $0x58] sm:$0xff] }
 0x310   :  { %v6574_v27 = vmul.f32 %v4888_v21, %v693_v19 }
 0x311   :  { %v6579_v30 = vmul.f32 %v4889_v56, %v694_v15  ;;  %726 = vadd.xlane.f32.xlu0 %v725_v11  ;;  %v664_v4 = vpop.f32.mrb[48].mxu0 }
 0x312   :  { %v6581_v2 = vmul.f32 %v664_v4, %v543_v16  ;;  %v666_v0 = vpop.f32.mrb[49].mxu0  ;;  %v2752_v53 = vpop.f32.mrb[0].mxu1 }
 0x313   :  { %v6583_v22 = vmul.f32 %v666_v0, %v545_v62  ;;  %v728_v29 = vadd.f32 %v6579_v30, %v6574_v27  ;;  %v2754_v8 = vpop.f32.mrb[1].mxu1 }
 0x314   :  { %v2756_v57 = vpop.f32.mrb[2].mxu1 }
 0x315   :  { %729 = vadd.xlane.f32.xlu0 %v728_v29  ;;  %v670_v47 = vpop.f32.mrb[50].mxu0  ;;  %v2758_v26 = vpop.f32.mrb[3].mxu1 }
 0x316   :  { %v697_v20 = vmul.f32 %v670_v47, %v549_v37  ;;  %v672_v28 = vpop.f32.mrb[51].mxu0 }
 0x317   :  { %v698_v13 = vmul.f32 %v672_v28, %v551_v14 }
 0x318   :  { %v6590_v17 = vmul.f32 %v4890_v60, %v697_v20 }
 0x319   :  { %v6595_v16 = vmul.f32 %v4891_v36, %v698_v13  ;;  %v676_v62 = vpop.f32.mrb[52].mxu0 }
 0x31a   :  { %v6597_v6 = vmul.f32 %v676_v62, %v555_v38  ;;  %v678_v37 = vpop.f32.mrb[53].mxu0  ;;  %v2762_v59 = vpop.f32.mrb[4].mxu1 }
 0x31b   :  { %v6599_v58 = vmul.f32 %v678_v37, %v557_v25  ;;  %v734_v14 = vadd.f32 %v6595_v16, %v6590_v17  ;;  %v2764_v61 = vpop.f32.mrb[5].mxu1 }
 0x31c   :  { %v2766_v35 = vpop.f32.mrb[6].mxu1 }
 0x31d   :  { %735 = vadd.xlane.f32.xlu0 %v734_v14  ;;  %v682_v42 = vpop.f32.mrb[54].mxu0  ;;  %v2768_v12 = vpop.f32.mrb[7].mxu1 }
 0x31e   :  { %v701_v39 = vmul.f32 %v682_v42, %v6531_v40  ;;  %869 = vperm.xlu1 %4639, %v6607_v23   ;;  %v684_v38 = vpop.f32.mrb[55].mxu0  ;;  %v4894_v40 = vld [vmem:[%s7384_s0 + $0x78] sm:$0xff] }
 0x31f   :  { %v702_v25 = vmul.f32 %v684_v38, %v6533_v18 }
 0x320   :  { %v6614_v54 = vmul.f32 %v4893_v7, %v701_v39  ;;  %v4896_v7 = vld [vmem:[%s7384_s0 + $0x48] sm:$0xff] }
 0x321   :  { %v6619_v24 = vmul.f32 %v4894_v40, %v702_v25  ;;  %v1200_v5 = vpop.f32.mrb[56].mxu0  ;;  %v4895_v25 = vld [vmem:[%s7384_s0 + $0x40] sm:$0xff]  ;;  %v6663_v40 = vmul.f32 %v4896_v7, %v6583_v22 }
 0x322   :  { %4642 = vset.pattern.permute.xlu1 %v4933_v34  ;;  %v6622_v10 = vadd.f32 %v2752_v53, %v1200_v5  ;;  %v1202_v33 = vpop.f32.mrb[57].mxu0  ;;  %v2772_v44 = vpop.f32.mrb[8].mxu1 }
 0x323   :  { %v740_v18 = vadd.f32 %v6619_v24, %v6614_v54  ;;  %v6626_v32 = vadd.f32 %v2754_v8, %v1202_v33  ;;  %v1204_v41 = vpop.f32.mrb[58].mxu0  ;;  %v2774_v19 = vpop.f32.mrb[9].mxu1 }
 0x324   :  { %v6628_v9 = vadd.f32 %v2756_v57, %v1204_v41  ;;  %v1206_v48 = vpop.f32.mrb[59].mxu0  ;;  %v2776_v51 = vpop.f32.mrb[10].mxu1  ;;  %v4898_v41 = vld [vmem:[%s7384_s0 + $0x68] sm:$0xff] }
 0x325   :  { %741 = vadd.xlane.f32.xlu0 %v740_v18  ;;  %v6630_v3 = vadd.f32 %v2758_v26, %v1206_v48  ;;  %v2778_v15 = vpop.f32.mrb[11].mxu1  ;;  %v4897_v18 = vld [vmem:[%s7384_s0 + $0x60] sm:$0xff]  ;;  %v6680_v22 = vmul.f32 %v4898_v41, %v6599_v58  ;;  %v4899_v48 = vld [vmem:[%s7386_s8 + $0x8] sm:$0xff] }
 0x329   :  { %v1210_v11 = vpop.f32.mrb[60].mxu0 }
 0x32a   :  { %v6632_v21 = vadd.f32 %v2762_v59, %v1210_v11  ;;  %v1212_v56 = vpop.f32.mrb[61].mxu0  ;;  %v2782_v47 = vpop.f32.mrb[12].mxu1 }
 0x32b   :  { %v6634_v4 = vadd.f32 %v2764_v61, %v1212_v56  ;;  %v1214_v0 = vpop.f32.mrb[62].mxu0  ;;  %v2784_v20 = vpop.f32.mrb[13].mxu1 }
 0x32c   :  { %v6636_v29 = vadd.f32 %v2766_v35, %v1214_v0  ;;  %v1216_v53 = vpop.f32.mrb[63].mxu0  ;;  %v2786_v28 = vpop.f32.mrb[14].mxu1 }
 0x32d   :  { %v6638_v8 = vadd.f32 %v2768_v12, %v1216_v53  ;;  %v2788_v57 = vpop.f32.mrb[15].mxu1  ;;  %v6657_v12 = vmul.f32 %v4895_v25, %v6581_v2  ;;  %v6674_v2 = vmul.f32 %v4897_v18, %v6597_v6  ;;  %v6690_v6 = vld [vmem:[%s7386_s8 + $0x38] sm:$0xff]  ;;  %v6709_v11 = vpop.permute.xlu1 %849 }
 0x32f   :  { %v737_v58 = vadd.f32 %v6680_v22, %v6674_v2 }
 0x331   :  { %v1220_v13 = vpop.f32.mrb[64].mxu0  ;;  %v6711_v56 = vpop.permute.xlu1 %897 }
 0x332   :  { %v6640_v26 = vadd.f32 %v2772_v44, %v1220_v13  ;;  %v1222_v60 = vpop.f32.mrb[65].mxu0  ;;  %v731_v44 = vadd.f32 %v6663_v40, %v6657_v12 }
 0x333   :  { %v6642_v36 = vadd.f32 %v2774_v19, %v1222_v60  ;;  %v1224_v62 = vpop.f32.mrb[66].mxu0  ;;  %v4934_v19 = vmov 1  }
 0x334   :  { %v6644_v37 = vadd.f32 %v2776_v51, %v1224_v62  ;;  %v1226_v14 = vpop.f32.mrb[67].mxu0  ;;  %v4901_v51 = vld [vmem:[%s7386_s8] sm:$0xff] }
 0x335   :  { %v6646_v59 = vadd.f32 %v2778_v15, %v1226_v14  ;;  %v6703_v15 = vld [vmem:[%s7386_s8 + $0x30] sm:$0xff] }
 0x339   :  { %v1230_v42 = vpop.f32.mrb[68].mxu0 }
 0x33a   :  { %v6648_v61 = vadd.f32 %v2782_v47, %v1230_v42  ;;  %v1232_v39 = vpop.f32.mrb[69].mxu0 }
 0x33b   :  { %913 = vperm.xlu0 %4640, %v6130_v45   ;;  %v6651_v38 = vadd.f32 %v2784_v20, %v1232_v39  ;;  %v1234_v35 = vpop.f32.mrb[70].mxu0 }
 0x33c   :  { %v6665_v5 = vadd.f32 %v2786_v28, %v1234_v35  ;;  %v1236_v45 = vpop.f32.mrb[71].mxu0 }
 0x33d   :  { %7404 = vst [vmem:[#allocation2_spill] sm:$0xff] %v6651_v38  ;;  %v6667_v33 = vadd.f32 %v2788_v57, %v1236_v45 }
 0x33f   :  { %4641 = vset.pattern.permute.xlu0 %v4932_v63 }
 0x340   :  { %853 = vperm.xlu0 %4641, %v4899_v48  }
 0x342   :  { %732 = vadd.xlane.f32.xlu1 %v731_v44 }
 0x344   :  { %877 = vperm.xlu0 %4641, %v6690_v6  }
 0x346   :  { %738 = vadd.xlane.f32.xlu1 %v737_v58 }
 0x348   :  { %4645 = vset.pattern.permute.xlu0 %v4934_v19 }
 0x349   :  { %2808 = vperm.xlu0 %4645, %v4901_v51  }
 0x357   :  { %917 = vperm.xlu1 %4642, %v6607_v23  }
 0x35b   :  { %4643 = vset.pattern.permute.xlu1 %v4932_v63  ;;  %v6713_v63 = vpop.permute.xlu1 %901 }
 0x35c   :  { %873 = vperm.xlu1 %4643, %v6703_v15  }
 0x35f   :  { %v6715_v0 = vpop.permute.xlu1 %857 }
 0x360   :  { %4644 = vset.pattern.permute.xlu1 %v4933_v34 }
 0x361   :  { %921 = vperm.xlu1 %4644, %v6703_v15  }
 0x363   :  { %v6717_v53 = vpop.permute.xlu1 %861 }
 0x365   :  { %925 = vperm.xlu1 %4644, %v6690_v6  }
 0x367   :  { %v6719_v47 = vpop.permute.xlu1 %905 }
 0x369   :  { %4646 = vset.pattern.permute.xlu1 %v4934_v19 }
 0x36a   :  { %2812 = vperm.xlu1 %4646, %v4899_v48  }
 0x36b   :  { %v6721_v20 = vpop.permute.xlu1 %909 }
 0x36f   :  { %v6723_v34 = vpop.permute.xlu1 %865 }
 0x396   :  { %v721_v28 = vpop.xlane.xlu0 %720 }
 0x397   :  { %v744_v57 = vmul.f32 0.00390625, %v721_v28 }
 0x399   :  { %v6726_v13 = vsub.f32 %v6538_v52, %v744_v57  ;;  %v6729_v60 = vsub.f32 %v6543_v43, %v744_v57 }
 0x39a   :  { %v724_v62 = vpop.xlane.xlu1 %723 }
 0x39b   :  { %v768_v14 = vmul.f32 %v6726_v13, %v6726_v13  ;;  %v769_v42 = vmul.f32 %v6729_v60, %v6729_v60  ;;  %v745_v39 = vmul.f32 0.00390625, %v724_v62 }
 0x39d   :  { %v6736_v35 = vsub.f32 %v6550_v49, %v745_v39  ;;  %v6739_v25 = vsub.f32 %v6555_v31, %v745_v39  ;;  %v784_v7 = vadd.f32 %v769_v42, %v768_v14 }
 0x39e   :  { %v727_v52 = vpop.xlane.xlu0 %726 }
 0x39f   :  { %v770_v43 = vmul.f32 %v6736_v35, %v6736_v35  ;;  %v771_v45 = vmul.f32 %v6739_v25, %v6739_v25  ;;  %v746_v18 = vmul.f32 0.00390625, %v727_v52  ;;  %785 = vadd.xlane.f32.xlu1 %v784_v7 }
 0x3a1   :  { %v6746_v41 = vsub.f32 %v6562_v50, %v746_v18  ;;  %v6749_v48 = vsub.f32 %v6567_v55, %v746_v18  ;;  %v787_v49 = vadd.f32 %v771_v45, %v770_v43 }
 0x3a2   :  { %v730_v44 = vpop.xlane.xlu0 %729 }
 0x3a3   :  { %v772_v31 = vmul.f32 %v6746_v41, %v6746_v41  ;;  %v773_v58 = vmul.f32 %v6749_v48, %v6749_v48  ;;  %v747_v19 = vmul.f32 0.00390625, %v730_v44  ;;  %788 = vadd.xlane.f32.xlu0 %v787_v49 }
 0x3a5   :  { %v6756_v51 = vsub.f32 %v6574_v27, %v747_v19  ;;  %v6759_v28 = vsub.f32 %v6579_v30, %v747_v19  ;;  %v790_v50 = vadd.f32 %v773_v58, %v772_v31  ;;  %v6785_v31 = vpop.permute.xlu1 %869 }
 0x3a7   :  { %v774_v55 = vmul.f32 %v6756_v51, %v6756_v51  ;;  %v775_v57 = vmul.f32 %v6759_v28, %v6759_v28  ;;  %791 = vadd.xlane.f32.xlu1 %v790_v50 }
 0x3a9   :  { %v793_v62 = vadd.f32 %v775_v57, %v774_v55 }
 0x3aa   :  { %v736_v14 = vpop.xlane.xlu0 %735 }
 0x3ab   :  { %v749_v42 = vmul.f32 0.00390625, %v736_v14  ;;  %794 = vadd.xlane.f32.xlu0 %v793_v62 }
 0x3ad   :  { %v6766_v39 = vsub.f32 %v6590_v17, %v749_v42  ;;  %v6769_v27 = vsub.f32 %v6595_v16, %v749_v42 }
 0x3af   :  { %v778_v30 = vmul.f32 %v6766_v39, %v6766_v39  ;;  %v779_v7 = vmul.f32 %v6769_v27, %v6769_v27 }
 0x3b1   :  { %v799_v52 = vadd.f32 %v779_v7, %v778_v30 }
 0x3b2   :  { %v742_v43 = vpop.xlane.xlu0 %741 }
 0x3b3   :  { %v751_v45 = vmul.f32 0.00390625, %v742_v43  ;;  %800 = vadd.xlane.f32.xlu0 %v799_v52 }
 0x3b5   :  { %v6776_v18 = vsub.f32 %v6614_v54, %v751_v45  ;;  %v6779_v49 = vsub.f32 %v6619_v24, %v751_v45  ;;  %v4903_v54 = vld [vmem:[%s7386_s8 + $0x18] sm:$0xff] }
 0x3b7   :  { %v782_v17 = vmul.f32 %v6776_v18, %v6776_v18  ;;  %v783_v16 = vmul.f32 %v6779_v49, %v6779_v49 }
 0x3b9   :  { %v805_v44 = vadd.f32 %v783_v16, %v782_v17 }
 0x3ba   :  { %v6825_v43 = vpop.permute.xlu0 %913 }
 0x3bb   :  { %806 = vadd.xlane.f32.xlu0 %v805_v44 }
 0x3bf   :  { %v854_v17 = vpop.permute.xlu0 %853 }
 0x3c3   :  { %v6831_v44 = vpop.permute.xlu0 %877 }
 0x3cf   :  { %v733_v58 = vpop.xlane.xlu1 %732 }
 0x3d0   :  { %v748_v19 = vmul.f32 0.00390625, %v733_v58 }
 0x3d1   :  { %2820 = vperm.xlu0 %4645, %v4903_v54  }
 0x3d2   :  { %v6791_v24 = vsub.f32 %v6657_v12, %v748_v19  ;;  %v6794_v50 = vsub.f32 %v6663_v40, %v748_v19  ;;  %v6835_v19 = vpop.permute.xlu0 %2808 }
 0x3d3   :  { %v739_v55 = vpop.xlane.xlu1 %738 }
 0x3d4   :  { %v776_v57 = vmul.f32 %v6791_v24, %v6791_v24  ;;  %v777_v62 = vmul.f32 %v6794_v50, %v6794_v50  ;;  %v750_v14 = vmul.f32 0.00390625, %v739_v55 }
 0x3d5   :  { %2828 = vperm.xlu0 %4645, %v6607_v23   ;;  %v4904_v23 = vld [vmem:[%s7386_s8 + $0x10] sm:$0xff] }
 0x3d6   :  { %v6802_v42 = vsub.f32 %v6674_v2, %v750_v14  ;;  %v6805_v30 = vsub.f32 %v6680_v22, %v750_v14  ;;  %v796_v12 = vadd.f32 %v777_v62, %v776_v57  ;;  %v4905_v2 = vld [vmem:[%s7386_s8 + $0x20] sm:$0xff] }
 0x3d7   :  { %v6821_v22 = vpop.permute.xlu1 %917 }
 0x3d8   :  { %v780_v40 = vmul.f32 %v6802_v42, %v6802_v42  ;;  %v781_v7 = vmul.f32 %v6805_v30, %v6805_v30  ;;  %797 = vadd.xlane.f32.xlu1 %v796_v12 }
 0x3d9   :  { %2836 = vperm.xlu0 %4645, %v6690_v6  }
 0x3da   :  { %v802_v52 = vadd.f32 %v781_v7, %v780_v40 }
 0x3db   :  { %v6823_v6 = vpop.permute.xlu1 %873 }
 0x3dc   :  { %803 = vadd.xlane.f32.xlu1 %v802_v52 }
 0x3dd   :  { %4648 = vset.pattern.permute.xlu0 %v4922_v1 }
 0x3e0   :  { %v6827_v45 = vpop.permute.xlu1 %921 }
 0x3e4   :  { %v6829_v16 = vpop.permute.xlu1 %925 }
 0x3e9   :  { %v6833_v58 = vpop.permute.xlu1 %2812 }
 0x3ed   :  { %2816 = vperm.xlu1 %4646, %v4904_v23  }
 0x3f1   :  { %2824 = vperm.xlu1 %4646, %v4905_v2  }
 0x3f5   :  { %2832 = vperm.xlu1 %4646, %v6703_v15  }
 0x3f9   :  { %4647 = vset.pattern.permute.xlu1 %v4922_v1 }
 0x42c   :  { %v786_v15 = vpop.xlane.xlu1 %785 }
 0x42d   :  { %v808_v54 = vmul.f32 0.00390625, %v786_v15 }
 0x42f   :  { %v816_v1 = vadd.f32 1e-05, %v808_v54 }
 0x430   :  { %v789_v55 = vpop.xlane.xlu0 %788 }
 0x431   :  { %4717 = vrsqrt.f32 %v816_v1  ;;  %v809_v57 = vmul.f32 0.00390625, %v789_v55 }
 0x433   :  { %v817_v62 = vadd.f32 1e-05, %v809_v57 }
 0x434   :  { %v792_v14 = vpop.xlane.xlu1 %791 }
 0x435   :  { %4719 = vrsqrt.f32 %v817_v62  ;;  %v810_v12 = vmul.f32 0.00390625, %v792_v14 }
 0x437   :  { %v818_v40 = vadd.f32 1e-05, %v810_v12 }
 0x438   :  { %v795_v7 = vpop.xlane.xlu0 %794 }
 0x439   :  { %4721 = vrsqrt.f32 %v818_v40  ;;  %v811_v52 = vmul.f32 0.00390625, %v795_v7 }
 0x43b   :  { %v4718_v23 = vpop.eup %4717  ;;  %v819_v2 = vadd.f32 1e-05, %v811_v52 }
 0x43c   :  { %v832_v46 = vmul.f32 %v4718_v23, %v6726_v13  ;;  %v833_v38 = vmul.f32 %v4718_v23, %v6729_v60 }
 0x43d   :  { %4723 = vrsqrt.f32 %v819_v2 }
 0x43e   :  { %v880_v15 = vmul.f32 %v6709_v11, %v832_v46  ;;  %v881_v54 = vmul.f32 %v6709_v11, %v833_v38 }
 0x43f   :  { %v4720_v1 = vpop.eup %4719 }
 0x440   :  { %v801_v55 = vpop.xlane.xlu0 %800  ;;  %v6842_v57 = vadd.f32 %v6711_v56, %v880_v15  ;;  %v6845_v62 = vadd.f32 %v6711_v56, %v881_v54  ;;  %v834_v14 = vmul.f32 %v4720_v1, %v6736_v35  ;;  %v835_v12 = vmul.f32 %v4720_v1, %v6739_v25 }
 0x441   :  { %v813_v13 = vmul.f32 0.00390625, %v801_v55 }
 0x442   :  { %v2863_v60 = vadd.f32 %v6845_v62, %v6842_v57  ;;  %v882_v40 = vmul.f32 %v854_v17, %v834_v14  ;;  %v883_v46 = vmul.f32 %v854_v17, %v835_v12 }
 0x443   :  { %v4722_v7 = vpop.eup %4721  ;;  %v821_v38 = vadd.f32 1e-05, %v813_v13 }
 0x444   :  { %2864 = vadd.xlane.f32.xlu1 %v2863_v60  ;;  %v6852_v11 = vadd.f32 %v6713_v63, %v882_v40  ;;  %v6855_v52 = vadd.f32 %v6713_v63, %v883_v46  ;;  %v836_v56 = vmul.f32 %v4722_v7, %v6746_v41  ;;  %v837_v35 = vmul.f32 %v4722_v7, %v6749_v48 }
 0x445   :  { %4725 = vrsqrt.f32 %v821_v38 }
 0x446   :  { %v2866_v25 = vadd.f32 %v6855_v52, %v6852_v11  ;;  %v884_v23 = vmul.f32 %v6715_v0, %v836_v56  ;;  %v885_v17 = vmul.f32 %v6715_v0, %v837_v35 }
 0x447   :  { %v4724_v2 = vpop.eup %4723 }
 0x448   :  { %2867 = vadd.xlane.f32.xlu0 %v2866_v25  ;;  %v807_v15 = vpop.xlane.xlu0 %806  ;;  %v6864_v54 = vadd.f32 %v6719_v47, %v884_v23  ;;  %v6867_v63 = vadd.f32 %v6719_v47, %v885_v17  ;;  %v838_v41 = vmul.f32 %v4724_v2, %v6756_v51  ;;  %v839_v48 = vmul.f32 %v4724_v2, %v6759_v28 }
 0x449   :  { %v815_v1 = vmul.f32 0.00390625, %v807_v15  ;;  %v6907_v17 = vadd.f32 %v6628_v9, %v6833_v58 }
 0x44a   :  { %v2869_v55 = vadd.f32 %v6867_v63, %v6864_v54  ;;  %v886_v14 = vmul.f32 %v6717_v53, %v838_v41  ;;  %v887_v0 = vmul.f32 %v6717_v53, %v839_v48 }
 0x44b   :  { %v823_v12 = vadd.f32 1e-05, %v815_v1 }
 0x44c   :  { %2870 = vadd.xlane.f32.xlu0 %v2869_v55  ;;  %v6876_v13 = vadd.f32 %v6721_v20, %v886_v14  ;;  %v6879_v47 = vadd.f32 %v6721_v20, %v887_v0 }
 0x44d   :  { %4727 = vrsqrt.f32 %v823_v12 }
 0x44e   :  { %v2872_v51 = vadd.f32 %v6879_v47, %v6876_v13 }
 0x44f   :  { %v4726_v28 = vpop.eup %4725 }
 0x450   :  { %2873 = vadd.xlane.f32.xlu1 %v2872_v51  ;;  %v842_v60 = vmul.f32 %v4726_v28, %v6766_v39  ;;  %v843_v40 = vmul.f32 %v4726_v28, %v6769_v27 }
 0x452   :  { %v890_v53 = vmul.f32 %v6785_v31, %v842_v60  ;;  %v891_v46 = vmul.f32 %v6785_v31, %v843_v40  ;;  %v2821_v31 = vpop.permute.xlu0 %2820 }
 0x453   :  { %v6918_v15 = vadd.f32 %v6636_v29, %v2821_v31 }
 0x454   :  { %v6888_v7 = vadd.f32 %v6821_v22, %v890_v53  ;;  %v6891_v20 = vadd.f32 %v6821_v22, %v891_v46 }
 0x456   :  { %7405 = vst [vmem:[#allocation3_spill] sm:$0xff] %v6891_v20  ;;  %v2878_v38 = vadd.f32 %v6891_v20, %v6888_v7 }
 0x457   :  { %v4728_v56 = vpop.eup %4727 }
 0x458   :  { %2879 = vadd.xlane.f32.xlu1 %v2878_v38  ;;  %v846_v35 = vmul.f32 %v4728_v56, %v6776_v18  ;;  %v847_v39 = vmul.f32 %v4728_v56, %v6779_v49  ;;  %v6911_v18 = vadd.f32 %v6630_v3, %v6833_v58 }
 0x45a   :  { %v894_v27 = vmul.f32 %v6831_v44, %v846_v35  ;;  %v895_v25 = vmul.f32 %v6831_v44, %v847_v39  ;;  %v2829_v44 = vpop.permute.xlu0 %2828  ;;  %v2898_v2 = vadd.f32 %v6911_v18, %v6907_v17 }
 0x45b   :  { %v6924_v9 = vadd.f32 %v6644_v37, %v2829_v44  ;;  %v6927_v3 = vadd.f32 %v6646_v59, %v2829_v44 }
 0x45c   :  { %v6900_v23 = vadd.f32 %v6829_v16, %v894_v27  ;;  %v6903_v22 = vadd.f32 %v6829_v16, %v895_v25  ;;  %v6921_v16 = vadd.f32 %v6638_v8, %v2821_v31 }
 0x45d   :  { %v2910_v29 = vadd.f32 %v6927_v3, %v6924_v9 }
 0x45e   :  { %7406 = vst [vmem:[#allocation4_spill] sm:$0xff] %v6900_v23  ;;  %7407 = vst [vmem:[#allocation5_spill] sm:$0xff] %v6903_v22  ;;  %v2884_v49 = vadd.f32 %v6903_v22, %v6900_v23  ;;  %v2904_v41 = vadd.f32 %v6921_v16, %v6918_v15  ;;  %v2837_v1 = vpop.permute.xlu0 %2836 }
 0x45f   :  { %v6934_v14 = vadd.f32 %v6665_v5, %v2837_v1  ;;  %v6937_v37 = vadd.f32 %v6667_v33, %v2837_v1 }
 0x460   :  { %2885 = vadd.xlane.f32.xlu1 %v2884_v49 }
 0x461   :  { %7408 = vst [vmem:[#allocation6_spill] sm:$0xff] %v6934_v14  ;;  %7409 = vst [vmem:[#allocation7_spill] sm:$0xff] %v6937_v37  ;;  %v2916_v12 = vadd.f32 %v6937_v37, %v6934_v14 }
 0x464   :  { %2899 = vadd.xlane.f32.xlu1 %v2898_v2 }
 0x465   :  { %v798_v58 = vpop.xlane.xlu1 %797 }
 0x466   :  { %v812_v48 = vmul.f32 0.00390625, %v798_v58 }
 0x468   :  { %v820_v55 = vadd.f32 1e-05, %v812_v48  ;;  %2905 = vadd.xlane.f32.xlu1 %v2904_v41 }
 0x469   :  { %v804_v8 = vpop.xlane.xlu1 %803 }
 0x46a   :  { %4729 = vrsqrt.f32 %v820_v55  ;;  %v814_v59 = vmul.f32 0.00390625, %v804_v8 }
 0x46c   :  { %v822_v0 = vadd.f32 1e-05, %v814_v59  ;;  %2911 = vadd.xlane.f32.xlu1 %v2910_v29 }
 0x46d   :  { %v2817_v39 = vpop.permute.xlu1 %2816 }
 0x46e   :  { %4731 = vrsqrt.f32 %v822_v0  ;;  %v6976_v31 = vadd.f32 %v6632_v21, %v2817_v39 }
 0x470   :  { %2917 = vadd.xlane.f32.xlu1 %v2916_v12 }
 0x474   :  { %v4730_v51 = vpop.eup %4729 }
 0x475   :  { %v840_v28 = vmul.f32 %v4730_v51, %v6791_v24  ;;  %v841_v60 = vmul.f32 %v4730_v51, %v6794_v50 }
 0x477   :  { %v888_v5 = vmul.f32 %v6723_v34, %v840_v28  ;;  %v889_v40 = vmul.f32 %v6723_v34, %v841_v60 }
 0x478   :  { %v4732_v33 = vpop.eup %4731 }
 0x479   :  { %v6946_v53 = vadd.f32 %v6825_v43, %v888_v5  ;;  %v6949_v46 = vadd.f32 %v6825_v43, %v889_v40  ;;  %v844_v38 = vmul.f32 %v4732_v33, %v6802_v42  ;;  %v845_v56 = vmul.f32 %v4732_v33, %v6805_v30 }
 0x47a   :  { %v6965_v42 = vadd.f32 %v6622_v10, %v6835_v19  ;;  %v6969_v30 = vadd.f32 %v6626_v32, %v6835_v19 }
 0x47b   :  { %v2875_v24 = vadd.f32 %v6949_v46, %v6946_v53  ;;  %v892_v50 = vmul.f32 %v6823_v6, %v844_v38  ;;  %v893_v35 = vmul.f32 %v6823_v6, %v845_v56  ;;  %v2825_v6 = vpop.permute.xlu1 %2824 }
 0x47c   :  { %v2895_v25 = vadd.f32 %v6969_v30, %v6965_v42  ;;  %v6984_v32 = vadd.f32 %v6640_v26, %v2825_v6  ;;  %v6987_v19 = vadd.f32 %v6642_v36, %v2825_v6  ;;  %v7002_v26 = vld [vmem:[%s7391_s7] sm:$0xff] }
 0x47d   :  { %2876 = vadd.xlane.f32.xlu0 %v2875_v24  ;;  %v6958_v34 = vadd.f32 %v6827_v45, %v892_v50  ;;  %v6961_v27 = vadd.f32 %v6827_v45, %v893_v35  ;;  %v6979_v45 = vadd.f32 %v6634_v4, %v2817_v39  ;;  %v7413_v4 = vld [vmem:[#allocation2_spill] sm:$0xff]  ;;  %4252 = vmatprep.mubr.msk.f32.mxu0 %vm242_vm0, %v7002_v26 }
 0x47e   :  { %v2907_v44 = vadd.f32 %v6987_v19, %v6984_v32 }
 0x47f   :  { %7410 = vst [vmem:[#allocation8_spill] sm:$0xff] %v6958_v34  ;;  %7411 = vst [vmem:[#allocation9_spill] sm:$0xff] %v6961_v27  ;;  %v2881_v43 = vadd.f32 %v6961_v27, %v6958_v34  ;;  %v2901_v10 = vadd.f32 %v6979_v45, %v6976_v31  ;;  %v2833_v49 = vpop.permute.xlu1 %2832 }
 0x480   :  { %v6992_v21 = vadd.f32 %v6648_v61, %v2833_v49  ;;  %v6995_v2 = vadd.f32 %v7413_v4, %v2833_v49  ;;  %v7044_v49 = vld [vmem:[%s7391_s7 + $0x10] sm:$0xff] }
 0x481   :  { %2882 = vadd.xlane.f32.xlu0 %v2881_v43 }
 0x482   :  { %7412 = vst [vmem:[#allocation10_spill] sm:$0xff] %v6992_v21  ;;  %7414 = vst [vmem:[#allocation2_spill] sm:$0xff] %v6995_v2  ;;  %v2913_v58 = vadd.f32 %v6995_v2, %v6992_v21 }
 0x485   :  { %2896 = vadd.xlane.f32.xlu0 %v2895_v25  ;;  %v7037_v25 = vld [vmem:[%s7391_s7 + $0x8] sm:$0xff] }
 0x489   :  { %2902 = vadd.xlane.f32.xlu0 %v2901_v10 }
 0x48d   :  { %2908 = vadd.xlane.f32.xlu0 %v2907_v44 }
 0x491   :  { %2914 = vadd.xlane.f32.xlu0 %v2913_v58 }
 0x4d1   :  { %v2865_v36 = vpop.xlane.xlu1 %2864 }
 0x4d2   :  { %v7006_v61 = vmul.f32 0.00390625, %v2865_v36 }
 0x4d5   :  { %v2868_v41 = vpop.xlane.xlu0 %2867 }
 0x4d6   :  { %v7008_v48 = vmul.f32 0.00390625, %v2868_v41  ;;  %v7057_v41 = vld [vmem:[%s7391_s7 + $0x18] sm:$0xff] }
 0x4d8   :  { %v4412_v1 = vpack.c.bf16 %v7008_v48, %v7006_v61 }
 0x4d9   :  { %v2871_v55 = vpop.xlane.xlu0 %2870 }
 0x4da   :  { %4413 = vmatprep.subr.bf16.mxu0 %v4412_v1  ;;  %v7012_v8 = vmul.f32 0.00390625, %v2871_v55  ;;  %v7064_v55 = vld [vmem:[%s7391_s7 + $0x20] sm:$0xff] }
 0x4db   :  { %4415 = vmatpush3.bf16.msra.mxu0 %v4412_v1 }
 0x4dd   :  { %v2874_v29 = vpop.xlane.xlu1 %2873 }
 0x4de   :  { %v7014_v59 = vmul.f32 0.00390625, %v2874_v29 }
 0x4e0   :  { %v4416_v0 = vpack.c.bf16 %v7014_v59, %v7012_v8 }
 0x4e2   :  { %4417 = vmatprep.subr.bf16.mxu0 %v4416_v0 }
 0x4e3   :  { %4419 = vmatpush3.bf16.msra.mxu0 %v4416_v0 }
 0x4e5   :  { %v2880_v12 = vpop.xlane.xlu1 %2879 }
 0x4e6   :  { %v7018_v5 = vmul.f32 0.00390625, %v2880_v12 }
 0x4ed   :  { %v2886_v51 = vpop.xlane.xlu1 %2885 }
 0x4ee   :  { %v7024_v56 = vmul.f32 0.00390625, %v2886_v51 }
 0x4f1   :  { %v2900_v28 = vpop.xlane.xlu1 %2899 }
 0x4f2   :  { %v7030_v43 = vmul.f32 0.00390625, %v2900_v28  ;;  %v7077_v28 = vld [vmem:[%s7391_s7 + $0x28] sm:$0xff] }
 0x4f5   :  { %v2906_v50 = vpop.xlane.xlu1 %2905 }
 0x4f6   :  { %v7046_v58 = vmul.f32 0.00390625, %v2906_v50 }
 0x4f9   :  { %v2912_v44 = vpop.xlane.xlu1 %2911 }
 0x4fa   :  { %v7066_v0 = vmul.f32 0.00390625, %v2912_v44 }
 0x4fd   :  { %v2918_v51 = vpop.xlane.xlu1 %2917 }
 0x4fe   :  { %v7086_v50 = vmul.f32 0.00390625, %v2918_v51 }
 0x50a   :  { %v2877_v60 = vpop.xlane.xlu0 %2876 }
 0x50b   :  { %v7020_v40 = vmul.f32 0.00390625, %v2877_v60 }
 0x50d   :  { %v4420_v33 = vpack.c.bf16 %v7018_v5, %v7020_v40 }
 0x50e   :  { %v2883_v38 = vpop.xlane.xlu0 %2882 }
 0x50f   :  { %v7026_v24 = vmul.f32 0.00390625, %v2883_v38  ;;  %4421 = vmatprep.subr.bf16.mxu0 %v4420_v33 }
 0x510   :  { %4423 = vmatpush3.bf16.msra.mxu0 %v4420_v33  ;;  %v7084_v33 = vld [vmem:[%s7391_s7 + $0x30] sm:$0xff] }
 0x511   :  { %v4424_v35 = vpack.c.bf16 %v7024_v56, %v7026_v24 }
 0x512   :  { %v2897_v39 = vpop.xlane.xlu0 %2896 }
 0x513   :  { %v7032_v6 = vmul.f32 0.00390625, %v2897_v39  ;;  %4425 = vmatprep.subr.bf16.mxu0 %v4424_v35  ;;  %v7097_v39 = vld [vmem:[%s7391_s7 + $0x38] sm:$0xff] }
 0x514   :  { %4427 = vmatpush3.bf16.msra.mxu0 %v4424_v35 }
 0x515   :  { %v4428_v10 = vpack.c.bf16 %v7030_v43, %v7032_v6 }
 0x516   :  { %v2903_v4 = vpop.xlane.xlu0 %2902 }
 0x517   :  { %v7048_v36 = vmul.f32 0.00390625, %v2903_v4  ;;  %4253 = vmatmul.mubr.msk.f32.vlgmr.msra.gmra.mrb[72].mxu0 %vm242_vm0, %v7037_v25  ;;  %4429 = vmatprep.subr.bf16.mxu0 %v4428_v10 }
 0x518   :  { %4431 = vmatpush3.bf16.msra.mxu0 %v4428_v10  ;;  %4255 = vmatprep.mubr.msk.f32.mxu0 %vm242_vm0, %v7044_v49 }
 0x519   :  { %v4432_v1 = vpack.c.bf16 %v7046_v58, %v7048_v36 }
 0x51a   :  { %v2909_v29 = vpop.xlane.xlu0 %2908 }
 0x51b   :  { %v7068_v12 = vmul.f32 0.00390625, %v2909_v29  ;;  %4256 = vmatmul.mubr.msk.f32.gmra.mrb[74].mxu0 %vm242_vm0, %v7057_v41  ;;  %4433 = vmatprep.subr.bf16.mxu0 %v4432_v1 }
 0x51c   :  { %4435 = vmatpush3.bf16.msra.mxu0 %v4432_v1  ;;  %4258 = vmatprep.mubr.msk.f32.mxu0 %vm242_vm0, %v7064_v55 }
 0x51d   :  { %v4436_v60 = vpack.c.bf16 %v7066_v0, %v7068_v12 }
 0x51e   :  { %v2915_v38 = vpop.xlane.xlu0 %2914 }
 0x51f   :  { %v7088_v35 = vmul.f32 0.00390625, %v2915_v38  ;;  %4259 = vmatmul.mubr.msk.f32.gmra.mrb[76].mxu0 %vm242_vm0, %v7077_v28  ;;  %4437 = vmatprep.subr.bf16.mxu0 %v4436_v60 }
 0x520   :  { %4439 = vmatpush3.bf16.msra.mxu0 %v4436_v60  ;;  %4261 = vmatprep.mubr.msk.f32.mxu0 %vm242_vm0, %v7084_v33 }
 0x521   :  { %v4440_v10 = vpack.c.bf16 %v7086_v50, %v7088_v35 }
 0x523   :  { %4262 = vmatmul.mubr.msk.f32.gmra.mrb[78].mxu0 %vm242_vm0, %v7097_v39  ;;  %4441 = vmatprep.subr.bf16.mxu0 %v4440_v10 }
 0x524   :  { %4443 = vmatpush3.bf16.msra.mxu0 %v4440_v10  ;;  %4280 = vmatprep.mubr.msk.f32.mxu0 %vm242_vm0, %v7002_v26 }
 0x527   :  { %4281 = vmatmul.mubr.msk.f32.vlgmr.msra.gmra.mrb[80].mxu0 %vm242_vm0, %v7037_v25 }
 0x528   :  { %4283 = vmatprep.mubr.msk.f32.mxu0 %vm242_vm0, %v7044_v49 }
 0x52b   :  { %4284 = vmatmul.mubr.msk.f32.gmra.mrb[82].mxu0 %vm242_vm0, %v7057_v41 }
 0x52c   :  { %4286 = vmatprep.mubr.msk.f32.mxu0 %vm242_vm0, %v7064_v55 }
 0x52f   :  { %4287 = vmatmul.mubr.msk.f32.gmra.mrb[84].mxu0 %vm242_vm0, %v7077_v28 }
 0x530   :  { %4289 = vmatprep.mubr.msk.f32.mxu0 %vm242_vm0, %v7084_v33 }
 0x533   :  { %4290 = vmatmul.mubr.msk.f32.gmra.mrb[86].mxu0 %vm242_vm0, %v7097_v39 }
 0x534   :  { %4308 = vmatprep.mubr.msk.f32.mxu0 %vm242_vm0, %v7002_v26 }
 0x5ea   :  { %v4254_v44 = vpop.f32.mrb[72].mxu0 }
 0x5eb   :  { %v3057_v4 = vmul.f32 0.25, %v4254_v44  ;;  %v3017_v1 = vpop.f32.mrb[73].mxu0 }
 0x5ec   :  { %v3056_v29 = vmul.f32 0.25, %v3017_v1 }
 0x5ed   :  { %v3178_v51 = vsub.f32 %v7008_v48, %v3057_v4 }
 0x5ee   :  { %v3177_v60 = vsub.f32 %v7006_v61, %v3056_v29  ;;  %v4257_v38 = vpop.f32.mrb[74].mxu0 }
 0x5ef   :  { %v3187_v10 = vmul.f32 1.442695, %v3178_v51  ;;  %v3059_v22 = vmul.f32 0.25, %v4257_v38  ;;  %v3027_v23 = vpop.f32.mrb[75].mxu0 }
 0x5f0   :  { %v3185_v37 = vmul.f32 1.442695, %v3177_v60  ;;  %v3058_v14 = vmul.f32 0.25, %v3027_v23 }
 0x5f1   :  { %4733 = vpow2.f32 %v3187_v10  ;;  %v3180_v2 = vsub.f32 %v7014_v59, %v3059_v22 }
 0x5f2   :  { %4735 = vpow2.f32 %v3185_v37  ;;  %v3179_v21 = vsub.f32 %v7012_v8, %v3058_v14  ;;  %v4260_v27 = vpop.f32.mrb[76].mxu0 }
 0x5f3   :  { %v3191_v44 = vmul.f32 1.442695, %v3180_v2  ;;  %v3061_v34 = vmul.f32 0.25, %v4260_v27  ;;  %v3037_v1 = vpop.f32.mrb[77].mxu0 }
 0x5f4   :  { %v3189_v20 = vmul.f32 1.442695, %v3179_v21  ;;  %v3060_v48 = vmul.f32 0.25, %v3037_v1 }
 0x5f5   :  { %4737 = vpow2.f32 %v3191_v44  ;;  %v3182_v61 = vsub.f32 %v7018_v5, %v3061_v34 }
 0x5f6   :  { %4739 = vpow2.f32 %v3189_v20  ;;  %v3181_v4 = vsub.f32 %v7020_v40, %v3060_v48  ;;  %v4263_v29 = vpop.f32.mrb[78].mxu0 }
 0x5f7   :  { %v3195_v23 = vmul.f32 1.442695, %v3182_v61  ;;  %v3063_v51 = vmul.f32 0.25, %v4263_v29  ;;  %v3047_v60 = vpop.f32.mrb[79].mxu0 }
 0x5f8   :  { %v3193_v22 = vmul.f32 1.442695, %v3181_v4  ;;  %v3062_v37 = vmul.f32 0.25, %v3047_v60 }
 0x5f9   :  { %4741 = vpow2.f32 %v3195_v23  ;;  %v3184_v14 = vsub.f32 %v7024_v56, %v3063_v51 }
 0x5fa   :  { %4743 = vpow2.f32 %v3193_v22  ;;  %v3183_v27 = vsub.f32 %v7026_v24, %v3062_v37  ;;  %v4282_v21 = vpop.f32.mrb[80].mxu0 }
 0x5fb   :  { %v7129_v2 = vpop.eup %4733  ;;  %v3199_v8 = vmul.f32 1.442695, %v3184_v14  ;;  %v3170_v34 = vmul.f32 0.25, %v4282_v21  ;;  %v3130_v20 = vpop.f32.mrb[81].mxu0 }
 0x5fc   :  { %v7131_v59 = vpop.eup %4735  ;;  %v3197_v5 = vmul.f32 1.442695, %v3183_v27  ;;  %v3169_v40 = vmul.f32 0.25, %v3130_v20 }
 0x5fd   :  { %4745 = vpow2.f32 %v3199_v8  ;;  %v3202_v38 = vsub.f32 %v7030_v43, %v3170_v34  ;;  %v4444_v10 = vpack.c.bf16 %v7129_v2, %v7131_v59 }
 0x5fe   :  { %4747 = vpow2.f32 %v3197_v5  ;;  %v3201_v56 = vsub.f32 %v7032_v6, %v3169_v40  ;;  %v4285_v24 = vpop.f32.mrb[82].mxu0 }
 0x5ff   :  { %v7137_v44 = vpop.eup %4737  ;;  %v3211_v1 = vmul.f32 1.442695, %v3202_v38  ;;  %v3172_v48 = vmul.f32 0.25, %v4285_v24  ;;  %v3140_v61 = vpop.f32.mrb[83].mxu0  ;;  %4445 = vmatprep.subr.bf16.mxu0 %v4444_v10 }
 0x600   :  { %v7139_v4 = vpop.eup %4739  ;;  %v3209_v29 = vmul.f32 1.442695, %v3201_v56  ;;  %v3171_v23 = vmul.f32 0.25, %v3140_v61  ;;  %4447 = vmatpush3.bf16.msra.mxu0 %v4444_v10 }
 0x601   :  { %4749 = vpow2.f32 %v3211_v1  ;;  %v3204_v43 = vsub.f32 %v7046_v58, %v3172_v48  ;;  %v4448_v51 = vpack.c.bf16 %v7137_v44, %v7139_v4 }
 0x602   :  { %4751 = vpow2.f32 %v3209_v29  ;;  %v3203_v6 = vsub.f32 %v7048_v36, %v3171_v23  ;;  %v4288_v60 = vpop.f32.mrb[84].mxu0 }
 0x603   :  { %v7145_v22 = vpop.eup %4741  ;;  %v3215_v37 = vmul.f32 1.442695, %v3204_v43  ;;  %v3174_v14 = vmul.f32 0.25, %v4288_v60  ;;  %v3150_v27 = vpop.f32.mrb[85].mxu0  ;;  %4449 = vmatprep.subr.bf16.mxu0 %v4448_v51 }
 0x604   :  { %v7147_v21 = vpop.eup %4743  ;;  %v3213_v8 = vmul.f32 1.442695, %v3203_v6  ;;  %v3173_v34 = vmul.f32 0.25, %v3150_v27  ;;  %4451 = vmatpush3.bf16.msra.mxu0 %v4448_v51 }
 0x605   :  { %4753 = vpow2.f32 %v3215_v37  ;;  %v3206_v58 = vsub.f32 %v7066_v0, %v3174_v14  ;;  %v4452_v20 = vpack.c.bf16 %v7145_v22, %v7147_v21 }
 0x606   :  { %4755 = vpow2.f32 %v3213_v8  ;;  %v3205_v36 = vsub.f32 %v7068_v12, %v3173_v34  ;;  %v4291_v5 = vpop.f32.mrb[86].mxu0 }
 0x607   :  { %v7153_v40 = vpop.eup %4745  ;;  %v3219_v38 = vmul.f32 1.442695, %v3206_v58  ;;  %v3176_v10 = vmul.f32 0.25, %v4291_v5  ;;  %v3160_v56 = vpop.f32.mrb[87].mxu0  ;;  %4453 = vmatprep.subr.bf16.mxu0 %v4452_v20 }
 0x608   :  { %v7155_v24 = vpop.eup %4747  ;;  %v3217_v1 = vmul.f32 1.442695, %v3205_v36  ;;  %v3175_v48 = vmul.f32 0.25, %v3160_v56  ;;  %4455 = vmatpush3.bf16.msra.mxu0 %v4452_v20  ;;  %v7415_v20 = vmov 0.0  }
 0x609   :  { %4757 = vpow2.f32 %v3219_v38  ;;  %v3208_v0 = vsub.f32 %v7086_v50, %v3176_v10  ;;  %v4456_v61 = vpack.c.bf16 %v7153_v40, %v7155_v24 }
 0x60a   :  { %4759 = vpow2.f32 %v3217_v1  ;;  %v3207_v12 = vsub.f32 %v7088_v35, %v3175_v48 }
 0x60b   :  { %v7161_v29 = vpop.eup %4749  ;;  %v3223_v23 = vmul.f32 1.442695, %v3208_v0  ;;  %4457 = vmatprep.subr.bf16.mxu0 %v4456_v61 }
 0x60c   :  { %v7163_v43 = vpop.eup %4751  ;;  %v3221_v51 = vmul.f32 1.442695, %v3207_v12  ;;  %4459 = vmatpush3.bf16.msra.mxu0 %v4456_v61 }
 0x60d   :  { %4761 = vpow2.f32 %v3223_v23  ;;  %v4460_v6 = vpack.c.bf16 %v7161_v29, %v7163_v43 }
 0x60e   :  { %4763 = vpow2.f32 %v3221_v51 }
 0x60f   :  { %v7167_v50 = vpop.eup %4753  ;;  %4309 = vmatmul.mubr.msk.f32.vlgmr.msra.gmra.mrb[88].mxu0 %vm242_vm0, %v7037_v25  ;;  %4461 = vmatprep.subr.bf16.mxu0 %v4460_v6 }
 0x610   :  { %v7171_v35 = vpop.eup %4755  ;;  %4463 = vmatpush3.bf16.msra.mxu0 %v4460_v6  ;;  %4311 = vmatprep.mubr.msk.f32.mxu0 %vm242_vm0, %v7044_v49 }
 0x611   :  { %v4464_v60 = vpack.c.bf16 %v7167_v50, %v7171_v35 }
 0x613   :  { %v7177_v37 = vpop.eup %4757  ;;  %4312 = vmatmul.mubr.msk.f32.gmra.mrb[90].mxu0 %vm242_vm0, %v7057_v41  ;;  %4465 = vmatprep.subr.bf16.mxu0 %v4464_v60 }
 0x614   :  { %v7181_v14 = vpop.eup %4759  ;;  %4467 = vmatpush3.bf16.msra.mxu0 %v4464_v60  ;;  %4314 = vmatprep.mubr.msk.f32.mxu0 %vm242_vm0, %v7064_v55 }
 0x615   :  { %v4468_v27 = vpack.c.bf16 %v7177_v37, %v7181_v14 }
 0x617   :  { %v7187_v8 = vpop.eup %4761  ;;  %4315 = vmatmul.mubr.msk.f32.gmra.mrb[92].mxu0 %vm242_vm0, %v7077_v28  ;;  %4469 = vmatprep.subr.bf16.mxu0 %v4468_v27 }
 0x618   :  { %v7191_v34 = vpop.eup %4763  ;;  %4471 = vmatpush3.bf16.msra.mxu0 %v4468_v27  ;;  %4317 = vmatprep.mubr.msk.f32.mxu0 %vm242_vm0, %v7084_v33 }
 0x619   :  { %v4472_v58 = vpack.c.bf16 %v7187_v8, %v7191_v34 }
 0x61b   :  { %4318 = vmatmul.mubr.msk.f32.gmra.mrb[94].mxu0 %vm242_vm0, %v7097_v39  ;;  %4473 = vmatprep.subr.bf16.mxu0 %v4472_v58 }
 0x61c   :  { %4475 = vmatpush3.bf16.msra.mxu0 %v4472_v58  ;;  %4336 = vmatprep.mubr.msk.f32.mxu0 %vm242_vm0, %v7002_v26 }
 0x61f   :  { %4337 = vmatmul.mubr.msk.f32.vlgmr.msra.gmra.mrb[96].mxu0 %vm242_vm0, %v7037_v25 }
 0x620   :  { %4339 = vmatprep.mubr.msk.f32.mxu0 %vm242_vm0, %v7044_v49 }
 0x623   :  { %4340 = vmatmul.mubr.msk.f32.gmra.mrb[98].mxu0 %vm242_vm0, %v7057_v41 }
 0x624   :  { %4342 = vmatprep.mubr.msk.f32.mxu0 %vm242_vm0, %v7064_v55 }
 0x627   :  { %4343 = vmatmul.mubr.msk.f32.gmra.mrb[100].mxu0 %vm242_vm0, %v7077_v28 }
 0x628   :  { %4345 = vmatprep.mubr.msk.f32.mxu0 %vm242_vm0, %v7084_v33 }
 0x62b   :  { %4346 = vmatmul.mubr.msk.f32.gmra.mrb[102].mxu0 %vm242_vm0, %v7097_v39 }
 0x62c   :  { %3659 = vmatprep.mubr.f32.mxu0 %v7415_v20 }
 0x6e2   :  { %v4310_v36 = vpop.f32.mrb[88].mxu0 }
 0x6e3   :  { %4765 = vrcp.f32 %v4310_v36  ;;  %v3291_v5 = vpop.f32.mrb[89].mxu0 }
 0x6e4   :  { %4767 = vrcp.f32 %v3291_v5 }
 0x6e6   :  { %v4313_v38 = vpop.f32.mrb[90].mxu0 }
 0x6e7   :  { %4769 = vrcp.f32 %v4313_v38  ;;  %v3301_v10 = vpop.f32.mrb[91].mxu0 }
 0x6e8   :  { %4771 = vrcp.f32 %v3301_v10 }
 0x6ea   :  { %v4316_v56 = vpop.f32.mrb[92].mxu0 }
 0x6eb   :  { %v3311_v1 = vpop.f32.mrb[93].mxu0 }
 0x6ec   :  { %4773 = vrcp.f32 %v3311_v1 }
 0x6ed   :  { %v4766_v48 = vpop.eup %4765  ;;  %4775 = vrcp.f32 %v4316_v56 }
 0x6ee   :  { %v4768_v0 = vpop.eup %4767  ;;  %v4319_v61 = vpop.f32.mrb[94].mxu0  ;;  %v3444_v12 = vmul.f32 %v4766_v48, %v7129_v2 }
 0x6ef   :  { %v3321_v23 = vpop.f32.mrb[95].mxu0  ;;  %v3443_v51 = vmul.f32 %v4768_v0, %v7131_v59 }
 0x6f0   :  { %4777 = vrcp.f32 %v3321_v23  ;;  %3474 = vperm.xlu1 %4647, %v3444_v12  }
 0x6f1   :  { %v4770_v6 = vpop.eup %4769  ;;  %4779 = vrcp.f32 %v4319_v61  ;;  %3469 = vperm.xlu0 %4648, %v3443_v51  }
 0x6f2   :  { %v4338_v60 = vpop.f32.mrb[96].mxu0  ;;  %v3446_v27 = vmul.f32 %v4770_v6, %v7137_v44  ;;  %v4772_v58 = vpop.eup %4771 }
 0x6f3   :  { %v3396_v36 = vpop.f32.mrb[97].mxu0  ;;  %4781 = vrcp.f32 %v4338_v60  ;;  %v3445_v10 = vmul.f32 %v4772_v58, %v7139_v4 }
 0x6f4   :  { %3484 = vperm.xlu1 %4647, %v3446_v27   ;;  %4783 = vrcp.f32 %v3396_v36 }
 0x6f6   :  { %v4774_v5 = vpop.eup %4773  ;;  %v4341_v38 = vpop.f32.mrb[98].mxu0 }
 0x6f7   :  { %v4776_v2 = vpop.eup %4775  ;;  %v3406_v56 = vpop.f32.mrb[99].mxu0  ;;  %v3447_v59 = vmul.f32 %v4774_v5, %v7147_v21 }
 0x6f8   :  { %3479 = vperm.xlu1 %4647, %v3445_v10   ;;  %v3448_v0 = vmul.f32 %v4776_v2, %v7145_v22 }
 0x6f9   :  { %3489 = vperm.xlu0 %4648, %v3447_v59  }
 0x6fa   :  { %v4778_v1 = vpop.eup %4777  ;;  %v4344_v48 = vpop.f32.mrb[100].mxu0 }
 0x6fb   :  { %v4780_v44 = vpop.eup %4779  ;;  %v3416_v61 = vpop.f32.mrb[101].mxu0  ;;  %v3449_v12 = vmul.f32 %v4778_v1, %v7155_v24 }
 0x6fc   :  { %4785 = vrcp.f32 %v3416_v61  ;;  %3494 = vperm.xlu1 %4647, %v3448_v0   ;;  %v3450_v23 = vmul.f32 %v4780_v44, %v7153_v40 }
 0x6fd   :  { %4787 = vrcp.f32 %v4341_v38  ;;  %3499 = vperm.xlu0 %4648, %v3449_v12   ;;  %v4782_v51 = vpop.eup %4781 }
 0x6fe   :  { %v4347_v4 = vpop.f32.mrb[102].mxu0  ;;  %v3460_v6 = vmul.f32 %v4782_v51, %v7161_v29  ;;  %v4784_v60 = vpop.eup %4783 }
 0x6ff   :  { %v3426_v21 = vpop.f32.mrb[103].mxu0  ;;  %v3459_v24 = vmul.f32 %v4784_v60, %v7163_v43 }
 0x700   :  { %4789 = vrcp.f32 %v3426_v21  ;;  %3504 = vperm.xlu1 %4647, %v3450_v23  }
 0x701   :  { %4791 = vrcp.f32 %v3406_v56 }
 0x702   :  { %4793 = vrcp.f32 %v4344_v48 }
 0x703   :  { %4795 = vrcp.f32 %v4347_v4 }
 0x704   :  { %3530 = vperm.xlu1 %4647, %v3460_v6  }
 0x706   :  { %v4786_v22 = vpop.eup %4785 }
 0x707   :  { %v4788_v27 = vpop.eup %4787  ;;  %v3463_v58 = vmul.f32 %v4786_v22, %v7181_v14 }
 0x708   :  { %3525 = vperm.xlu1 %4647, %v3459_v24   ;;  %v3462_v36 = vmul.f32 %v4788_v27, %v7167_v50 }
 0x709   :  { %3545 = vperm.xlu0 %4648, %v3463_v58  }
 0x70a   :  { %v4790_v40 = vpop.eup %4789 }
 0x70b   :  { %v4792_v5 = vpop.eup %4791  ;;  %v3465_v38 = vmul.f32 %v4790_v40, %v7191_v34 }
 0x70c   :  { %3540 = vperm.xlu1 %4647, %v3462_v36   ;;  %v3461_v29 = vmul.f32 %v4792_v5, %v7171_v35  ;;  %v4794_v10 = vpop.eup %4793 }
 0x70d   :  { %3555 = vperm.xlu0 %4648, %v3465_v38   ;;  %v3464_v43 = vmul.f32 %v4794_v10, %v7177_v37  ;;  %v4796_v2 = vpop.eup %4795 }
 0x70e   :  { %v3466_v14 = vmul.f32 %v4796_v2, %v7187_v8 }
 0x710   :  { %3535 = vperm.xlu1 %4647, %v3461_v29  }
 0x714   :  { %3550 = vperm.xlu1 %4647, %v3464_v43  }
 0x718   :  { %3560 = vperm.xlu1 %4647, %v3466_v14  }
 0x76f   :  { %v3475_v56 = vpop.permute.xlu1 %3474 }
 0x770   :  { %v3470_v48 = vpop.permute.xlu0 %3469  ;;  %v3509_v12 = vmul.f32 %v3475_v56, %v6907_v17  ;;  %v3510_v37 = vmul.f32 %v3475_v56, %v6911_v18 }
 0x771   :  { %v3507_v8 = vmul.f32 %v3470_v48, %v6965_v42  ;;  %v3508_v23 = vmul.f32 %v3470_v48, %v6969_v30 }
 0x773   :  { %v3485_v59 = vpop.permute.xlu1 %3484 }
 0x774   :  { %v3513_v42 = vmul.f32 %v3485_v59, %v6918_v15 }
 0x777   :  { %v3480_v1 = vpop.permute.xlu1 %3479 }
 0x778   :  { %v3490_v34 = vpop.permute.xlu0 %3489  ;;  %v3511_v30 = vmul.f32 %v3480_v1, %v6976_v31  ;;  %v3512_v36 = vmul.f32 %v3480_v1, %v6979_v45 }
 0x779   :  { %v3516_v2 = vmul.f32 %v3490_v34, %v6987_v19 }
 0x77b   :  { %v3495_v50 = vpop.permute.xlu1 %3494 }
 0x77c   :  { %v3500_v6 = vpop.permute.xlu0 %3499  ;;  %v3517_v31 = vmul.f32 %v3495_v50, %v6924_v9  ;;  %v3518_v45 = vmul.f32 %v3495_v50, %v6927_v3  ;;  %v7419_v9 = vld [vmem:[#allocation10_spill] sm:$0xff] }
 0x77d   :  { %v7420_v3 = vld [vmem:[#allocation2_spill] sm:$0xff] }
 0x77e   :  { %v3520_v50 = vmul.f32 %v3500_v6, %v7420_v3 }
 0x77f   :  { %v3505_v0 = vpop.permute.xlu1 %3504 }
 0x783   :  { %v3531_v44 = vpop.permute.xlu1 %3530 }
 0x784   :  { %v3565_v61 = vmul.f32 %v3531_v44, %v6852_v11  ;;  %v3566_v35 = vmul.f32 %v3531_v44, %v6855_v52  ;;  %v7417_v44 = vld [vmem:[#allocation8_spill] sm:$0xff] }
 0x786   :  { %v3581_v60 = vadd.f32 %v3565_v61, %v3509_v12  ;;  %v3582_v22 = vadd.f32 %v3566_v35, %v3510_v37  ;;  %v7418_v35 = vld [vmem:[#allocation9_spill] sm:$0xff]  ;;  %v7421_v37 = vld [vmem:[#allocation6_spill] sm:$0xff] }
 0x787   :  { %v3526_v4 = vpop.permute.xlu1 %3525 }
 0x788   :  { %v3563_v51 = vmul.f32 %v3526_v4, %v6842_v57  ;;  %v3564_v21 = vmul.f32 %v3526_v4, %v6845_v62  ;;  %v3546_v17 = vpop.permute.xlu0 %3545  ;;  %v3514_v57 = vmul.f32 %v3485_v59, %v6921_v16  ;;  %v3515_v16 = vmul.f32 %v3490_v34, %v6984_v32 }
 0x789   :  { %v3571_v29 = vmul.f32 %v3546_v17, %v6946_v53  ;;  %v7416_v53 = vld [vmem:[#allocation3_spill] sm:$0xff]  ;;  %v3519_v34 = vmul.f32 %v3500_v6, %v7419_v9  ;;  %v3521_v4 = vmul.f32 %v3505_v0, %v7421_v37 }
 0x78a   :  { %v3579_v24 = vadd.f32 %v3563_v51, %v3507_v8  ;;  %v3580_v11 = vadd.f32 %v3564_v21, %v3508_v23  ;;  %v7422_v8 = vld [vmem:[#allocation7_spill] sm:$0xff]  ;;  %v7423_v21 = vld [vmem:[#allocation4_spill] sm:$0xff] }
 0x78b   :  { %v3541_v27 = vpop.permute.xlu1 %3540  ;;  %v3587_v1 = vadd.f32 %v3571_v29, %v3515_v16  ;;  %v4907_v37 = vld [vmem:[%s7384_s0 + $0x8] sm:$0xff] }
 0x78c   :  { %v4478_v52 = vpack.c.bf16 %v3581_v60, %v3579_v24  ;;  %v4476_v58 = vpack.c.bf16 %v3582_v22, %v3580_v11  ;;  %v3569_v18 = vmul.f32 %v3541_v27, %v6876_v13  ;;  %v3570_v40 = vmul.f32 %v3541_v27, %v6879_v47  ;;  %v3556_v14 = vpop.permute.xlu0 %3555  ;;  %v7424_v22 = vld [vmem:[#allocation5_spill] sm:$0xff] }
 0x78d   :  { %v3572_v13 = vmul.f32 %v3546_v17, %v6949_v46  ;;  %v3575_v61 = vmul.f32 %v3556_v14, %v7417_v44  ;;  %v3576_v32 = vmul.f32 %v3556_v14, %v7418_v35 }
 0x78e   :  { %4477 = vmatprep.subr.bf16.mxu0 %v4476_v58  ;;  %v3585_v47 = vadd.f32 %v3569_v18, %v3513_v42  ;;  %v3586_v10 = vadd.f32 %v3570_v40, %v3514_v57 }
 0x78f   :  { %4479 = vmatpush1.bf16.msra.mxu0 %v4478_v52  ;;  %v3536_v62 = vpop.permute.xlu1 %3535  ;;  %v3588_v48 = vadd.f32 %v3572_v13, %v3516_v2  ;;  %v3591_v27 = vadd.f32 %v3575_v61, %v3519_v34  ;;  %v3592_v52 = vadd.f32 %v3576_v32, %v3520_v50  ;;  %v4906_v34 = vld [vmem:[%s7384_s0] sm:$0xff] }
 0x790   :  { %v3567_v5 = vmul.f32 %v3536_v62, %v6864_v54  ;;  %v3568_v38 = vmul.f32 %v3536_v62, %v6867_v63 }
 0x792   :  { %v3583_v43 = vadd.f32 %v3567_v5, %v3511_v30  ;;  %v3584_v15 = vadd.f32 %v3568_v38, %v3512_v36 }
 0x793   :  { %v3551_v54 = vpop.permute.xlu1 %3550 }
 0x794   :  { %v4482_v56 = vpack.c.bf16 %v3585_v47, %v3583_v43  ;;  %v3573_v63 = vmul.f32 %v3551_v54, %v6888_v7  ;;  %v3574_v59 = vmul.f32 %v3551_v54, %v7416_v53  ;;  %v4480_v46 = vpack.c.bf16 %v3586_v10, %v3584_v15 }
 0x795   :  { %v3522_v7 = vmul.f32 %v3505_v0, %v7422_v8 }
 0x796   :  { %v3589_v12 = vadd.f32 %v3573_v63, %v3517_v31  ;;  %v3590_v19 = vadd.f32 %v3574_v59, %v3518_v45  ;;  %4481 = vmatprep.subr.bf16.mxu0 %v4480_v46 }
 0x797   :  { %4483 = vmatpush1.bf16.msra.mxu0 %v4482_v56  ;;  %v3561_v23 = vpop.permute.xlu1 %3560 }
 0x798   :  { %v4486_v51 = vpack.c.bf16 %v3589_v12, %v3587_v1  ;;  %v3577_v60 = vmul.f32 %v3561_v23, %v7423_v21  ;;  %v3578_v24 = vmul.f32 %v3561_v23, %v7424_v22  ;;  %v4484_v11 = vpack.c.bf16 %v3590_v19, %v3588_v48 }
 0x79a   :  { %v3593_v58 = vadd.f32 %v3577_v60, %v3521_v4  ;;  %v3594_v17 = vadd.f32 %v3578_v24, %v3522_v7  ;;  %4485 = vmatprep.subr.bf16.mxu0 %v4484_v11 }
 0x79b   :  { %4487 = vmatpush1.bf16.msra.mxu0 %v4486_v51 }
 0x79c   :  { %v4490_v18 = vpack.c.bf16 %v3593_v58, %v3591_v27  ;;  %v4488_v6 = vpack.c.bf16 %v3594_v17, %v3592_v52  ;;  %v4908_v27 = vld [vmem:[%s7384_s0 + $0x10] sm:$0xff]  ;;  %v4909_v17 = vld [vmem:[%s7384_s0 + $0x18] sm:$0xff] }
 0x79e   :  { %4489 = vmatprep.subr.bf16.mxu0 %v4488_v6 }
 0x79f   :  { %4491 = vmatpush1.bf16.msra.mxu0 %v4490_v18 }
 0x7a2   :  { %4048 = vmatmul.mubr.msk.f32.vlgmr.msra.gmra.mrb[104].mxu0 %vm242_vm0, %v7002_v26 }
 0x7a3   :  { %3665 = vmatprep.mubr.f32.mxu0 %v7415_v20 }
 0x7a6   :  { %4049 = vmatmul.mubr.msk.f32.gmra.mrb[106].mxu0 %vm242_vm0, %v7037_v25 }
 0x7a7   :  { %3671 = vmatprep.mubr.f32.mxu0 %v7415_v20 }
 0x7aa   :  { %4050 = vmatmul.mubr.msk.f32.gmra.mrb[108].mxu0 %vm242_vm0, %v7044_v49 }
 0x7ab   :  { %3677 = vmatprep.mubr.f32.mxu0 %v7415_v20 }
 0x7ae   :  { %4051 = vmatmul.mubr.msk.f32.gmra.mrb[110].mxu0 %vm242_vm0, %v7057_v41 }
 0x7af   :  { %3683 = vmatprep.mubr.f32.mxu0 %v7415_v20 }
 0x7b2   :  { %4052 = vmatmul.mubr.msk.f32.gmra.mrb[112].mxu0 %vm242_vm0, %v7064_v55 }
 0x7b3   :  { %3689 = vmatprep.mubr.f32.mxu0 %v7415_v20 }
 0x7b6   :  { %4053 = vmatmul.mubr.msk.f32.gmra.mrb[114].mxu0 %vm242_vm0, %v7077_v28 }
 0x7b7   :  { %3695 = vmatprep.mubr.f32.mxu0 %v7415_v20 }
 0x7ba   :  { %4054 = vmatmul.mubr.msk.f32.gmra.mrb[116].mxu0 %vm242_vm0, %v7084_v33 }
 0x7bb   :  { %3701 = vmatprep.mubr.f32.mxu0 %v7415_v20 }
 0x7be   :  { %4055 = vmatmul.mubr.msk.f32.gmra.mrb[118].mxu0 %vm242_vm0, %v7097_v39 }
 0x875   :  { %v3661_v26 = vpop.f32.mrb[104].mxu0 }
 0x876   :  { %v4056_v25 = vmul.f32 -1.442695, %v3661_v26  ;;  %v3663_v49 = vpop.f32.mrb[105].mxu0 }
 0x877   :  { %v4057_v41 = vmul.f32 -1.442695, %v3663_v49 }
 0x878   :  { %4797 = vpow2.f32 %v4056_v25 }
 0x879   :  { %4799 = vpow2.f32 %v4057_v41  ;;  %v3667_v55 = vpop.f32.mrb[106].mxu0 }
 0x87a   :  { %v4058_v0 = vmul.f32 -1.442695, %v3667_v55  ;;  %v3669_v40 = vpop.f32.mrb[107].mxu0  ;;  %v4910_v55 = vld [vmem:[%s7384_s0 + $0x20] sm:$0xff] }
 0x87b   :  { %v4059_v28 = vmul.f32 -1.442695, %v3669_v40 }
 0x87c   :  { %4801 = vpow2.f32 %v4058_v0 }
 0x87d   :  { %4803 = vpow2.f32 %v4059_v28  ;;  %v3673_v42 = vpop.f32.mrb[108].mxu0  ;;  %v4911_v28 = vld [vmem:[%s7384_s0 + $0x28] sm:$0xff] }
 0x87e   :  { %v4060_v57 = vmul.f32 -1.442695, %v3673_v42  ;;  %v3675_v33 = vpop.f32.mrb[109].mxu0 }
 0x87f   :  { %v4061_v62 = vmul.f32 -1.442695, %v3675_v33 }
 0x880   :  { %4805 = vpow2.f32 %v4060_v57 }
 0x881   :  { %4807 = vpow2.f32 %v4061_v62  ;;  %v3679_v20 = vpop.f32.mrb[110].mxu0 }
 0x882   :  { %v4798_v39 = vpop.eup %4797  ;;  %v4062_v30 = vmul.f32 -1.442695, %v3679_v20  ;;  %v3681_v36 = vpop.f32.mrb[111].mxu0 }
 0x883   :  { %v4800_v5 = vpop.eup %4799  ;;  %v3756_v38 = vadd.f32 1.0, %v4798_v39  ;;  %v4063_v29 = vmul.f32 -1.442695, %v3681_v36 }
 0x884   :  { %v3757_v13 = vadd.f32 1.0, %v4800_v5  ;;  %4809 = vpow2.f32 %v4062_v30  ;;  %v4912_v30 = vld [vmem:[%s7384_s0 + $0x30] sm:$0xff] }
 0x885   :  { %4811 = vrcp.f32 %v3756_v38  ;;  %v3685_v47 = vpop.f32.mrb[112].mxu0 }
 0x886   :  { %v4802_v10 = vpop.eup %4801  ;;  %4813 = vrcp.f32 %v3757_v13  ;;  %v4064_v43 = vmul.f32 -1.442695, %v3685_v47  ;;  %v3687_v15 = vpop.f32.mrb[113].mxu0  ;;  %v4913_v13 = vld [vmem:[%s7384_s0 + $0x38] sm:$0xff] }
 0x887   :  { %v4804_v16 = vpop.eup %4803  ;;  %v3758_v2 = vadd.f32 1.0, %v4802_v10  ;;  %4815 = vpow2.f32 %v4063_v29  ;;  %v4065_v31 = vmul.f32 -1.442695, %v3687_v15 }
 0x888   :  { %v3759_v45 = vadd.f32 1.0, %v4804_v16  ;;  %4817 = vpow2.f32 %v4064_v43  ;;  %v4914_v43 = vld [vmem:[%s7384_s0 + $0x40] sm:$0xff] }
 0x889   :  { %4819 = vrcp.f32 %v3758_v2  ;;  %v3691_v14 = vpop.f32.mrb[114].mxu0 }
 0x88a   :  { %v4806_v54 = vpop.eup %4805  ;;  %4821 = vrcp.f32 %v3759_v45  ;;  %v4066_v56 = vmul.f32 -1.442695, %v3691_v14  ;;  %v3693_v63 = vpop.f32.mrb[115].mxu0 }
 0x88b   :  { %v4808_v53 = vpop.eup %4807  ;;  %v3760_v59 = vadd.f32 1.0, %v4806_v54  ;;  %4823 = vpow2.f32 %v4065_v31  ;;  %v4067_v46 = vmul.f32 -1.442695, %v3693_v63  ;;  %v4915_v54 = vld [vmem:[%s7384_s0 + $0x48] sm:$0xff]  ;;  %v4916_v63 = vld [vmem:[%s7384_s0 + $0x50] sm:$0xff] }
 0x88c   :  { %v3761_v1 = vadd.f32 1.0, %v4808_v53  ;;  %4825 = vpow2.f32 %v4066_v56 }
 0x88d   :  { %4827 = vrcp.f32 %v3760_v59  ;;  %v3697_v48 = vpop.f32.mrb[116].mxu0 }
 0x88e   :  { %v4810_v44 = vpop.eup %4809  ;;  %4829 = vrcp.f32 %v3761_v1  ;;  %v4068_v61 = vmul.f32 -1.442695, %v3697_v48  ;;  %v3699_v35 = vpop.f32.mrb[117].mxu0  ;;  %v4917_v1 = vld [vmem:[%s7384_s0 + $0x58] sm:$0xff] }
 0x88f   :  { %v4812_v32 = vpop.eup %4811  ;;  %v3762_v12 = vadd.f32 1.0, %v4810_v44  ;;  %4831 = vpow2.f32 %v4067_v46  ;;  %v4069_v19 = vmul.f32 -1.442695, %v3699_v35  ;;  %v4918_v44 = vld [vmem:[%s7384_s0 + $0x60] sm:$0xff] }
 0x890   :  { %v4814_v9 = vpop.eup %4813  ;;  %v3804_v3 = vmul.f32 %v4906_v34, %v4812_v32  ;;  %4833 = vpow2.f32 %v4068_v61  ;;  %v4919_v32 = vld [vmem:[%s7384_s0 + $0x68] sm:$0xff]  ;;  %v4920_v34 = vld [vmem:[%s7384_s0 + $0x70] sm:$0xff] }
 0x891   :  { %v4816_v50 = vpop.eup %4815  ;;  %v3805_v4 = vmul.f32 %v4907_v37, %v4814_v9  ;;  %4835 = vrcp.f32 %v3762_v12  ;;  %v3703_v8 = vpop.f32.mrb[118].mxu0 }
 0x892   :  { %v4818_v7 = vpop.eup %4817  ;;  %3820 = vst [vmem:[%s7392_s9] sm:$0xff] %v3804_v3  ;;  %v3763_v23 = vadd.f32 1.0, %v4816_v50  ;;  %4837 = vpow2.f32 %v4069_v19  ;;  %v4070_v51 = vmul.f32 -1.442695, %v3703_v8  ;;  %v3705_v21 = vpop.f32.mrb[119].mxu0  ;;  %v4921_v50 = vld [vmem:[%s7384_s0 + $0x78] sm:$0xff] }
 0x893   :  { %v4820_v60 = vpop.eup %4819  ;;  %3821 = vst [vmem:[%s7392_s9 + $0x8] sm:$0xff] %v3805_v4  ;;  %v3764_v22 = vadd.f32 1.0, %v4818_v7  ;;  %v4071_v24 = vmul.f32 -1.442695, %v3705_v21 }
 0x894   :  { %v4822_v11 = vpop.eup %4821  ;;  %v3806_v52 = vmul.f32 %v4908_v27, %v4820_v60  ;;  %4839 = vrcp.f32 %v3763_v23 }
 0x895   :  { %v4824_v58 = vpop.eup %4823  ;;  %v3807_v18 = vmul.f32 %v4909_v17, %v4822_v11  ;;  %4841 = vrcp.f32 %v3764_v22 }
 0x896   :  { %v4826_v6 = vpop.eup %4825  ;;  %3822 = vst [vmem:[%s7392_s9 + $0x10] sm:$0xff] %v3806_v52  ;;  %v3765_v26 = vadd.f32 1.0, %v4824_v58  ;;  %4843 = vpow2.f32 %v4070_v51 }
 0x897   :  { %v4828_v25 = vpop.eup %4827  ;;  %3823 = vst [vmem:[%s7392_s9 + $0x18] sm:$0xff] %v3807_v18  ;;  %v3766_v49 = vadd.f32 1.0, %v4826_v6  ;;  %4845 = vpow2.f32 %v4071_v24 }
 0x898   :  { %v4830_v41 = vpop.eup %4829  ;;  %v3808_v0 = vmul.f32 %v4910_v55, %v4828_v25  ;;  %4847 = vrcp.f32 %v3765_v26 }
 0x899   :  { %v4832_v40 = vpop.eup %4831  ;;  %v3809_v42 = vmul.f32 %v4911_v28, %v4830_v41  ;;  %4849 = vrcp.f32 %v3766_v49 }
 0x89a   :  { %v4834_v57 = vpop.eup %4833  ;;  %3824 = vst [vmem:[%s7392_s9 + $0x20] sm:$0xff] %v3808_v0  ;;  %v3767_v33 = vadd.f32 1.0, %v4832_v40 }
 0x89b   :  { %v4836_v62 = vpop.eup %4835  ;;  %3825 = vst [vmem:[%s7392_s9 + $0x28] sm:$0xff] %v3809_v42  ;;  %v3768_v20 = vadd.f32 1.0, %v4834_v57 }
 0x89c   :  { %v4838_v39 = vpop.eup %4837  ;;  %v3810_v36 = vmul.f32 %v4912_v30, %v4836_v62  ;;  %4851 = vrcp.f32 %v3767_v33 }
 0x89d   :  { %4853 = vrcp.f32 %v3768_v20  ;;  %v3769_v5 = vadd.f32 1.0, %v4838_v39 }
 0x89e   :  { %v4840_v38 = vpop.eup %4839  ;;  %3826 = vst [vmem:[%s7392_s9 + $0x30] sm:$0xff] %v3810_v36 }
 0x89f   :  { %v4842_v29 = vpop.eup %4841  ;;  %v3811_v47 = vmul.f32 %v4913_v13, %v4840_v38  ;;  %4855 = vrcp.f32 %v3769_v5 }
 0x8a0   :  { %v4844_v10 = vpop.eup %4843  ;;  %v3812_v15 = vmul.f32 %v4914_v43, %v4842_v29 }
 0x8a1   :  { %v4846_v16 = vpop.eup %4845  ;;  %3827 = vst [vmem:[%s7392_s9 + $0x38] sm:$0xff] %v3811_v47  ;;  %v3770_v2 = vadd.f32 1.0, %v4844_v10 }
 0x8a2   :  { %v4848_v31 = vpop.eup %4847  ;;  %3828 = vst [vmem:[%s7392_s9 + $0x40] sm:$0xff] %v3812_v15  ;;  %v3771_v45 = vadd.f32 1.0, %v4846_v16 }
 0x8a3   :  { %v4850_v14 = vpop.eup %4849  ;;  %v3813_v56 = vmul.f32 %v4915_v54, %v4848_v31  ;;  %4857 = vrcp.f32 %v3770_v2 }
 0x8a4   :  { %v3814_v53 = vmul.f32 %v4916_v63, %v4850_v14  ;;  %4859 = vrcp.f32 %v3771_v45 }
 0x8a5   :  { %3829 = vst [vmem:[%s7392_s9 + $0x48] sm:$0xff] %v3813_v56 }
 0x8a6   :  { %v4852_v59 = vpop.eup %4851  ;;  %3830 = vst [vmem:[%s7392_s9 + $0x50] sm:$0xff] %v3814_v53 }
 0x8a7   :  { %v4854_v46 = vpop.eup %4853  ;;  %v3815_v48 = vmul.f32 %v4917_v1, %v4852_v59 }
 0x8a8   :  { %v3816_v61 = vmul.f32 %v4918_v44, %v4854_v46 }
 0x8a9   :  { %v4856_v35 = vpop.eup %4855  ;;  %3831 = vst [vmem:[%s7392_s9 + $0x58] sm:$0xff] %v3815_v48 }
 0x8aa   :  { %3832 = vst [vmem:[%s7392_s9 + $0x60] sm:$0xff] %v3816_v61  ;;  %v3817_v12 = vmul.f32 %v4919_v32, %v4856_v35 }
 0x8ac   :  { %3833 = vst [vmem:[%s7392_s9 + $0x68] sm:$0xff] %v3817_v12 }
 0x8ad   :  { %v4858_v19 = vpop.eup %4857 }
 0x8ae   :  { %v4860_v9 = vpop.eup %4859  ;;  %v3818_v3 = vmul.f32 %v4920_v34, %v4858_v19 }
 0x8af   :  { %v3819_v37 = vmul.f32 %v4921_v50, %v4860_v9 }
 0x8b0   :  { %3834 = vst [vmem:[%s7392_s9 + $0x70] sm:$0xff] %v3818_v3 }
 0x8b1   :  { %3835 = vst [vmem:[%s7392_s9 + $0x78] sm:$0xff] %v3819_v37 }

</bundles_post_ra>
